<compile_context>
chip_gen: v6e
topology: v6e:2x2x1
jax: 0.10.0
libtpu: 0.0.40
codegen_flags: <defaults>
</compile_context>

<pallas_src>
import math
from functools import partial

import numpy as np
import jax
import jax.numpy as jnp
from jax.experimental import pallas as pl
from jax.experimental.pallas import tpu as pltpu


# ----------------------------------------------------------------------------
# Polyphase tap tables for ConvTranspose2d(kernel=4, stride=2, padding=1).
#
# Single transposed conv, input x zero-padded by 1 each side (xp):
#   phase p=0 (even out rows):  y[2m]   = xp[m]  *w[3] + xp[m+1]*w[1]
#   phase p=1 (odd  out rows):  y[2m+1] = xp[m+1]*w[2] + xp[m+2]*w[0]
_CT_OFF = ((0, 1), (1, 2))     # read offset into padded input, per phase/tap
_CT_K = ((3, 1), (2, 0))       # kernel tap index, per phase/tap

# Second transposed conv consuming the first one's phases u_p[m] = y[2m+p]
# (u zero-padded by 1 so dr/dc in {-1,0,+1} are plain slices):
_CT2_PD = (((1, -1), (0, 0)),  # per out phase r: ((p, dr) for tap i=0, 1)
           ((0, 0), (1, 0)),
           ((0, 0), (1, 0)),
           ((1, 0), (0, 1)))
_CT2_K = ((3, 1), (2, 0), (3, 1), (2, 0))
# Unique (phase, shift) reads of ConvT#1's output used by ConvT#2 (rows & cols).
_CT2_READS = ((1, -1), (0, 0), (1, 0), (0, 1))


# ----------------------------------------------------------------------------
# Fused decoder kernel: one grid step == batch_tile samples, all in VMEM.
# ----------------------------------------------------------------------------
def _make_decoder_kernel(*, H, W, bt, Cin, C, n_res, stride, Cup, Co):
    HW = H * W
    M = bt * HW
    P = 4 if stride == 4 else 2
    PPCo = P * P * Co

    def im2col3x3(v, Cch):
        # v: (bt, H+2, W+2, Cch) value -> (M, 9*Cch) slab (one dot per layer).
        cols = [v[:, kh:kh + H, kw:kw + W, :].reshape(M, Cch)
                for kh in range(3) for kw in range(3)]
        return jnp.concatenate(cols, axis=-1)

    def kernel(*refs):
        it = iter(refs)
        x_ref = next(it)                                   # (bt,H+2,W+2,Cin) pre-padded
        w0_ref, b0_ref = next(it), next(it)
        res_refs = [(next(it), next(it), next(it), next(it)) for _ in range(n_res)]
        ct1w_ref, ct1b_ref = next(it), next(it)
        if stride == 4:
            ct2w_ref, ct2b_ref = next(it), next(it)
        o_ref = next(it)                                   # (bt, HW, P*P*Co)
        hp_ref = next(it)                                  # (bt, H+2, W+2, C)
        u_ref = next(it) if stride == 4 else None          # (bt, H+2, W+2, 4*Cup)

        # --- zero only the 1-px halo of the padded scratch (interior is fully
        #     rewritten every layer).  Per-step, not program_id-gated: scratch
        #     is per-TensorCore when the "parallel" grid is split across cores.
        def zero_halo(ref, Cch):
            zr = jnp.zeros((bt, 1, W + 2, Cch), jnp.float32)
            ref[:, 0:1, :, :] = zr
            ref[:, H + 1:H + 2, :, :] = zr
            zc = jnp.zeros((bt, H + 2, 1, Cch), jnp.float32)
            ref[:, :, 0:1, :] = zc
            ref[:, :, W + 1:W + 2, :] = zc

        zero_halo(hp_ref, C)
        if stride == 4:
            zero_halo(u_ref, 4 * Cup)

        # ---- blocks[0]: Conv2d(Cin -> C, 3x3, padding=1): ONE dot, K=9*Cin ---
        xslab = im2col3x3(x_ref[...], Cin)                         # (M, 9*Cin)
        h0 = jnp.dot(xslab, w0_ref[...],
                     preferred_element_type=jnp.float32) + b0_ref[...]
        hp_ref[:, 1:H + 1, 1:W + 1, :] = h0.reshape(bt, H, W, C)

        # ---- ResBlocks: h += Conv1x1(ReLU(Conv3x3(ReLU(h)))) -----------------
        for w1_ref, b1_ref, w2_ref, b2_ref in res_refs:
            hp = hp_ref[...]
            hr = jnp.maximum(hp, 0.0)          # relu(0)=0 keeps the halo exact
            slab = im2col3x3(hr, C)                                # (M, 9*C)
            t = jnp.maximum(
                jnp.dot(slab, w1_ref[...],
                        preferred_element_type=jnp.float32) + b1_ref[...], 0.0)
            d = jnp.dot(t, w2_ref[...],
                        preferred_element_type=jnp.float32) + b2_ref[...]
            hp_ref[:, 1:H + 1, 1:W + 1, :] = (
                hp[:, 1:H + 1, 1:W + 1, :] + d.reshape(bt, H, W, C))

        # ---- trailing ReLU + ConvTranspose #1 (all phases fused, ONE dot) ----
        hr = jnp.maximum(hp_ref[...], 0.0)
        slab = im2col3x3(hr, C)                                    # (M, 9*C)
        y1 = jnp.dot(slab, ct1w_ref[...],
                     preferred_element_type=jnp.float32) + ct1b_ref[...]

        if stride == 2:
            # y1 columns are already ordered (phase=2p+q, cout): lane-dense out.
            o_ref[...] = y1.reshape(bt, HW, PPCo)
            return

        # ---- stride == 4: ReLU, then ConvTranspose #2 (16 phases, ONE dot) ---
        u_ref[:, 1:H + 1, 1:W + 1, :] = (
            jnp.maximum(y1, 0.0).reshape(bt, H, W, 4 * Cup))
        u = u_ref[...]
        cols = []
        for (p, dr) in _CT2_READS:
            for (q, dc) in _CT2_READS:
                ph = 2 * p + q
                cols.append(u[:, 1 + dr:1 + dr + H, 1 + dc:1 + dc + W,
                              ph * Cup:(ph + 1) * Cup].reshape(M, Cup))
        slab2 = jnp.concatenate(cols, axis=-1)                     # (M, 16*Cup)
        y2 = jnp.dot(slab2, ct2w_ref[...],
                     preferred_element_type=jnp.float32) + ct2b_ref[...]
        o_ref[...] = y2.reshape(bt, HW, PPCo)

    return kernel


def _full_spec(arr):
    nd = arr.ndim
    return pl.BlockSpec(arr.shape, lambda n, _nd=nd: (0,) * _nd)


def decoder_forward(x_nchw, kp, *, stride, batch_tile=None):
    """Fused decoder forward.  kp = prepare_params(torch_params, stride=...)."""
    assert stride in (2, 4)
    N, Cin, H, W = x_nchw.shape
    HW = H * W
    P = 4 if stride == 4 else 2
    PP = P * P

    C = kp["conv0_w"].shape[-1]
    n_res = len(kp["res"])
    PhN1 = kp["ct1_w"].shape[-1]                 # 4*Cup (stride 4) / 4*Co (stride 2)
    Cup = PhN1 // 4
    Co = (kp["ct2_w"].shape[-1] // 16) if stride == 4 else Cup
    PPCo = PP * Co

    if batch_tile is None:
        # Default keeps >=2 grid steps (v7x dual-TC); on v5e/v6e pass
        # batch_tile=N (or 128//HW) to fill the MXU M dim and drop loop overhead.
        want = min(max(1, 128 // HW), max(1, N // 2)) if N > 1 else 1
        batch_tile = math.gcd(N, max(1, want))
    assert N % batch_tile == 0

    # NCHW -> NHWC, pre-padded by 1 (removes the xp scratch + per-step zero+copy).
    x = jnp.transpose(x_nchw, (0, 2, 3, 1))
    x = jnp.pad(x, ((0, 0), (1, 1), (1, 1), (0, 0)))

    args = [x, kp["conv0_w"], kp["conv0_b"]]
    in_specs = [pl.BlockSpec((batch_tile, H + 2, W + 2, Cin),
                             lambda n: (n, 0, 0, 0)),
                _full_spec(kp["conv0_w"]), _full_spec(kp["conv0_b"])]
    for blk in kp["res"]:
        for a in blk:
            args.append(a)
            in_specs.append(_full_spec(a))
    args += [kp["ct1_w"], kp["ct1_b"]]
    in_specs += [_full_spec(kp["ct1_w"]), _full_spec(kp["ct1_b"])]
    if stride == 4:
        args += [kp["ct2_w"], kp["ct2_b"]]
        in_specs += [_full_spec(kp["ct2_w"]), _full_spec(kp["ct2_b"])]

    scratch = [pltpu.VMEM((batch_tile, H + 2, W + 2, C), jnp.float32)]
    if stride == 4:
        scratch.append(pltpu.VMEM((batch_tile, H + 2, W + 2, 4 * Cup), jnp.float32))

    kernel = _make_decoder_kernel(H=H, W=W, bt=batch_tile, Cin=Cin, C=C,
                                  n_res=n_res, stride=stride, Cup=Cup, Co=Co)

    out = pl.pallas_call(
        kernel,
        out_shape=jax.ShapeDtypeStruct((N, HW, PPCo), jnp.float32),
        grid=(N // batch_tile,),
        in_specs=in_specs,
        out_specs=pl.BlockSpec((batch_tile, HW, PPCo), lambda n: (n, 0, 0)),
        scratch_shapes=scratch,
        compiler_params=pltpu.CompilerParams(dimension_semantics=("parallel",)),
    )(*args)

    # Phase interleave + NHWC->NCHW folded into one small wrapper transpose:
    # out[n, h*W+w, (P*r+s)*Co + c] -> final[n, c, h*P+r, w*P+s].
    out = out.reshape(N, H, W, P, P, Co)
    out = jnp.transpose(out, (0, 5, 1, 3, 2, 4)).reshape(N, Co, P * H, P * W)
    return out


# ----------------------------------------------------------------------------
# One-time weight preparation (hoisted out of the forward path)
# ----------------------------------------------------------------------------
def _conv3x3_2d(w):
    """nn.Conv2d OIHW (Co,Ci,3,3) -> (9*Ci, Co); rows ordered (kh, kw, ci)."""
    w = np.asarray(w)
    co, ci = w.shape[0], w.shape[1]
    return jnp.asarray(np.transpose(w, (2, 3, 1, 0)).reshape(9 * ci, co))


def _ct1_fused(w_t):
    """ConvT#1 weight (Ci,Co,4,4) -> (9*Ci, 4*Co) with K=(shift a,b), N=(phase,co)."""
    w_t = np.asarray(w_t)
    ci, co = w_t.shape[0], w_t.shape[1]
    Wf = np.zeros((9 * ci, 4 * co), np.float32)
    for p in range(2):
        for q in range(2):
            ph = 2 * p + q
            for ta in range(2):
                for tb in range(2):
                    a, b = _CT_OFF[p][ta], _CT_OFF[q][tb]
                    kr, kc = _CT_K[p][ta], _CT_K[q][tb]
                    Wf[(a * 3 + b) * ci:(a * 3 + b + 1) * ci,
                       ph * co:(ph + 1) * co] += w_t[:, :, kr, kc]
    return jnp.asarray(Wf)


def _ct2_fused(w_t):
    """ConvT#2 weight (Ci,Co,4,4) -> (16*Ci, 16*Co); K=(read a,b), N=(out phase,co)."""
    w_t = np.asarray(w_t)
    ci, co = w_t.shape[0], w_t.shape[1]
    Wf = np.zeros((16 * ci, 16 * co), np.float32)
    for r in range(4):
        for s in range(4):
            oph = 4 * r + s
            for i in range(2):
                p, dr = _CT2_PD[r][i]
                a = _CT2_READS.index((p, dr))
                kr = _CT2_K[r][i]
                for j in range(2):
                    q, dc = _CT2_PD[s][j]
                    b = _CT2_READS.index((q, dc))
                    kc = _CT2_K[s][j]
                    Wf[(a * 4 + b) * ci:(a * 4 + b + 1) * ci,
                       oph * co:(oph + 1) * co] += w_t[:, :, kr, kc]
    return jnp.asarray(Wf)


def prepare_params(params, *, stride):
    kp = {"conv0_w": _conv3x3_2d(params["conv0_w"]),
          "conv0_b": jnp.asarray(np.asarray(params["conv0_b"]).reshape(1, -1)),
          "res": []}
    for (w1, b1, w2, b2) in params["res"]:
        kp["res"].append((_conv3x3_2d(w1),
                          jnp.asarray(np.asarray(b1).reshape(1, -1)),
                          jnp.asarray(np.asarray(w2)[:, :, 0, 0].T.copy()),   # (Cr, C)
                          jnp.asarray(np.asarray(b2).reshape(1, -1))))
    kp["ct1_w"] = _ct1_fused(params["ct1_w"])
    kp["ct1_b"] = jnp.asarray(np.tile(np.asarray(params["ct1_b"]), 4).reshape(1, -1))
    if stride == 4:
        kp["ct2_w"] = _ct2_fused(params["ct2_w"])
        kp["ct2_b"] = jnp.asarray(np.tile(np.asarray(params["ct2_b"]), 16).reshape(1, -1))
    return kp


# ----------------------------------------------------------------------------
# Pure-JAX reference (for correctness check)
# ----------------------------------------------------------------------------
def ref_forward(x, params, *, stride):
    dn = ("NCHW", "OIHW", "NCHW")
    hi = jax.lax.Precision.HIGHEST

    def conv(x, w, b, pad):
        y = jax.lax.conv_general_dilated(x, w, (1, 1), ((pad, pad), (pad, pad)),
                                         dimension_numbers=dn, precision=hi)
        return y + b[None, :, None, None]

    def convT(x, w_t, b):
        K = w_t.shape[2]
        w_conv = jnp.transpose(w_t[:, :, ::-1, ::-1], (1, 0, 2, 3))
        y = jax.lax.conv_general_dilated(x, w_conv, (1, 1),
                                         ((K - 2, K - 2), (K - 2, K - 2)),
                                         lhs_dilation=(2, 2),
                                         dimension_numbers=dn, precision=hi)
        return y + b[None, :, None, None]

    h = conv(x, params["conv0_w"], params["conv0_b"], 1)
    for (w1, b1, w2, b2) in params["res"]:
        t = conv(jax.nn.relu(h), w1, b1, 1)
        h = h + conv(jax.nn.relu(t), w2, b2, 0)
    h = jax.nn.relu(h)
    if stride == 4:
        h = convT(h, params["ct1_w"], params["ct1_b"])
        h = convT(jax.nn.relu(h), params["ct2_w"], params["ct2_b"])
    elif stride == 2:
        h = convT(h, params["ct1_w"], params["ct1_b"])
    return h


# ----------------------------------------------------------------------------
# Deterministic parameter init (shapes match nn.Module __init__, torch layout)
# ----------------------------------------------------------------------------
def init_params(key, in_channel, out_channel, channel, n_res_block,
                n_res_channel, stride):
    def nxt():
        nonlocal key
        key, k = jax.random.split(key)
        return k

    def conv_p(co, ci, k):      # nn.Conv2d weight OIHW
        s = 1.0 / math.sqrt(ci * k * k)
        return (jax.random.uniform(nxt(), (co, ci, k, k), jnp.float32, -s, s),
                jax.random.uniform(nxt(), (co,), jnp.float32, -s, s))

    def convT_p(ci, co, k):     # nn.ConvTranspose2d weight (Cin, Cout, KH, KW)
        s = 1.0 / math.sqrt(ci * k * k)
        return (jax.random.uniform(nxt(), (ci, co, k, k), jnp.float32, -s, s),
                jax.random.uniform(nxt(), (co,), jnp.float32, -s, s))

    p = {}
    p["conv0_w"], p["conv0_b"] = conv_p(channel, in_channel, 3)
    p["res"] = []
    for _ in range(n_res_block):
        w1, b1 = conv_p(n_res_channel, channel, 3)
        w2, b2 = conv_p(channel, n_res_channel, 1)
        p["res"].append((w1, b1, w2, b2))
    if stride == 4:
        p["ct1_w"], p["ct1_b"] = convT_p(channel, channel // 2, 4)
        p["ct2_w"], p["ct2_b"] = convT_p(channel // 2, out_channel, 4)
    elif stride == 2:
        p["ct1_w"], p["ct1_b"] = convT_p(channel, out_channel, 4)
    return p


if __name__ == "__main__":
    in_channel, out_channel, channel = 4, 3, 32
    n_res_block, n_res_channel = 2, 8
    N, H, W = 2, 8, 8

    key = jax.random.PRNGKey(0)
    for stride in (4, 2):
        key, kx, kparam = jax.random.split(key, 3)
        x = jax.random.normal(kx, (N, in_channel, H, W), jnp.float32)
        params = init_params(kparam, in_channel, out_channel, channel,
                             n_res_block, n_res_channel, stride)
        kparams = prepare_params(params, stride=stride)   # one-time weight prep
        fwd = jax.jit(partial(decoder_forward, stride=stride))

        out = jax.block_until_ready(fwd(x, kparams))
        assert out.shape == (N, out_channel, H * stride, W * stride), out.shape

        ref = ref_forward(x, params, stride=stride)
        np.testing.assert_allclose(np.asarray(out), np.asarray(ref),
                                   rtol=5e-3, atol=5e-3)

    print("KERNEL_OK")
</pallas_src>

<mosaic_0001>
module attributes {stable_mosaic.version = 11 : i64} {
  func.func @kernel(%arg0: i32, %arg1: memref<1x10x10x4xf32, #tpu.memory_space<vmem>>, %arg2: memref<36x32xf32, #tpu.memory_space<vmem>>, %arg3: memref<1x32xf32, #tpu.memory_space<vmem>>, %arg4: memref<288x8xf32, #tpu.memory_space<vmem>>, %arg5: memref<1x8xf32, #tpu.memory_space<vmem>>, %arg6: memref<8x32xf32, #tpu.memory_space<vmem>>, %arg7: memref<1x32xf32, #tpu.memory_space<vmem>>, %arg8: memref<288x8xf32, #tpu.memory_space<vmem>>, %arg9: memref<1x8xf32, #tpu.memory_space<vmem>>, %arg10: memref<8x32xf32, #tpu.memory_space<vmem>>, %arg11: memref<1x32xf32, #tpu.memory_space<vmem>>, %arg12: memref<288x64xf32, #tpu.memory_space<vmem>>, %arg13: memref<1x64xf32, #tpu.memory_space<vmem>>, %arg14: memref<256x48xf32, #tpu.memory_space<vmem>>, %arg15: memref<1x48xf32, #tpu.memory_space<vmem>>, %arg16: memref<1x64x48xf32, #tpu.memory_space<vmem>>, %arg17: memref<1x10x10x32xf32, #tpu.memory_space<vmem>>, %arg18: memref<1x10x10x64xf32, #tpu.memory_space<vmem>>) attributes {dimension_semantics = [#tpu.dimension_semantics<parallel>], iteration_bounds = array<i64: 2>, scalar_prefetch = 0 : i64, scratch_operands = 2 : i64, tpu.core_type = #tpu.core_type<tc>, window_params = [{transform_indices = @transform_0, window_bounds = array<i64: 1, 10, 10, 4>}, {pipeline_mode = #tpu.pipeline_mode<synchronous>, transform_indices = @transform_1, window_bounds = array<i64: 36, 32>}, {pipeline_mode = #tpu.pipeline_mode<synchronous>, transform_indices = @transform_2, window_bounds = array<i64: 1, 32>}, {pipeline_mode = #tpu.pipeline_mode<synchronous>, transform_indices = @transform_3, window_bounds = array<i64: 288, 8>}, {pipeline_mode = #tpu.pipeline_mode<synchronous>, transform_indices = @transform_4, window_bounds = array<i64: 1, 8>}, {pipeline_mode = #tpu.pipeline_mode<synchronous>, transform_indices = @transform_5, window_bounds = array<i64: 8, 32>}, {pipeline_mode = #tpu.pipeline_mode<synchronous>, transform_indices = @transform_6, window_bounds = array<i64: 1, 32>}, {pipeline_mode = #tpu.pipeline_mode<synchronous>, transform_indices = @transform_7, window_bounds = array<i64: 288, 8>}, {pipeline_mode = #tpu.pipeline_mode<synchronous>, transform_indices = @transform_8, window_bounds = array<i64: 1, 8>}, {pipeline_mode = #tpu.pipeline_mode<synchronous>, transform_indices = @transform_9, window_bounds = array<i64: 8, 32>}, {pipeline_mode = #tpu.pipeline_mode<synchronous>, transform_indices = @transform_10, window_bounds = array<i64: 1, 32>}, {pipeline_mode = #tpu.pipeline_mode<synchronous>, transform_indices = @transform_11, window_bounds = array<i64: 288, 64>}, {pipeline_mode = #tpu.pipeline_mode<synchronous>, transform_indices = @transform_12, window_bounds = array<i64: 1, 64>}, {pipeline_mode = #tpu.pipeline_mode<synchronous>, transform_indices = @transform_13, window_bounds = array<i64: 256, 48>}, {pipeline_mode = #tpu.pipeline_mode<synchronous>, transform_indices = @transform_14, window_bounds = array<i64: 1, 48>}, {transform_indices = @transform_15, window_bounds = array<i64: 1, 64, 48>}]} {
    %cst = arith.constant 0.000000e+00 : f32
    %0 = vector.broadcast %cst : f32 to vector<1x1x10x32xf32>
    %c0 = arith.constant 0 : index
    %c0_0 = arith.constant 0 : index
    %c0_1 = arith.constant 0 : index
    %c0_2 = arith.constant 0 : index
    %1 = vector.load %arg17[%c0, %c0_0, %c0_1, %c0_2] : memref<1x10x10x32xf32, #tpu.memory_space<vmem>>, vector<1x1x10x32xf32>
    tpu.vector_store %arg17[%c0, %c0_0, %c0_1, %c0_2], %0 {strides = array<i32>} : memref<1x10x10x32xf32, #tpu.memory_space<vmem>>, vector<1x1x10x32xf32>,
    %c0_3 = arith.constant 0 : index
    %c9 = arith.constant 9 : index
    %c0_4 = arith.constant 0 : index
    %c0_5 = arith.constant 0 : index
    %2 = vector.load %arg17[%c0_3, %c9, %c0_4, %c0_5] : memref<1x10x10x32xf32, #tpu.memory_space<vmem>>, vector<1x1x10x32xf32>
    tpu.vector_store %arg17[%c0_3, %c9, %c0_4, %c0_5], %0 {strides = array<i32>} : memref<1x10x10x32xf32, #tpu.memory_space<vmem>>, vector<1x1x10x32xf32>,
    %cst_6 = arith.constant 0.000000e+00 : f32
    %3 = vector.broadcast %cst_6 : f32 to vector<1x10x1x32xf32>
    %c0_7 = arith.constant 0 : index
    %c0_8 = arith.constant 0 : index
    %c0_9 = arith.constant 0 : index
    %c0_10 = arith.constant 0 : index
    %4 = vector.load %arg17[%c0_7, %c0_8, %c0_9, %c0_10] : memref<1x10x10x32xf32, #tpu.memory_space<vmem>>, vector<1x10x1x32xf32>
    tpu.vector_store %arg17[%c0_7, %c0_8, %c0_9, %c0_10], %3 {strides = array<i32>} : memref<1x10x10x32xf32, #tpu.memory_space<vmem>>, vector<1x10x1x32xf32>,
    %c0_11 = arith.constant 0 : index
    %c0_12 = arith.constant 0 : index
    %c9_13 = arith.constant 9 : index
    %c0_14 = arith.constant 0 : index
    %5 = vector.load %arg17[%c0_11, %c0_12, %c9_13, %c0_14] : memref<1x10x10x32xf32, #tpu.memory_space<vmem>>, vector<1x10x1x32xf32>
    tpu.vector_store %arg17[%c0_11, %c0_12, %c9_13, %c0_14], %3 {strides = array<i32>} : memref<1x10x10x32xf32, #tpu.memory_space<vmem>>, vector<1x10x1x32xf32>,
    %cst_15 = arith.constant 0.000000e+00 : f32
    %6 = vector.broadcast %cst_15 : f32 to vector<1x1x10x64xf32>
    %c0_16 = arith.constant 0 : index
    %c0_17 = arith.constant 0 : index
    %c0_18 = arith.constant 0 : index
    %c0_19 = arith.constant 0 : index
    %7 = vector.load %arg18[%c0_16, %c0_17, %c0_18, %c0_19] : memref<1x10x10x64xf32, #tpu.memory_space<vmem>>, vector<1x1x10x64xf32>
    tpu.vector_store %arg18[%c0_16, %c0_17, %c0_18, %c0_19], %6 {strides = array<i32>} : memref<1x10x10x64xf32, #tpu.memory_space<vmem>>, vector<1x1x10x64xf32>,
    %c0_20 = arith.constant 0 : index
    %c9_21 = arith.constant 9 : index
    %c0_22 = arith.constant 0 : index
    %c0_23 = arith.constant 0 : index
    %8 = vector.load %arg18[%c0_20, %c9_21, %c0_22, %c0_23] : memref<1x10x10x64xf32, #tpu.memory_space<vmem>>, vector<1x1x10x64xf32>
    tpu.vector_store %arg18[%c0_20, %c9_21, %c0_22, %c0_23], %6 {strides = array<i32>} : memref<1x10x10x64xf32, #tpu.memory_space<vmem>>, vector<1x1x10x64xf32>,
    %cst_24 = arith.constant 0.000000e+00 : f32
    %9 = vector.broadcast %cst_24 : f32 to vector<1x10x1x64xf32>
    %c0_25 = arith.constant 0 : index
    %c0_26 = arith.constant 0 : index
    %c0_27 = arith.constant 0 : index
    %c0_28 = arith.constant 0 : index
    %10 = vector.load %arg18[%c0_25, %c0_26, %c0_27, %c0_28] : memref<1x10x10x64xf32, #tpu.memory_space<vmem>>, vector<1x10x1x64xf32>
    tpu.vector_store %arg18[%c0_25, %c0_26, %c0_27, %c0_28], %9 {strides = array<i32>} : memref<1x10x10x64xf32, #tpu.memory_space<vmem>>, vector<1x10x1x64xf32>,
    %c0_29 = arith.constant 0 : index
    %c0_30 = arith.constant 0 : index
    %c9_31 = arith.constant 9 : index
    %c0_32 = arith.constant 0 : index
    %11 = vector.load %arg18[%c0_29, %c0_30, %c9_31, %c0_32] : memref<1x10x10x64xf32, #tpu.memory_space<vmem>>, vector<1x10x1x64xf32>
    tpu.vector_store %arg18[%c0_29, %c0_30, %c9_31, %c0_32], %9 {strides = array<i32>} : memref<1x10x10x64xf32, #tpu.memory_space<vmem>>, vector<1x10x1x64xf32>,
    %c0_33 = arith.constant 0 : index
    %c0_34 = arith.constant 0 : index
    %c0_35 = arith.constant 0 : index
    %c0_36 = arith.constant 0 : index
    %12 = vector.load %arg1[%c0_33, %c0_34, %c0_35, %c0_36] : memref<1x10x10x4xf32, #tpu.memory_space<vmem>>, vector<1x10x10x4xf32>
    %13 = vector.extract_strided_slice %12 {offsets = [0, 0, 0, 0], sizes = [1, 8, 8, 4], strides = [1, 1, 1, 1]} : vector<1x10x10x4xf32> to vector<1x8x8x4xf32>
    %14 = vector.shape_cast %13 : vector<1x8x8x4xf32> to vector<64x4xf32>
    %15 = vector.extract_strided_slice %12 {offsets = [0, 0, 1, 0], sizes = [1, 8, 8, 4], strides = [1, 1, 1, 1]} : vector<1x10x10x4xf32> to vector<1x8x8x4xf32>
    %16 = vector.shape_cast %15 : vector<1x8x8x4xf32> to vector<64x4xf32>
    %17 = vector.extract_strided_slice %12 {offsets = [0, 0, 2, 0], sizes = [1, 8, 8, 4], strides = [1, 1, 1, 1]} : vector<1x10x10x4xf32> to vector<1x8x8x4xf32>
    %18 = vector.shape_cast %17 : vector<1x8x8x4xf32> to vector<64x4xf32>
    %19 = vector.extract_strided_slice %12 {offsets = [0, 1, 0, 0], sizes = [1, 8, 8, 4], strides = [1, 1, 1, 1]} : vector<1x10x10x4xf32> to vector<1x8x8x4xf32>
    %20 = vector.shape_cast %19 : vector<1x8x8x4xf32> to vector<64x4xf32>
    %21 = vector.extract_strided_slice %12 {offsets = [0, 1, 1, 0], sizes = [1, 8, 8, 4], strides = [1, 1, 1, 1]} : vector<1x10x10x4xf32> to vector<1x8x8x4xf32>
    %22 = vector.shape_cast %21 : vector<1x8x8x4xf32> to vector<64x4xf32>
    %23 = vector.extract_strided_slice %12 {offsets = [0, 1, 2, 0], sizes = [1, 8, 8, 4], strides = [1, 1, 1, 1]} : vector<1x10x10x4xf32> to vector<1x8x8x4xf32>
    %24 = vector.shape_cast %23 : vector<1x8x8x4xf32> to vector<64x4xf32>
    %25 = vector.extract_strided_slice %12 {offsets = [0, 2, 0, 0], sizes = [1, 8, 8, 4], strides = [1, 1, 1, 1]} : vector<1x10x10x4xf32> to vector<1x8x8x4xf32>
    %26 = vector.shape_cast %25 : vector<1x8x8x4xf32> to vector<64x4xf32>
    %27 = vector.extract_strided_slice %12 {offsets = [0, 2, 1, 0], sizes = [1, 8, 8, 4], strides = [1, 1, 1, 1]} : vector<1x10x10x4xf32> to vector<1x8x8x4xf32>
    %28 = vector.shape_cast %27 : vector<1x8x8x4xf32> to vector<64x4xf32>
    %29 = vector.extract_strided_slice %12 {offsets = [0, 2, 2, 0], sizes = [1, 8, 8, 4], strides = [1, 1, 1, 1]} : vector<1x10x10x4xf32> to vector<1x8x8x4xf32>
    %30 = vector.shape_cast %29 : vector<1x8x8x4xf32> to vector<64x4xf32>
    %31 = tpu.concatenate %14, %16, %18, %20, %22, %24, %26, %28, %30 in 1 : vector<64x4xf32>, vector<64x4xf32>, vector<64x4xf32>, vector<64x4xf32>, vector<64x4xf32>, vector<64x4xf32>, vector<64x4xf32>, vector<64x4xf32>, vector<64x4xf32> -> vector<64x36xf32>
    %c0_37 = arith.constant 0 : index
    %c0_38 = arith.constant 0 : index
    %32 = vector.load %arg2[%c0_37, %c0_38] : memref<36x32xf32, #tpu.memory_space<vmem>>, vector<36x32xf32>
    %cst_39 = arith.constant dense<0.000000e+00> : vector<64x32xf32>
    %33 = tpu.matmul %31, %32, %cst_39 {dimension_numbers = #tpu.dot_dimension_numbers<[1], [0], [0], [1], [0, 0, 1, 1], [], []>} : vector<64x36xf32>, vector<36x32xf32>, vector<64x32xf32> -> vector<64x32xf32>
    %c0_40 = arith.constant 0 : index
    %c0_41 = arith.constant 0 : index
    %34 = vector.load %arg3[%c0_40, %c0_41] : memref<1x32xf32, #tpu.memory_space<vmem>>, vector<1x32xf32>
    %35 = vector.broadcast %34 : vector<1x32xf32> to vector<64x32xf32>
    %36 = arith.addf %33, %35 : vector<64x32xf32>
    %37 = vector.shape_cast %36 : vector<64x32xf32> to vector<1x8x8x32xf32>
    %c0_42 = arith.constant 0 : index
    %c1 = arith.constant 1 : index
    %c1_43 = arith.constant 1 : index
    %c0_44 = arith.constant 0 : index
    %38 = vector.load %arg17[%c0_42, %c1, %c1_43, %c0_44] : memref<1x10x10x32xf32, #tpu.memory_space<vmem>>, vector<1x8x8x32xf32>
    tpu.vector_store %arg17[%c0_42, %c1, %c1_43, %c0_44], %37 {strides = array<i32>} : memref<1x10x10x32xf32, #tpu.memory_space<vmem>>, vector<1x8x8x32xf32>,
    %c0_45 = arith.constant 0 : index
    %c0_46 = arith.constant 0 : index
    %c0_47 = arith.constant 0 : index
    %c0_48 = arith.constant 0 : index
    %39 = vector.load %arg17[%c0_45, %c0_46, %c0_47, %c0_48] : memref<1x10x10x32xf32, #tpu.memory_space<vmem>>, vector<1x10x10x32xf32>
    %cst_49 = arith.constant 0.000000e+00 : f32
    %40 = vector.broadcast %cst_49 : f32 to vector<1x10x10x32xf32>
    %41 = arith.maximumf %39, %40 : vector<1x10x10x32xf32>
    %42 = vector.extract_strided_slice %41 {offsets = [0, 0, 0, 0], sizes = [1, 8, 8, 32], strides = [1, 1, 1, 1]} : vector<1x10x10x32xf32> to vector<1x8x8x32xf32>
    %43 = vector.shape_cast %42 : vector<1x8x8x32xf32> to vector<64x32xf32>
    %44 = vector.extract_strided_slice %41 {offsets = [0, 0, 1, 0], sizes = [1, 8, 8, 32], strides = [1, 1, 1, 1]} : vector<1x10x10x32xf32> to vector<1x8x8x32xf32>
    %45 = vector.shape_cast %44 : vector<1x8x8x32xf32> to vector<64x32xf32>
    %46 = vector.extract_strided_slice %41 {offsets = [0, 0, 2, 0], sizes = [1, 8, 8, 32], strides = [1, 1, 1, 1]} : vector<1x10x10x32xf32> to vector<1x8x8x32xf32>
    %47 = vector.shape_cast %46 : vector<1x8x8x32xf32> to vector<64x32xf32>
    %48 = vector.extract_strided_slice %41 {offsets = [0, 1, 0, 0], sizes = [1, 8, 8, 32], strides = [1, 1, 1, 1]} : vector<1x10x10x32xf32> to vector<1x8x8x32xf32>
    %49 = vector.shape_cast %48 : vector<1x8x8x32xf32> to vector<64x32xf32>
    %50 = vector.extract_strided_slice %41 {offsets = [0, 1, 1, 0], sizes = [1, 8, 8, 32], strides = [1, 1, 1, 1]} : vector<1x10x10x32xf32> to vector<1x8x8x32xf32>
    %51 = vector.shape_cast %50 : vector<1x8x8x32xf32> to vector<64x32xf32>
    %52 = vector.extract_strided_slice %41 {offsets = [0, 1, 2, 0], sizes = [1, 8, 8, 32], strides = [1, 1, 1, 1]} : vector<1x10x10x32xf32> to vector<1x8x8x32xf32>
    %53 = vector.shape_cast %52 : vector<1x8x8x32xf32> to vector<64x32xf32>
    %54 = vector.extract_strided_slice %41 {offsets = [0, 2, 0, 0], sizes = [1, 8, 8, 32], strides = [1, 1, 1, 1]} : vector<1x10x10x32xf32> to vector<1x8x8x32xf32>
    %55 = vector.shape_cast %54 : vector<1x8x8x32xf32> to vector<64x32xf32>
    %56 = vector.extract_strided_slice %41 {offsets = [0, 2, 1, 0], sizes = [1, 8, 8, 32], strides = [1, 1, 1, 1]} : vector<1x10x10x32xf32> to vector<1x8x8x32xf32>
    %57 = vector.shape_cast %56 : vector<1x8x8x32xf32> to vector<64x32xf32>
    %58 = vector.extract_strided_slice %41 {offsets = [0, 2, 2, 0], sizes = [1, 8, 8, 32], strides = [1, 1, 1, 1]} : vector<1x10x10x32xf32> to vector<1x8x8x32xf32>
    %59 = vector.shape_cast %58 : vector<1x8x8x32xf32> to vector<64x32xf32>
    %60 = tpu.concatenate %43, %45, %47, %49, %51, %53, %55, %57, %59 in 1 : vector<64x32xf32>, vector<64x32xf32>, vector<64x32xf32>, vector<64x32xf32>, vector<64x32xf32>, vector<64x32xf32>, vector<64x32xf32>, vector<64x32xf32>, vector<64x32xf32> -> vector<64x288xf32>
    %c0_50 = arith.constant 0 : index
    %c0_51 = arith.constant 0 : index
    %61 = vector.load %arg4[%c0_50, %c0_51] : memref<288x8xf32, #tpu.memory_space<vmem>>, vector<288x8xf32>
    %cst_52 = arith.constant dense<0.000000e+00> : vector<64x8xf32>
    %62 = tpu.matmul %60, %61, %cst_52 {dimension_numbers = #tpu.dot_dimension_numbers<[1], [0], [0], [1], [0, 0, 1, 1], [], []>} : vector<64x288xf32>, vector<288x8xf32>, vector<64x8xf32> -> vector<64x8xf32>
    %c0_53 = arith.constant 0 : index
    %c0_54 = arith.constant 0 : index
    %63 = vector.load %arg5[%c0_53, %c0_54] : memref<1x8xf32, #tpu.memory_space<vmem>>, vector<1x8xf32>
    %64 = vector.broadcast %63 : vector<1x8xf32> to vector<64x8xf32>
    %65 = arith.addf %62, %64 : vector<64x8xf32>
    %cst_55 = arith.constant 0.000000e+00 : f32
    %66 = vector.broadcast %cst_55 : f32 to vector<64x8xf32>
    %67 = arith.maximumf %65, %66 : vector<64x8xf32>
    %c0_56 = arith.constant 0 : index
    %c0_57 = arith.constant 0 : index
    %68 = vector.load %arg6[%c0_56, %c0_57] : memref<8x32xf32, #tpu.memory_space<vmem>>, vector<8x32xf32>
    %cst_58 = arith.constant dense<0.000000e+00> : vector<64x32xf32>
    %69 = tpu.matmul %67, %68, %cst_58 {dimension_numbers = #tpu.dot_dimension_numbers<[1], [0], [0], [1], [0, 0, 1, 1], [], []>} : vector<64x8xf32>, vector<8x32xf32>, vector<64x32xf32> -> vector<64x32xf32>
    %c0_59 = arith.constant 0 : index
    %c0_60 = arith.constant 0 : index
    %70 = vector.load %arg7[%c0_59, %c0_60] : memref<1x32xf32, #tpu.memory_space<vmem>>, vector<1x32xf32>
    %71 = vector.broadcast %70 : vector<1x32xf32> to vector<64x32xf32>
    %72 = arith.addf %69, %71 : vector<64x32xf32>
    %73 = vector.extract_strided_slice %39 {offsets = [0, 1, 1, 0], sizes = [1, 8, 8, 32], strides = [1, 1, 1, 1]} : vector<1x10x10x32xf32> to vector<1x8x8x32xf32>
    %74 = vector.shape_cast %72 : vector<64x32xf32> to vector<1x8x8x32xf32>
    %75 = arith.addf %73, %74 : vector<1x8x8x32xf32>
    %c0_61 = arith.constant 0 : index
    %c1_62 = arith.constant 1 : index
    %c1_63 = arith.constant 1 : index
    %c0_64 = arith.constant 0 : index
    %76 = vector.load %arg17[%c0_61, %c1_62, %c1_63, %c0_64] : memref<1x10x10x32xf32, #tpu.memory_space<vmem>>, vector<1x8x8x32xf32>
    tpu.vector_store %arg17[%c0_61, %c1_62, %c1_63, %c0_64], %75 {strides = array<i32>} : memref<1x10x10x32xf32, #tpu.memory_space<vmem>>, vector<1x8x8x32xf32>,
    %c0_65 = arith.constant 0 : index
    %c0_66 = arith.constant 0 : index
    %c0_67 = arith.constant 0 : index
    %c0_68 = arith.constant 0 : index
    %77 = vector.load %arg17[%c0_65, %c0_66, %c0_67, %c0_68] : memref<1x10x10x32xf32, #tpu.memory_space<vmem>>, vector<1x10x10x32xf32>
    %cst_69 = arith.constant 0.000000e+00 : f32
    %78 = vector.broadcast %cst_69 : f32 to vector<1x10x10x32xf32>
    %79 = arith.maximumf %77, %78 : vector<1x10x10x32xf32>
    %80 = vector.extract_strided_slice %79 {offsets = [0, 0, 0, 0], sizes = [1, 8, 8, 32], strides = [1, 1, 1, 1]} : vector<1x10x10x32xf32> to vector<1x8x8x32xf32>
    %81 = vector.shape_cast %80 : vector<1x8x8x32xf32> to vector<64x32xf32>
    %82 = vector.extract_strided_slice %79 {offsets = [0, 0, 1, 0], sizes = [1, 8, 8, 32], strides = [1, 1, 1, 1]} : vector<1x10x10x32xf32> to vector<1x8x8x32xf32>
    %83 = vector.shape_cast %82 : vector<1x8x8x32xf32> to vector<64x32xf32>
    %84 = vector.extract_strided_slice %79 {offsets = [0, 0, 2, 0], sizes = [1, 8, 8, 32], strides = [1, 1, 1, 1]} : vector<1x10x10x32xf32> to vector<1x8x8x32xf32>
    %85 = vector.shape_cast %84 : vector<1x8x8x32xf32> to vector<64x32xf32>
    %86 = vector.extract_strided_slice %79 {offsets = [0, 1, 0, 0], sizes = [1, 8, 8, 32], strides = [1, 1, 1, 1]} : vector<1x10x10x32xf32> to vector<1x8x8x32xf32>
    %87 = vector.shape_cast %86 : vector<1x8x8x32xf32> to vector<64x32xf32>
    %88 = vector.extract_strided_slice %79 {offsets = [0, 1, 1, 0], sizes = [1, 8, 8, 32], strides = [1, 1, 1, 1]} : vector<1x10x10x32xf32> to vector<1x8x8x32xf32>
    %89 = vector.shape_cast %88 : vector<1x8x8x32xf32> to vector<64x32xf32>
    %90 = vector.extract_strided_slice %79 {offsets = [0, 1, 2, 0], sizes = [1, 8, 8, 32], strides = [1, 1, 1, 1]} : vector<1x10x10x32xf32> to vector<1x8x8x32xf32>
    %91 = vector.shape_cast %90 : vector<1x8x8x32xf32> to vector<64x32xf32>
    %92 = vector.extract_strided_slice %79 {offsets = [0, 2, 0, 0], sizes = [1, 8, 8, 32], strides = [1, 1, 1, 1]} : vector<1x10x10x32xf32> to vector<1x8x8x32xf32>
    %93 = vector.shape_cast %92 : vector<1x8x8x32xf32> to vector<64x32xf32>
    %94 = vector.extract_strided_slice %79 {offsets = [0, 2, 1, 0], sizes = [1, 8, 8, 32], strides = [1, 1, 1, 1]} : vector<1x10x10x32xf32> to vector<1x8x8x32xf32>
    %95 = vector.shape_cast %94 : vector<1x8x8x32xf32> to vector<64x32xf32>
    %96 = vector.extract_strided_slice %79 {offsets = [0, 2, 2, 0], sizes = [1, 8, 8, 32], strides = [1, 1, 1, 1]} : vector<1x10x10x32xf32> to vector<1x8x8x32xf32>
    %97 = vector.shape_cast %96 : vector<1x8x8x32xf32> to vector<64x32xf32>
    %98 = tpu.concatenate %81, %83, %85, %87, %89, %91, %93, %95, %97 in 1 : vector<64x32xf32>, vector<64x32xf32>, vector<64x32xf32>, vector<64x32xf32>, vector<64x32xf32>, vector<64x32xf32>, vector<64x32xf32>, vector<64x32xf32>, vector<64x32xf32> -> vector<64x288xf32>
    %c0_70 = arith.constant 0 : index
    %c0_71 = arith.constant 0 : index
    %99 = vector.load %arg8[%c0_70, %c0_71] : memref<288x8xf32, #tpu.memory_space<vmem>>, vector<288x8xf32>
    %cst_72 = arith.constant dense<0.000000e+00> : vector<64x8xf32>
    %100 = tpu.matmul %98, %99, %cst_72 {dimension_numbers = #tpu.dot_dimension_numbers<[1], [0], [0], [1], [0, 0, 1, 1], [], []>} : vector<64x288xf32>, vector<288x8xf32>, vector<64x8xf32> -> vector<64x8xf32>
    %c0_73 = arith.constant 0 : index
    %c0_74 = arith.constant 0 : index
    %101 = vector.load %arg9[%c0_73, %c0_74] : memref<1x8xf32, #tpu.memory_space<vmem>>, vector<1x8xf32>
    %102 = vector.broadcast %101 : vector<1x8xf32> to vector<64x8xf32>
    %103 = arith.addf %100, %102 : vector<64x8xf32>
    %cst_75 = arith.constant 0.000000e+00 : f32
    %104 = vector.broadcast %cst_75 : f32 to vector<64x8xf32>
    %105 = arith.maximumf %103, %104 : vector<64x8xf32>
    %c0_76 = arith.constant 0 : index
    %c0_77 = arith.constant 0 : index
    %106 = vector.load %arg10[%c0_76, %c0_77] : memref<8x32xf32, #tpu.memory_space<vmem>>, vector<8x32xf32>
    %cst_78 = arith.constant dense<0.000000e+00> : vector<64x32xf32>
    %107 = tpu.matmul %105, %106, %cst_78 {dimension_numbers = #tpu.dot_dimension_numbers<[1], [0], [0], [1], [0, 0, 1, 1], [], []>} : vector<64x8xf32>, vector<8x32xf32>, vector<64x32xf32> -> vector<64x32xf32>
    %c0_79 = arith.constant 0 : index
    %c0_80 = arith.constant 0 : index
    %108 = vector.load %arg11[%c0_79, %c0_80] : memref<1x32xf32, #tpu.memory_space<vmem>>, vector<1x32xf32>
    %109 = vector.broadcast %108 : vector<1x32xf32> to vector<64x32xf32>
    %110 = arith.addf %107, %109 : vector<64x32xf32>
    %111 = vector.extract_strided_slice %77 {offsets = [0, 1, 1, 0], sizes = [1, 8, 8, 32], strides = [1, 1, 1, 1]} : vector<1x10x10x32xf32> to vector<1x8x8x32xf32>
    %112 = vector.shape_cast %110 : vector<64x32xf32> to vector<1x8x8x32xf32>
    %113 = arith.addf %111, %112 : vector<1x8x8x32xf32>
    %c0_81 = arith.constant 0 : index
    %c1_82 = arith.constant 1 : index
    %c1_83 = arith.constant 1 : index
    %c0_84 = arith.constant 0 : index
    %114 = vector.load %arg17[%c0_81, %c1_82, %c1_83, %c0_84] : memref<1x10x10x32xf32, #tpu.memory_space<vmem>>, vector<1x8x8x32xf32>
    tpu.vector_store %arg17[%c0_81, %c1_82, %c1_83, %c0_84], %113 {strides = array<i32>} : memref<1x10x10x32xf32, #tpu.memory_space<vmem>>, vector<1x8x8x32xf32>,
    %c0_85 = arith.constant 0 : index
    %c0_86 = arith.constant 0 : index
    %c0_87 = arith.constant 0 : index
    %c0_88 = arith.constant 0 : index
    %115 = vector.load %arg17[%c0_85, %c0_86, %c0_87, %c0_88] : memref<1x10x10x32xf32, #tpu.memory_space<vmem>>, vector<1x10x10x32xf32>
    %cst_89 = arith.constant 0.000000e+00 : f32
    %116 = vector.broadcast %cst_89 : f32 to vector<1x10x10x32xf32>
    %117 = arith.maximumf %115, %116 : vector<1x10x10x32xf32>
    %118 = vector.extract_strided_slice %117 {offsets = [0, 0, 0, 0], sizes = [1, 8, 8, 32], strides = [1, 1, 1, 1]} : vector<1x10x10x32xf32> to vector<1x8x8x32xf32>
    %119 = vector.shape_cast %118 : vector<1x8x8x32xf32> to vector<64x32xf32>
    %120 = vector.extract_strided_slice %117 {offsets = [0, 0, 1, 0], sizes = [1, 8, 8, 32], strides = [1, 1, 1, 1]} : vector<1x10x10x32xf32> to vector<1x8x8x32xf32>
    %121 = vector.shape_cast %120 : vector<1x8x8x32xf32> to vector<64x32xf32>
    %122 = vector.extract_strided_slice %117 {offsets = [0, 0, 2, 0], sizes = [1, 8, 8, 32], strides = [1, 1, 1, 1]} : vector<1x10x10x32xf32> to vector<1x8x8x32xf32>
    %123 = vector.shape_cast %122 : vector<1x8x8x32xf32> to vector<64x32xf32>
    %124 = vector.extract_strided_slice %117 {offsets = [0, 1, 0, 0], sizes = [1, 8, 8, 32], strides = [1, 1, 1, 1]} : vector<1x10x10x32xf32> to vector<1x8x8x32xf32>
    %125 = vector.shape_cast %124 : vector<1x8x8x32xf32> to vector<64x32xf32>
    %126 = vector.extract_strided_slice %117 {offsets = [0, 1, 1, 0], sizes = [1, 8, 8, 32], strides = [1, 1, 1, 1]} : vector<1x10x10x32xf32> to vector<1x8x8x32xf32>
    %127 = vector.shape_cast %126 : vector<1x8x8x32xf32> to vector<64x32xf32>
    %128 = vector.extract_strided_slice %117 {offsets = [0, 1, 2, 0], sizes = [1, 8, 8, 32], strides = [1, 1, 1, 1]} : vector<1x10x10x32xf32> to vector<1x8x8x32xf32>
    %129 = vector.shape_cast %128 : vector<1x8x8x32xf32> to vector<64x32xf32>
    %130 = vector.extract_strided_slice %117 {offsets = [0, 2, 0, 0], sizes = [1, 8, 8, 32], strides = [1, 1, 1, 1]} : vector<1x10x10x32xf32> to vector<1x8x8x32xf32>
    %131 = vector.shape_cast %130 : vector<1x8x8x32xf32> to vector<64x32xf32>
    %132 = vector.extract_strided_slice %117 {offsets = [0, 2, 1, 0], sizes = [1, 8, 8, 32], strides = [1, 1, 1, 1]} : vector<1x10x10x32xf32> to vector<1x8x8x32xf32>
    %133 = vector.shape_cast %132 : vector<1x8x8x32xf32> to vector<64x32xf32>
    %134 = vector.extract_strided_slice %117 {offsets = [0, 2, 2, 0], sizes = [1, 8, 8, 32], strides = [1, 1, 1, 1]} : vector<1x10x10x32xf32> to vector<1x8x8x32xf32>
    %135 = vector.shape_cast %134 : vector<1x8x8x32xf32> to vector<64x32xf32>
    %136 = tpu.concatenate %119, %121, %123, %125, %127, %129, %131, %133, %135 in 1 : vector<64x32xf32>, vector<64x32xf32>, vector<64x32xf32>, vector<64x32xf32>, vector<64x32xf32>, vector<64x32xf32>, vector<64x32xf32>, vector<64x32xf32>, vector<64x32xf32> -> vector<64x288xf32>
    %c0_90 = arith.constant 0 : index
    %c0_91 = arith.constant 0 : index
    %137 = vector.load %arg12[%c0_90, %c0_91] : memref<288x64xf32, #tpu.memory_space<vmem>>, vector<288x64xf32>
    %cst_92 = arith.constant dense<0.000000e+00> : vector<64x64xf32>
    %138 = tpu.matmul %136, %137, %cst_92 {dimension_numbers = #tpu.dot_dimension_numbers<[1], [0], [0], [1], [0, 0, 1, 1], [], []>} : vector<64x288xf32>, vector<288x64xf32>, vector<64x64xf32> -> vector<64x64xf32>
    %c0_93 = arith.constant 0 : index
    %c0_94 = arith.constant 0 : index
    %139 = vector.load %arg13[%c0_93, %c0_94] : memref<1x64xf32, #tpu.memory_space<vmem>>, vector<1x64xf32>
    %140 = vector.broadcast %139 : vector<1x64xf32> to vector<64x64xf32>
    %141 = arith.addf %138, %140 : vector<64x64xf32>
    %cst_95 = arith.constant 0.000000e+00 : f32
    %142 = vector.broadcast %cst_95 : f32 to vector<64x64xf32>
    %143 = arith.maximumf %141, %142 : vector<64x64xf32>
    %144 = vector.shape_cast %143 : vector<64x64xf32> to vector<1x8x8x64xf32>
    %c0_96 = arith.constant 0 : index
    %c1_97 = arith.constant 1 : index
    %c1_98 = arith.constant 1 : index
    %c0_99 = arith.constant 0 : index
    %145 = vector.load %arg18[%c0_96, %c1_97, %c1_98, %c0_99] : memref<1x10x10x64xf32, #tpu.memory_space<vmem>>, vector<1x8x8x64xf32>
    tpu.vector_store %arg18[%c0_96, %c1_97, %c1_98, %c0_99], %144 {strides = array<i32>} : memref<1x10x10x64xf32, #tpu.memory_space<vmem>>, vector<1x8x8x64xf32>,
    %c0_100 = arith.constant 0 : index
    %c0_101 = arith.constant 0 : index
    %c0_102 = arith.constant 0 : index
    %c0_103 = arith.constant 0 : index
    %146 = vector.load %arg18[%c0_100, %c0_101, %c0_102, %c0_103] : memref<1x10x10x64xf32, #tpu.memory_space<vmem>>, vector<1x10x10x64xf32>
    %147 = vector.extract_strided_slice %146 {offsets = [0, 0, 0, 48], sizes = [1, 8, 8, 16], strides = [1, 1, 1, 1]} : vector<1x10x10x64xf32> to vector<1x8x8x16xf32>
    %148 = vector.shape_cast %147 : vector<1x8x8x16xf32> to vector<64x16xf32>
    %149 = vector.extract_strided_slice %146 {offsets = [0, 0, 1, 32], sizes = [1, 8, 8, 16], strides = [1, 1, 1, 1]} : vector<1x10x10x64xf32> to vector<1x8x8x16xf32>
    %150 = vector.shape_cast %149 : vector<1x8x8x16xf32> to vector<64x16xf32>
    %151 = vector.extract_strided_slice %146 {offsets = [0, 0, 1, 48], sizes = [1, 8, 8, 16], strides = [1, 1, 1, 1]} : vector<1x10x10x64xf32> to vector<1x8x8x16xf32>
    %152 = vector.shape_cast %151 : vector<1x8x8x16xf32> to vector<64x16xf32>
    %153 = vector.extract_strided_slice %146 {offsets = [0, 0, 2, 32], sizes = [1, 8, 8, 16], strides = [1, 1, 1, 1]} : vector<1x10x10x64xf32> to vector<1x8x8x16xf32>
    %154 = vector.shape_cast %153 : vector<1x8x8x16xf32> to vector<64x16xf32>
    %155 = vector.extract_strided_slice %146 {offsets = [0, 1, 0, 16], sizes = [1, 8, 8, 16], strides = [1, 1, 1, 1]} : vector<1x10x10x64xf32> to vector<1x8x8x16xf32>
    %156 = vector.shape_cast %155 : vector<1x8x8x16xf32> to vector<64x16xf32>
    %157 = vector.extract_strided_slice %146 {offsets = [0, 1, 1, 0], sizes = [1, 8, 8, 16], strides = [1, 1, 1, 1]} : vector<1x10x10x64xf32> to vector<1x8x8x16xf32>
    %158 = vector.shape_cast %157 : vector<1x8x8x16xf32> to vector<64x16xf32>
    %159 = vector.extract_strided_slice %146 {offsets = [0, 1, 1, 16], sizes = [1, 8, 8, 16], strides = [1, 1, 1, 1]} : vector<1x10x10x64xf32> to vector<1x8x8x16xf32>
    %160 = vector.shape_cast %159 : vector<1x8x8x16xf32> to vector<64x16xf32>
    %161 = vector.extract_strided_slice %146 {offsets = [0, 1, 2, 0], sizes = [1, 8, 8, 16], strides = [1, 1, 1, 1]} : vector<1x10x10x64xf32> to vector<1x8x8x16xf32>
    %162 = vector.shape_cast %161 : vector<1x8x8x16xf32> to vector<64x16xf32>
    %163 = vector.extract_strided_slice %146 {offsets = [0, 1, 0, 48], sizes = [1, 8, 8, 16], strides = [1, 1, 1, 1]} : vector<1x10x10x64xf32> to vector<1x8x8x16xf32>
    %164 = vector.shape_cast %163 : vector<1x8x8x16xf32> to vector<64x16xf32>
    %165 = vector.extract_strided_slice %146 {offsets = [0, 1, 1, 32], sizes = [1, 8, 8, 16], strides = [1, 1, 1, 1]} : vector<1x10x10x64xf32> to vector<1x8x8x16xf32>
    %166 = vector.shape_cast %165 : vector<1x8x8x16xf32> to vector<64x16xf32>
    %167 = vector.extract_strided_slice %146 {offsets = [0, 1, 1, 48], sizes = [1, 8, 8, 16], strides = [1, 1, 1, 1]} : vector<1x10x10x64xf32> to vector<1x8x8x16xf32>
    %168 = vector.shape_cast %167 : vector<1x8x8x16xf32> to vector<64x16xf32>
    %169 = vector.extract_strided_slice %146 {offsets = [0, 1, 2, 32], sizes = [1, 8, 8, 16], strides = [1, 1, 1, 1]} : vector<1x10x10x64xf32> to vector<1x8x8x16xf32>
    %170 = vector.shape_cast %169 : vector<1x8x8x16xf32> to vector<64x16xf32>
    %171 = vector.extract_strided_slice %146 {offsets = [0, 2, 0, 16], sizes = [1, 8, 8, 16], strides = [1, 1, 1, 1]} : vector<1x10x10x64xf32> to vector<1x8x8x16xf32>
    %172 = vector.shape_cast %171 : vector<1x8x8x16xf32> to vector<64x16xf32>
    %173 = vector.extract_strided_slice %146 {offsets = [0, 2, 1, 0], sizes = [1, 8, 8, 16], strides = [1, 1, 1, 1]} : vector<1x10x10x64xf32> to vector<1x8x8x16xf32>
    %174 = vector.shape_cast %173 : vector<1x8x8x16xf32> to vector<64x16xf32>
    %175 = vector.extract_strided_slice %146 {offsets = [0, 2, 1, 16], sizes = [1, 8, 8, 16], strides = [1, 1, 1, 1]} : vector<1x10x10x64xf32> to vector<1x8x8x16xf32>
    %176 = vector.shape_cast %175 : vector<1x8x8x16xf32> to vector<64x16xf32>
    %177 = vector.extract_strided_slice %146 {offsets = [0, 2, 2, 0], sizes = [1, 8, 8, 16], strides = [1, 1, 1, 1]} : vector<1x10x10x64xf32> to vector<1x8x8x16xf32>
    %178 = vector.shape_cast %177 : vector<1x8x8x16xf32> to vector<64x16xf32>
    %179 = tpu.concatenate %148, %150, %152, %154, %156, %158, %160, %162, %164, %166, %168, %170, %172, %174, %176, %178 in 1 : vector<64x16xf32>, vector<64x16xf32>, vector<64x16xf32>, vector<64x16xf32>, vector<64x16xf32>, vector<64x16xf32>, vector<64x16xf32>, vector<64x16xf32>, vector<64x16xf32>, vector<64x16xf32>, vector<64x16xf32>, vector<64x16xf32>, vector<64x16xf32>, vector<64x16xf32>, vector<64x16xf32>, vector<64x16xf32> -> vector<64x256xf32>
    %c0_104 = arith.constant 0 : index
    %c0_105 = arith.constant 0 : index
    %180 = vector.load %arg14[%c0_104, %c0_105] : memref<256x48xf32, #tpu.memory_space<vmem>>, vector<256x48xf32>
    %cst_106 = arith.constant dense<0.000000e+00> : vector<64x48xf32>
    %181 = tpu.matmul %179, %180, %cst_106 {dimension_numbers = #tpu.dot_dimension_numbers<[1], [0], [0], [1], [0, 0, 1, 1], [], []>} : vector<64x256xf32>, vector<256x48xf32>, vector<64x48xf32> -> vector<64x48xf32>
    %c0_107 = arith.constant 0 : index
    %c0_108 = arith.constant 0 : index
    %182 = vector.load %arg15[%c0_107, %c0_108] : memref<1x48xf32, #tpu.memory_space<vmem>>, vector<1x48xf32>
    %183 = vector.broadcast %182 : vector<1x48xf32> to vector<64x48xf32>
    %184 = arith.addf %181, %183 : vector<64x48xf32>
    %185 = vector.shape_cast %184 : vector<64x48xf32> to vector<1x64x48xf32>
    %c0_109 = arith.constant 0 : index
    %c0_110 = arith.constant 0 : index
    %c0_111 = arith.constant 0 : index
    %186 = vector.load %arg16[%c0_109, %c0_110, %c0_111] : memref<1x64x48xf32, #tpu.memory_space<vmem>>, vector<1x64x48xf32>
    tpu.vector_store %arg16[%c0_109, %c0_110, %c0_111], %185 {strides = array<i32>} : memref<1x64x48xf32, #tpu.memory_space<vmem>>, vector<1x64x48xf32>,
    return
  }
  func.func @transform_0(%arg0: i32) -> (i32, i32, i32, i32) {
    %c0_i32 = arith.constant 0 : i32
    %c0_i32_0 = arith.constant 0 : i32
    %c0_i32_1 = arith.constant 0 : i32
    %c0_i32_2 = arith.constant 0 : i32
    return %arg0, %c0_i32, %c0_i32_0, %c0_i32_1 : i32, i32, i32, i32
  }
  func.func @transform_1(%arg0: i32) -> (i32, i32) {
    %c0_i32 = arith.constant 0 : i32
    %c0_i32_0 = arith.constant 0 : i32
    %c0_i32_1 = arith.constant 0 : i32
    return %c0_i32, %c0_i32_0 : i32, i32
  }
  func.func @transform_2(%arg0: i32) -> (i32, i32) {
    %c0_i32 = arith.constant 0 : i32
    %c0_i32_0 = arith.constant 0 : i32
    %c0_i32_1 = arith.constant 0 : i32
    return %c0_i32, %c0_i32_0 : i32, i32
  }
  func.func @transform_3(%arg0: i32) -> (i32, i32) {
    %c0_i32 = arith.constant 0 : i32
    %c0_i32_0 = arith.constant 0 : i32
    %c0_i32_1 = arith.constant 0 : i32
    return %c0_i32, %c0_i32_0 : i32, i32
  }
  func.func @transform_4(%arg0: i32) -> (i32, i32) {
    %c0_i32 = arith.constant 0 : i32
    %c0_i32_0 = arith.constant 0 : i32
    %c0_i32_1 = arith.constant 0 : i32
    return %c0_i32, %c0_i32_0 : i32, i32
  }
  func.func @transform_5(%arg0: i32) -> (i32, i32) {
    %c0_i32 = arith.constant 0 : i32
    %c0_i32_0 = arith.constant 0 : i32
    %c0_i32_1 = arith.constant 0 : i32
    return %c0_i32, %c0_i32_0 : i32, i32
  }
  func.func @transform_6(%arg0: i32) -> (i32, i32) {
    %c0_i32 = arith.constant 0 : i32
    %c0_i32_0 = arith.constant 0 : i32
    %c0_i32_1 = arith.constant 0 : i32
    return %c0_i32, %c0_i32_0 : i32, i32
  }
  func.func @transform_7(%arg0: i32) -> (i32, i32) {
    %c0_i32 = arith.constant 0 : i32
    %c0_i32_0 = arith.constant 0 : i32
    %c0_i32_1 = arith.constant 0 : i32
    return %c0_i32, %c0_i32_0 : i32, i32
  }
  func.func @transform_8(%arg0: i32) -> (i32, i32) {
    %c0_i32 = arith.constant 0 : i32
    %c0_i32_0 = arith.constant 0 : i32
    %c0_i32_1 = arith.constant 0 : i32
    return %c0_i32, %c0_i32_0 : i32, i32
  }
  func.func @transform_9(%arg0: i32) -> (i32, i32) {
    %c0_i32 = arith.constant 0 : i32
    %c0_i32_0 = arith.constant 0 : i32
    %c0_i32_1 = arith.constant 0 : i32
    return %c0_i32, %c0_i32_0 : i32, i32
  }
  func.func @transform_10(%arg0: i32) -> (i32, i32) {
    %c0_i32 = arith.constant 0 : i32
    %c0_i32_0 = arith.constant 0 : i32
    %c0_i32_1 = arith.constant 0 : i32
    return %c0_i32, %c0_i32_0 : i32, i32
  }
  func.func @transform_11(%arg0: i32) -> (i32, i32) {
    %c0_i32 = arith.constant 0 : i32
    %c0_i32_0 = arith.constant 0 : i32
    %c0_i32_1 = arith.constant 0 : i32
    return %c0_i32, %c0_i32_0 : i32, i32
  }
  func.func @transform_12(%arg0: i32) -> (i32, i32) {
    %c0_i32 = arith.constant 0 : i32
    %c0_i32_0 = arith.constant 0 : i32
    %c0_i32_1 = arith.constant 0 : i32
    return %c0_i32, %c0_i32_0 : i32, i32
  }
  func.func @transform_13(%arg0: i32) -> (i32, i32) {
    %c0_i32 = arith.constant 0 : i32
    %c0_i32_0 = arith.constant 0 : i32
    %c0_i32_1 = arith.constant 0 : i32
    return %c0_i32, %c0_i32_0 : i32, i32
  }
  func.func @transform_14(%arg0: i32) -> (i32, i32) {
    %c0_i32 = arith.constant 0 : i32
    %c0_i32_0 = arith.constant 0 : i32
    %c0_i32_1 = arith.constant 0 : i32
    return %c0_i32, %c0_i32_0 : i32, i32
  }
  func.func @transform_15(%arg0: i32) -> (i32, i32, i32) {
    %c0_i32 = arith.constant 0 : i32
    %c0_i32_0 = arith.constant 0 : i32
    %c0_i32_1 = arith.constant 0 : i32
    return %arg0, %c0_i32, %c0_i32_0 : i32, i32, i32
  }
}

</mosaic_0001>

<bundles_post_ra>
// kernel: decoder_forward.1
= control target key start
LH: loop header
LB: loop body
LE: loop exit
PB: predicated region body
PF: predicated region fallthrough
CT: control target
= control target key end

     0   :  { %s4867_s18 = smov 0   ;;  %s6652_s0 = inlined_call_operand.vmem [shape: f32[2,10,10,4], index: 0, kind: input, shape index: {}]   ;;  %s6653_s1 = inlined_call_operand.vmem [shape: f32[36,32], index: 1, kind: input, shape index: {}]   ;;  %s6654_s2 = inlined_call_operand.vmem [shape: f32[1,32], index: 2, kind: input, shape index: {}]   ;;  %s6655_s3 = inlined_call_operand.vmem [shape: f32[288,8], index: 3, kind: input, shape index: {}]   ;;  %s6656_s4 = inlined_call_operand.vmem [shape: f32[1,8], index: 4, kind: input, shape index: {}]   ;;  %s6657_s5 = inlined_call_operand.vmem [shape: f32[8,32], index: 5, kind: input, shape index: {}]   ;;  %s6658_s6 = inlined_call_operand.vmem [shape: f32[1,32], index: 6, kind: input, shape index: {}]   ;;  %s6659_s7 = inlined_call_operand.vmem [shape: f32[288,8], index: 7, kind: input, shape index: {}]   ;;  %s6660_s8 = inlined_call_operand.vmem [shape: f32[1,8], index: 8, kind: input, shape index: {}]   ;;  %s6661_s9 = inlined_call_operand.vmem [shape: f32[8,32], index: 9, kind: input, shape index: {}]   ;;  %s6662_s10 = inlined_call_operand.vmem [shape: f32[1,32], index: 10, kind: input, shape index: {}]   ;;  %s6663_s11 = inlined_call_operand.vmem [shape: f32[288,64], index: 11, kind: input, shape index: {}]   ;;  %s6664_s12 = inlined_call_operand.vmem [shape: f32[1,64], index: 12, kind: input, shape index: {}]   ;;  %s6665_s13 = inlined_call_operand.vmem [shape: f32[256,48], index: 13, kind: input, shape index: {}]   ;;  %s6666_s14 = inlined_call_operand.vmem [shape: f32[1,48], index: 14, kind: input, shape index: {}]   ;;  %s6667_s15 = inlined_call_operand.vmem [shape: f32[2,64,48], index: 15, kind: output, shape index: {}]  }
   0x1 LB: > { %s3794_s19 = sadd.s32 4294967295, %s4771_s18   ;;  %p3798_p0 = scmp.ge.s32.totalorder %s4771_s18, 1  ;;  %s4771_s18 = sphi %s4867_s18, %s25_s18  }
   0x2   : > { %p437_p1 = scmp.lt.s32.totalorder %s4771_s18, 3 }
   0x4   : > { %p438_p2 = pnand %p3798_p0, %p437_p1 }
   0x5   : > { %p485_p3 = scmp.lt.s32.totalorder (!%p438_p2), %s3794_s19, 1  ;;  %s4773_s24 = smov (!%p438_p2), 12  }
   0x6   : > { %441 = sbr.rel (%p438_p2) target bundleno = 2264 (0x8d8), region = 80  ;;  %s4774_s25 = smov (!%p438_p2), 8  }
   0x7   : > { %s4775_s26 = smov (!%p438_p2), 4   ;;  %s6668_s27 = smov (!%p438_p2), 16  }
   0x8   : > { %s4777_s30 = smov (!%p438_p2), 20   ;;  %s4779_s16 = smov (!%p438_p2), 28  }
   0x9   : > { %s4780_s22 = smov (!%p438_p2), 32   ;;  %s4783_s17 = smov (!%p438_p2), 96  }
   0xa   : > { %s6670_s29 = smov (!%p438_p2), 16  }
   0xb   : > { %s6672_s19 = smov (!%p485_p3, %s3794_s19), 1  ;;  %vm612_vm0 = vcmask 1045504   ;;  %vm587_vm1 = vcmask 1046528   ;;  %v920_v24 = vld [vmem:[%s6653_s1 + $0x20] sm:$0xf]  ;;  %vm953_vm2 = vcmask 1043456  }
   0xc   : > { %s4262_s20 = smul.u32 160, %s6672_s19  ;;  %4152 = vmatprep.subr.msk.mxu1 %vm953_vm2, %v920_v24  ;;  %v919_v27 = vld [vmem:[%s6653_s1 + $0x18] sm:$0xff]  ;;  %v918_v28 = vld [vmem:[%s6653_s1 + $0x10] sm:$0xff]  ;;  %v917_v31 = vld [vmem:[%s6653_s1 + $0x8] sm:$0xff]  ;;  %vm845_vm3 = vcmask 31744   ;;  %vm854_vm4 = vcmask 64512  }
   0xd   : > { %4153 = vmatpush3.msk.msra.mxu1 %vm953_vm2, %v920_v24  ;;  %v916_v33 = vld [vmem:[%s6653_s1] sm:$0xff]  ;;  %vm863_vm5 = vcmask 97280   ;;  %vm872_vm6 = vcmask 130048   ;;  %vm881_vm7 = vcmask 162816   ;;  %vm890_vm8 = vcmask 195584  }
   0xe   : > { %s4881_s23 = scalar_lea.vmem %s6652_s0, %s4262_s20  ;;  %s4778_s20 = smov 24   ;;  %4154 = vmatprep.subr.mxu1 %v919_v27  ;;  %vm899_vm9 = vcmask 228352   ;;  %vm495_vm10 = vcmask 261120   ;;  %vm928_vm11 = vcmask 293888   ;;  %vm497_vm12 = vcmask 254976  }
   0xf   : > { %v4884_v0 = vld [vmem:[%s4881_s23 + $0x20] sm:$0xff]  ;;  %v4887_v1 = vld [vmem:[%s4881_s23 + $0x10] sm:$0xff]  ;;  %v552_v3 = vld [vmem:[%s4881_s23 + $0x8] sm:$0x3]  ;;  %4155 = vmatpush3.msra.mxu1 %v919_v27  ;;  %vm502_vm13 = vcmask 253952   ;;  %vm523_vm14 = vcmask 523264  }
  0x10   : > { %v4890_v2 = vld [vmem:[%s4881_s23] sm:$0xff]  ;;  %703 = vrot.lane.b32.xlu1 %v4884_v0, %s4773_s24  ;;  %701 = vrot.lane.b32.xlu0 %v4887_v1, %s4773_s24  ;;  %v554_v6 = vld [vmem:[%s4881_s23 + $0x18] sm:$0x3]  ;;  %v614_v7 = vrot.slane %v552_v3, 2  ;;  %v589_v8 = vrot.slane %v552_v3, 1  ;;  %v616_v9 = vrot.slane %v4887_v1, 2 }
  0x11   : > { %v613_v4 = vrot.slane %v4890_v2, 2  ;;  %v588_v5 = vrot.slane %v4890_v2, 1  ;;  %v617_v10 = vrot.slane %v554_v6, 2  ;;  %v591_v11 = vrot.slane %v4887_v1, 1  ;;  %v556_v13 = vld [vmem:[%s4881_s23 + $0x28] sm:$0x3]  ;;  %4156 = vmatprep.subr.mxu1 %v918_v28 }
  0x12   : > { %v592_v12 = vrot.slane %v554_v6, 1  ;;  %v594_v18 = vrot.slane %v4884_v0, 1  ;;  %v595_v19 = vrot.slane %v556_v13, 1  ;;  %v619_v21 = vrot.slane %v4884_v0, 2  ;;  %v4923_v25 = vld [vmem:[%s4881_s23 + $0x30] sm:$0xff]  ;;  %4157 = vmatpush3.msra.mxu1 %v918_v28  ;;  %v4953_v37 = vld [vmem:[%s4881_s23 + $0x40] sm:$0xff] }
  0x13   : > { %v615_v14 = vsel %vm612_vm0, %v613_v4, %v614_v7  ;;  %v590_v15 = vsel %vm587_vm1, %v588_v5, %v589_v8  ;;  %v618_v16 = vsel %vm612_vm0, %v616_v9, %v617_v10  ;;  %v620_v22 = vrot.slane %v556_v13, 2  ;;  %v558_v26 = vld [vmem:[%s4881_s23 + $0x38] sm:$0x3]  ;;  %4158 = vmatprep.subr.mxu1 %v917_v31  ;;  %v560_v38 = vld [vmem:[%s4881_s23 + $0x48] sm:$0x3]  ;;  %v4969_v45 = vld [vmem:[%s4881_s23 + $0x50] sm:$0xff] }
  0x14   : > { %677 = vrot.lane.b32.xlu1 %v615_v14, %s4774_s25  ;;  %653 = vrot.lane.b32.xlu0 %v590_v15, %s4775_s26  ;;  %v593_v17 = vsel %vm587_vm1, %v591_v11, %v592_v12  ;;  %v596_v20 = vsel %vm587_vm1, %v594_v18, %v595_v19  ;;  %v597_v29 = vrot.slane %v4923_v25, 1  ;;  %v598_v30 = vrot.slane %v558_v26, 1  ;;  %v562_v46 = vld [vmem:[%s4881_s23 + $0x58] sm:$0x3]  ;;  %v4989_v53 = vld [vmem:[%s4881_s23 + $0x60] sm:$0xff] }
  0x15   : > { %v621_v23 = vsel %vm612_vm0, %v619_v21, %v620_v22  ;;  %4159 = vmatpush3.msra.mxu1 %v917_v31  ;;  %v622_v34 = vrot.slane %v4923_v25, 2  ;;  %v623_v35 = vrot.slane %v558_v26, 2  ;;  %v600_v39 = vrot.slane %v4953_v37, 1  ;;  %v564_v54 = vld [vmem:[%s4881_s23 + $0x68] sm:$0x3]  ;;  %v5005_v61 = vld [vmem:[%s4881_s23 + $0x70] sm:$0xff] }
  0x16   : > { %v599_v32 = vsel %vm587_vm1, %v597_v29, %v598_v30  ;;  %4160 = vmatprep.subr.mxu1 %v916_v33  ;;  %v601_v40 = vrot.slane %v560_v38, 1  ;;  %v625_v42 = vrot.slane %v4953_v37, 2  ;;  %v626_v43 = vrot.slane %v560_v38, 2  ;;  %v566_v62 = vld [vmem:[%s4881_s23 + $0x78] sm:$0x3]  ;;  %v567_v8 = vld [vmem:[%s4881_s23 + $0x80] sm:$0xff] }
  0x17   : > { %4161 = vmatpush3.msra.mxu1 %v916_v33  ;;  %v624_v36 = vsel %vm612_vm0, %v622_v34, %v623_v35  ;;  %v603_v47 = vrot.slane %v4969_v45, 1  ;;  %v604_v48 = vrot.slane %v562_v46, 1  ;;  %v628_v50 = vrot.slane %v4969_v45, 2  ;;  %v568_v9 = vld [vmem:[%s4881_s23 + $0x88] sm:$0x3] }
  0x18   : > { %679 = vrot.lane.b32.xlu1 %v618_v16, %s4774_s25  ;;  %655 = vrot.lane.b32.xlu0 %v593_v17, %s4775_s26  ;;  %v602_v41 = vsel %vm587_vm1, %v600_v39, %v601_v40  ;;  %v627_v44 = vsel %vm612_vm0, %v625_v42, %v626_v43  ;;  %v629_v51 = vrot.slane %v562_v46, 2  ;;  %v606_v55 = vrot.slane %v4989_v53, 1 }
  0x19   : > { %v605_v49 = vsel %vm587_vm1, %v603_v47, %v604_v48  ;;  %v607_v56 = vrot.slane %v564_v54, 1  ;;  %v631_v58 = vrot.slane %v4989_v53, 2  ;;  %v632_v59 = vrot.slane %v564_v54, 2 }
  0x1a   : > { %v630_v52 = vsel %vm612_vm0, %v628_v50, %v629_v51  ;;  %v609_v63 = vrot.slane %v5005_v61, 1  ;;  %v610_v3 = vrot.slane %v566_v62, 1  ;;  %v634_v5 = vrot.slane %v5005_v61, 2 }
  0x1b   : > { %v608_v57 = vsel %vm587_vm1, %v606_v55, %v607_v56  ;;  %v633_v60 = vsel %vm612_vm0, %v631_v58, %v632_v59  ;;  %v635_v6 = vrot.slane %v566_v62, 2  ;;  %v639_v10 = vrot.slane %v567_v8, 1 }
  0x1c   : > { %727 = vrot.lane.b32.xlu1 %v596_v20, %s6668_s27  ;;  %725 = vrot.lane.b32.xlu0 %v593_v17, %s6668_s27  ;;  %v611_v4 = vsel %vm587_vm1, %v609_v63, %v610_v3  ;;  %v640_v11 = vrot.slane %v568_v9, 1  ;;  %v642_v13 = vrot.slane %v567_v8, 2  ;;  %v643_v14 = vrot.slane %v568_v9, 2  ;;  %v570_v17 = vld [vmem:[%s4881_s23 + $0x98] sm:$0x3] }
  0x1d   : > { %v636_v7 = vsel %vm612_vm0, %v634_v5, %v635_v6  ;;  %v648_v19 = vrot.slane %v570_v17, 1  ;;  %v651_v24 = vrot.slane %v570_v17, 2  ;;  %vm1359_vm15 = vcmask 785408  }
  0x1e   : > { %v641_v12 = vsel %vm587_vm1, %v639_v10, %v640_v11  ;;  %v644_v15 = vsel %vm612_vm0, %v642_v13, %v643_v14  ;;  %vm1846_vm2 = vcmask 261121  }
  0x20   : > { %751 = vrot.lane.b32.xlu1 %v621_v23, %s4777_s30  ;;  %749 = vrot.lane.b32.xlu0 %v618_v16, %s4777_s30  ;;  %v569_v16 = vld [vmem:[%s4881_s23 + $0x90] sm:$0xff]  ;;  %s4785_s23 = smov 80  }
  0x21   : > { %v647_v18 = vrot.slane %v569_v16, 1  ;;  %v650_v22 = vrot.slane %v569_v16, 2 }
  0x23   : > { %v652_v28 = vsel %vm612_vm0, %v650_v22, %v651_v24 }
  0x24   : > { %657 = vrot.lane.b32.xlu1 %v596_v20, %s4775_s26  ;;  %773 = vrot.lane.b32.xlu0 %v4884_v0, %s4778_s20 }
  0x28   : > { %797 = vrot.lane.b32.xlu1 %v596_v20, %s4779_s16  ;;  %775 = vrot.lane.b32.xlu0 %v4923_v25, %s4778_s20 }
  0x2c   : > { %681 = vrot.lane.b32.xlu1 %v621_v23, %s4774_s25  ;;  %659 = vrot.lane.b32.xlu0 %v599_v32, %s4775_s26 }
  0x30   : > { %821 = vrot.lane.b32.xlu1 %v621_v23, %s4780_s22  ;;  %799 = vrot.lane.b32.xlu0 %v599_v32, %s4779_s16  ;;  %v649_v23 = vsel %vm587_vm1, %v647_v18, %v648_v19 }
  0x34   : > { %705 = vrot.lane.b32.xlu1 %v4923_v25, %s4773_s24  ;;  %683 = vrot.lane.b32.xlu0 %v624_v36, %s4774_s25 }
  0x38   : > { %707 = vrot.lane.b32.xlu1 %v4953_v37, %s4773_s24  ;;  %823 = vrot.lane.b32.xlu0 %v624_v36, %s4780_s22 }
  0x3c   : > { %731 = vrot.lane.b32.xlu1 %v602_v41, %s6668_s27  ;;  %729 = vrot.lane.b32.xlu0 %v599_v32, %s6668_s27 }
  0x40   : > { %755 = vrot.lane.b32.xlu1 %v627_v44, %s4777_s30  ;;  %753 = vrot.lane.b32.xlu0 %v624_v36, %s4777_s30 }
  0x44   : > { %779 = vrot.lane.b32.xlu1 %v4969_v45, %s4778_s20  ;;  %777 = vrot.lane.b32.xlu0 %v4953_v37, %s4778_s20 }
  0x48   : > { %803 = vrot.lane.b32.xlu1 %v605_v49, %s4779_s16  ;;  %801 = vrot.lane.b32.xlu0 %v602_v41, %s4779_s16 }
  0x4c   : > { %661 = vrot.lane.b32.xlu1 %v602_v41, %s4775_s26  ;;  %825 = vrot.lane.b32.xlu0 %v627_v44, %s4780_s22 }
  0x50   : > { %663 = vrot.lane.b32.xlu1 %v605_v49, %s4775_s26  ;;  %827 = vrot.lane.b32.xlu0 %v630_v52, %s4780_s22 }
  0x54   : > { %687 = vrot.lane.b32.xlu1 %v630_v52, %s4774_s25  ;;  %685 = vrot.lane.b32.xlu0 %v627_v44, %s4774_s25 }
  0x58   : > { %711 = vrot.lane.b32.xlu1 %v4989_v53, %s4773_s24  ;;  %709 = vrot.lane.b32.xlu0 %v4969_v45, %s4773_s24 }
  0x5c   : > { %735 = vrot.lane.b32.xlu1 %v608_v57, %s6668_s27  ;;  %733 = vrot.lane.b32.xlu0 %v605_v49, %s6668_s27 }
  0x60   : > { %759 = vrot.lane.b32.xlu1 %v633_v60, %s4777_s30  ;;  %757 = vrot.lane.b32.xlu0 %v630_v52, %s4777_s30 }
  0x64   : > { %783 = vrot.lane.b32.xlu1 %v5005_v61, %s4778_s20  ;;  %781 = vrot.lane.b32.xlu0 %v4989_v53, %s4778_s20 }
  0x68   : > { %807 = vrot.lane.b32.xlu1 %v611_v4, %s4779_s16  ;;  %805 = vrot.lane.b32.xlu0 %v608_v57, %s4779_s16 }
  0x6c   : > { %665 = vrot.lane.b32.xlu1 %v608_v57, %s4775_s26  ;;  %829 = vrot.lane.b32.xlu0 %v633_v60, %s4780_s22 }
  0x70   : > { %667 = vrot.lane.b32.xlu1 %v611_v4, %s4775_s26  ;;  %831 = vrot.lane.b32.xlu0 %v636_v7, %s4780_s22 }
  0x74   : > { %691 = vrot.lane.b32.xlu1 %v636_v7, %s4774_s25  ;;  %689 = vrot.lane.b32.xlu0 %v633_v60, %s4774_s25 }
  0x78   : > { %715 = vrot.lane.b32.xlu1 %v567_v8, %s4773_s24  ;;  %713 = vrot.lane.b32.xlu0 %v5005_v61, %s4773_s24 }
  0x7c   : > { %739 = vrot.lane.b32.xlu1 %v641_v12, %s6668_s27  ;;  %737 = vrot.lane.b32.xlu0 %v611_v4, %s6668_s27 }
  0x80   : > { %763 = vrot.lane.b32.xlu1 %v644_v15, %s4777_s30  ;;  %761 = vrot.lane.b32.xlu0 %v636_v7, %s4777_s30 }
  0x82   : > { %v704_v20 = vpop.permute.xlu1 %703  ;;  %v702_v21 = vpop.permute.xlu0 %701 }
  0x84   : > { %787 = vrot.lane.b32.xlu1 %v569_v16, %s4778_s20  ;;  %785 = vrot.lane.b32.xlu0 %v567_v8, %s4778_s20 }
  0x86   : > { %v678_v26 = vpop.permute.xlu1 %677  ;;  %v654_v27 = vpop.permute.xlu0 %653 }
  0x87   : > { %v846_v38 = vsel %vm845_vm3, %v4890_v2, %v654_v27 }
  0x88   : > { %811 = vrot.lane.b32.xlu1 %v649_v23, %s4779_s16  ;;  %809 = vrot.lane.b32.xlu0 %v641_v12, %s4779_s16  ;;  %v855_v41 = vsel %vm854_vm4, %v846_v38, %v678_v26  ;;  %s4782_s16 = smov 64  }
  0x89   : > { %v864_v43 = vsel %vm863_vm5, %v855_v41, %v702_v21 }
  0x8a   : > { %v680_v29 = vpop.permute.xlu1 %679  ;;  %v656_v30 = vpop.permute.xlu0 %655 }
  0x8b   : > { %v847_v42 = vsel %vm845_vm3, %v4887_v1, %v656_v30 }
  0x8c   : > { %835 = vrot.lane.b32.xlu1 %v652_v28, %s4780_s22  ;;  %833 = vrot.lane.b32.xlu0 %v644_v15, %s4780_s22  ;;  %v856_v48 = vsel %vm854_vm4, %v847_v42, %v680_v29 }
  0x8d   : > { %v865_v54 = vsel %vm863_vm5, %v856_v48, %v704_v20 }
  0x8e   : > { %v728_v31 = vpop.permute.xlu1 %727  ;;  %v726_v32 = vpop.permute.xlu0 %725 }
  0x8f   : > { %v873_v47 = vsel %vm872_vm6, %v864_v43, %v726_v32  ;;  %v874_v57 = vsel %vm872_vm6, %v865_v54, %v728_v31 }
  0x92   : > { %v752_v33 = vpop.permute.xlu1 %751  ;;  %v750_v34 = vpop.permute.xlu0 %749 }
  0x93   : > { %v882_v2 = vsel %vm881_vm7, %v873_v47, %v750_v34  ;;  %v883_v58 = vsel %vm881_vm7, %v874_v57, %v752_v33 }
  0x96   : > { %v658_v35 = vpop.permute.xlu1 %657  ;;  %v774_v36 = vpop.permute.xlu0 %773 }
  0x97   : > { %v891_v49 = vsel %vm890_vm8, %v882_v2, %v774_v36  ;;  %v848_v10 = vsel %vm845_vm3, %v4884_v0, %v658_v35 }
  0x9a   : > { %v798_v39 = vpop.permute.xlu1 %797  ;;  %v776_v40 = vpop.permute.xlu0 %775 }
  0x9b   : > { %v900_v50 = vsel %vm899_vm9, %v891_v49, %v798_v39  ;;  %v892_v59 = vsel %vm890_vm8, %v883_v58, %v776_v40 }
  0x9e   : > { %v682_v44 = vpop.permute.xlu1 %681  ;;  %v660_v46 = vpop.permute.xlu0 %659 }
  0x9f   : > { %v857_v11 = vsel %vm854_vm4, %v848_v10, %v682_v44  ;;  %v849_v16 = vsel %vm845_vm3, %v4923_v25, %v660_v46 }
  0xa2   : > { %v822_v51 = vpop.permute.xlu1 %821  ;;  %v800_v1 = vpop.permute.xlu0 %799 }
  0xa3   : > { %v908_v52 = vsel %vm495_vm10, %v900_v50, %v822_v51  ;;  %v901_v60 = vsel %vm899_vm9, %v892_v59, %v800_v1 }
  0xa4   : > { %4162 = vmatprep.mubr.msk.f32.mxu1 %vm928_vm11, %v908_v52 }
  0xa6   : > { %v706_v55 = vpop.permute.xlu1 %705  ;;  %v684_v56 = vpop.permute.xlu0 %683 }
  0xa7   : > { %v866_v12 = vsel %vm863_vm5, %v857_v11, %v706_v55  ;;  %v858_v18 = vsel %vm854_vm4, %v849_v16, %v684_v56 }
  0xaa   : > { %v708_v62 = vpop.permute.xlu1 %707  ;;  %v824_v63 = vpop.permute.xlu0 %823 }
  0xab   : > { %v909_v3 = vsel %vm495_vm10, %v901_v60, %v824_v63  ;;  %v867_v20 = vsel %vm863_vm5, %v858_v18, %v708_v62 }
  0xac   : > { %4163 = vmatmul.mubr.msk.f32.vlgmr.msra.gmra.mxu1 %vm928_vm11, %v909_v3 }
  0xae   : > { %v732_v4 = vpop.permute.xlu1 %731  ;;  %v730_v5 = vpop.permute.xlu0 %729 }
  0xaf   : > { %v875_v15 = vsel %vm872_vm6, %v866_v12, %v730_v5  ;;  %v876_v23 = vsel %vm872_vm6, %v867_v20, %v732_v4 }
  0xb2   : > { %v756_v6 = vpop.permute.xlu1 %755  ;;  %v754_v7 = vpop.permute.xlu0 %753 }
  0xb3   : > { %v884_v17 = vsel %vm881_vm7, %v875_v15, %v754_v7  ;;  %v885_v26 = vsel %vm881_vm7, %v876_v23, %v756_v6  ;;  %v4781_v6 = vmov 0.0  }
  0xb4   : > { %496 = vst.msk [vmem:[#allocation2] sm:$0xff] %vm495_vm10, %v4781_v6  ;;  %500 = vst.msk [vmem:[#allocation2 + $0x90] sm:$0xff] %vm495_vm10, %v4781_v6 }
  0xb5   : > { %498 = vst.msk [vmem:[#allocation2 + $0x8] sm:$0x3] %vm497_vm12, %v4781_v6  ;;  %501 = vst.msk [vmem:[#allocation2 + $0x98] sm:$0x3] %vm497_vm12, %v4781_v6 }
  0xb6   : > { %v780_v8 = vpop.permute.xlu1 %779  ;;  %v778_v9 = vpop.permute.xlu0 %777  ;;  %503 = vst.msk [vmem:[#allocation2] sm:$0x1] %vm502_vm13, %v4781_v6  ;;  %505 = vst.msk [vmem:[#allocation2 + $0x20] sm:$0x1] %vm502_vm13, %v4781_v6 }
  0xb7   : > { %v893_v19 = vsel %vm890_vm8, %v884_v17, %v778_v9  ;;  %v894_v25 = vsel %vm890_vm8, %v885_v26, %v780_v8  ;;  %513 = vst.msk [vmem:[#allocation2 + $0x9] sm:$0x1] %vm502_vm13, %v4781_v6  ;;  %504 = vst.msk [vmem:[#allocation2 + $0x10] sm:$0x1] %vm502_vm13, %v4781_v6 }
  0xb8   : > { %506 = vst.msk [vmem:[#allocation2 + $0x30] sm:$0x1] %vm502_vm13, %v4781_v6  ;;  %507 = vst.msk [vmem:[#allocation2 + $0x40] sm:$0x1] %vm502_vm13, %v4781_v6 }
  0xb9   : > { %508 = vst.msk [vmem:[#allocation2 + $0x50] sm:$0x1] %vm502_vm13, %v4781_v6  ;;  %509 = vst.msk [vmem:[#allocation2 + $0x60] sm:$0x1] %vm502_vm13, %v4781_v6 }
  0xba   : > { %v804_v13 = vpop.permute.xlu1 %803  ;;  %v802_v14 = vpop.permute.xlu0 %801  ;;  %510 = vst.msk [vmem:[#allocation2 + $0x70] sm:$0x1] %vm502_vm13, %v4781_v6  ;;  %511 = vst.msk [vmem:[#allocation2 + $0x80] sm:$0x1] %vm502_vm13, %v4781_v6 }
  0xbb   : > { %v902_v0 = vsel %vm899_vm9, %v893_v19, %v802_v14  ;;  %v903_v27 = vsel %vm899_vm9, %v894_v25, %v804_v13  ;;  %514 = vst.msk [vmem:[#allocation2 + $0x19] sm:$0x1] %vm502_vm13, %v4781_v6  ;;  %515 = vst.msk [vmem:[#allocation2 + $0x29] sm:$0x1] %vm502_vm13, %v4781_v6 }
  0xbc   : > { %516 = vst.msk [vmem:[#allocation2 + $0x39] sm:$0x1] %vm502_vm13, %v4781_v6  ;;  %517 = vst.msk [vmem:[#allocation2 + $0x49] sm:$0x1] %vm502_vm13, %v4781_v6 }
  0xbd   : > { %518 = vst.msk [vmem:[#allocation2 + $0x59] sm:$0x1] %vm502_vm13, %v4781_v6  ;;  %519 = vst.msk [vmem:[#allocation2 + $0x69] sm:$0x1] %vm502_vm13, %v4781_v6 }
  0xbe   : > { %v662_v21 = vpop.permute.xlu1 %661  ;;  %v826_v22 = vpop.permute.xlu0 %825  ;;  %520 = vst.msk [vmem:[#allocation2 + $0x79] sm:$0x1] %vm502_vm13, %v4781_v6  ;;  %521 = vst.msk [vmem:[#allocation2 + $0x89] sm:$0x1] %vm502_vm13, %v4781_v6 }
  0xbf   : > { %v910_v24 = vsel %vm495_vm10, %v902_v0, %v826_v22  ;;  %v850_v42 = vsel %vm845_vm3, %v4953_v37, %v662_v21  ;;  %512 = vst.msk [vmem:[#allocation2 + $0x90] sm:$0x1] %vm502_vm13, %v4781_v6  ;;  %522 = vst.msk [vmem:[#allocation2 + $0x99] sm:$0x1] %vm502_vm13, %v4781_v6 }
  0xc0   : > { %4165 = vmatprep.mubr.msk.f32.mxu1 %vm928_vm11, %v910_v24  ;;  %524 = vst.msk [vmem:[#allocation3] sm:$0xff] %vm523_vm14, %v4781_v6  ;;  %528 = vst.msk [vmem:[#allocation3 + $0x90] sm:$0xff] %vm523_vm14, %v4781_v6 }
  0xc2   : > { %v664_v28 = vpop.permute.xlu1 %663  ;;  %v828_v29 = vpop.permute.xlu0 %827 }
  0xc3   : > { %v911_v30 = vsel %vm495_vm10, %v903_v27, %v828_v29  ;;  %v851_v48 = vsel %vm845_vm3, %v4969_v45, %v664_v28 }
  0xc4   : > { %4166 = vmatmul.mubr.msk.f32.gmra.mxu1 %vm928_vm11, %v911_v30  ;;  %v1427_v30 = vld [vmem:[%s6655_s3 + $0x118] sm:$0xff] }
  0xc5   : > { %4174 = vmatprep.subr.mxu0 %v1427_v30 }
  0xc6   : > { %v688_v31 = vpop.permute.xlu1 %687  ;;  %v686_v32 = vpop.permute.xlu0 %685  ;;  %4175 = vmatpush3.msra.mxu0 %v1427_v30 }
  0xc7   : > { %v859_v43 = vsel %vm854_vm4, %v850_v42, %v686_v32  ;;  %v860_v50 = vsel %vm854_vm4, %v851_v48, %v688_v31  ;;  %v1426_v31 = vld [vmem:[%s6655_s3 + $0x110] sm:$0xff]  ;;  %v1425_v32 = vld [vmem:[%s6655_s3 + $0x108] sm:$0xff]  ;;  %v1404_v42 = vld [vmem:[%s6655_s3 + $0x60] sm:$0xff] }
  0xc8   : > { %4176 = vmatprep.subr.mxu0 %v1426_v31  ;;  %v1401_v48 = vld [vmem:[%s6655_s3 + $0x48] sm:$0xff] }
  0xc9   : > { %4177 = vmatpush3.msra.mxu0 %v1426_v31 }
  0xca   : > { %v712_v33 = vpop.permute.xlu1 %711  ;;  %v710_v34 = vpop.permute.xlu0 %709  ;;  %4178 = vmatprep.subr.mxu0 %v1425_v32 }
  0xcb   : > { %v868_v44 = vsel %vm863_vm5, %v859_v43, %v710_v34  ;;  %v869_v1 = vsel %vm863_vm5, %v860_v50, %v712_v33  ;;  %4179 = vmatpush3.msra.mxu0 %v1425_v32  ;;  %v1424_v33 = vld [vmem:[%s6655_s3 + $0x100] sm:$0xff]  ;;  %v1423_v34 = vld [vmem:[%s6655_s3 + $0xf8] sm:$0xff] }
  0xcc   : > { %4180 = vmatprep.subr.mxu0 %v1424_v33  ;;  %3874 = vmatprep.subr.mxu1 %v1423_v34  ;;  %v1419_v43 = vld [vmem:[%s6655_s3 + $0xd8] sm:$0xff]  ;;  %v1400_v50 = vld [vmem:[%s6655_s3 + $0x40] sm:$0xff] }
  0xcd   : > { %4181 = vmatpush3.msra.mxu0 %v1424_v33 }
  0xce   : > { %v736_v35 = vpop.permute.xlu1 %735  ;;  %v734_v36 = vpop.permute.xlu0 %733 }
  0xcf   : > { %v877_v2 = vsel %vm872_vm6, %v868_v44, %v734_v36  ;;  %v878_v55 = vsel %vm872_vm6, %v869_v1, %v736_v35  ;;  %v1407_v35 = vld [vmem:[%s6655_s3 + $0x78] sm:$0xff]  ;;  %v1422_v36 = vld [vmem:[%s6655_s3 + $0xf0] sm:$0xff] }
  0xd0   : > { %3875 = vmatpush3.msra.mxu1 %v1407_v35  ;;  %v1403_v44 = vld [vmem:[%s6655_s3 + $0x58] sm:$0xff] }
  0xd1   : > { %3876 = vmatprep.subr.mxu1 %v1422_v36  ;;  %v1399_v1 = vld [vmem:[%s6655_s3 + $0x38] sm:$0xff] }
  0xd2   : > { %v760_v38 = vpop.permute.xlu1 %759  ;;  %v758_v39 = vpop.permute.xlu0 %757 }
  0xd3   : > { %v886_v49 = vsel %vm881_vm7, %v877_v2, %v758_v39  ;;  %v887_v57 = vsel %vm881_vm7, %v878_v55, %v760_v38  ;;  %v1406_v38 = vld [vmem:[%s6655_s3 + $0x70] sm:$0xff]  ;;  %v1421_v39 = vld [vmem:[%s6655_s3 + $0xe8] sm:$0xff] }
  0xd4   : > { %3877 = vmatpush3.msra.mxu1 %v1406_v38  ;;  %v1417_v2 = vld [vmem:[%s6655_s3 + $0xc8] sm:$0xff] }
  0xd5   : > { %3878 = vmatprep.subr.mxu1 %v1421_v39  ;;  %v1072_v55 = vld [vmem:[#allocation2 + $0x8] sm:$0x3] }
  0xd6   : > { %v784_v40 = vpop.permute.xlu1 %783  ;;  %v782_v41 = vpop.permute.xlu0 %781 }
  0xd7   : > { %v895_v51 = vsel %vm890_vm8, %v886_v49, %v782_v41  ;;  %v896_v45 = vsel %vm890_vm8, %v887_v57, %v784_v40  ;;  %v1405_v40 = vld [vmem:[%s6655_s3 + $0x68] sm:$0xff]  ;;  %v1420_v41 = vld [vmem:[%s6655_s3 + $0xe0] sm:$0xff] }
  0xd8   : > { %3879 = vmatpush3.msra.mxu1 %v1405_v40  ;;  %v1416_v49 = vld [vmem:[%s6655_s3 + $0xc0] sm:$0xff] }
  0xd9   : > { %3880 = vmatprep.subr.mxu1 %v1420_v41 }
  0xda   : > { %v808_v46 = vpop.permute.xlu1 %807  ;;  %v806_v47 = vpop.permute.xlu0 %805  ;;  %3881 = vmatpush3.msra.mxu1 %v1404_v42 }
  0xdb   : > { %v904_v37 = vsel %vm899_vm9, %v895_v51, %v806_v47  ;;  %v905_v58 = vsel %vm899_vm9, %v896_v45, %v808_v46  ;;  %3882 = vmatprep.subr.mxu1 %v1419_v43  ;;  %v1418_v46 = vld [vmem:[%s6655_s3 + $0xd0] sm:$0xff]  ;;  %v1415_v51 = vld [vmem:[%s6655_s3 + $0xb8] sm:$0xff] }
  0xdc   : > { %3883 = vmatpush3.msra.mxu1 %v1403_v44  ;;  %v1402_v47 = vld [vmem:[%s6655_s3 + $0x50] sm:$0xff] }
  0xdd   : > { %3884 = vmatprep.subr.mxu1 %v1418_v46 }
  0xde   : > { %v666_v52 = vpop.permute.xlu1 %665  ;;  %v830_v54 = vpop.permute.xlu0 %829  ;;  %3885 = vmatpush3.msra.mxu1 %v1402_v47 }
  0xdf   : > { %v912_v56 = vsel %vm495_vm10, %v904_v37, %v830_v54  ;;  %v852_v13 = vsel %vm845_vm3, %v4989_v53, %v666_v52  ;;  %3886 = vmatprep.subr.mxu1 %v1417_v2  ;;  %v5242_v37 = vld [vmem:[%s6654_s2] ss:$0 sm:$0xff]  ;;  %v1414_v52 = vld [vmem:[%s6655_s3 + $0xb0] sm:$0xff] }
  0xe0   : > { %4168 = vmatprep.mubr.msk.f32.mxu1 %vm928_vm11, %v912_v56  ;;  %3887 = vmatpush3.msra.mxu1 %v1401_v48  ;;  %v1071_v54 = vld [vmem:[#allocation2] sm:$0xff] }
  0xe1   : > { %3888 = vmatprep.subr.mxu1 %v1416_v49 }
  0xe2   : > { %v668_v59 = vpop.permute.xlu1 %667  ;;  %v832_v60 = vpop.permute.xlu0 %831  ;;  %3889 = vmatpush3.msra.mxu1 %v1400_v50 }
  0xe3   : > { %v913_v62 = vsel %vm495_vm10, %v905_v58, %v832_v60  ;;  %v853_v14 = vsel %vm845_vm3, %v5005_v61, %v668_v59  ;;  %3890 = vmatprep.subr.mxu1 %v1415_v51  ;;  %v5248_v58 = vmax.f32 %v1071_v54, 0.0  ;;  %v1092_v59 = vmax.f32 %v1072_v55, 0.0  ;;  %v1398_v60 = vld [vmem:[%s6655_s3 + $0x30] sm:$0xff] }
  0xe4   : > { %4169 = vmatmul.mubr.msk.f32.gmra.mxu1 %vm928_vm11, %v913_v62  ;;  %v1413_v62 = vld [vmem:[%s6655_s3 + $0xa8] sm:$0xff]  ;;  %vm525_vm3 = vcmask 517120  }
  0xe5   : > { %3891 = vmatpush3.msra.mxu1 %v1399_v1  ;;  %526 = vst.msk [vmem:[#allocation3 + $0x8] sm:$0x3] %vm525_vm3, %v4781_v6  ;;  %529 = vst.msk [vmem:[#allocation3 + $0x98] sm:$0x3] %vm525_vm3, %v4781_v6 }
  0xe6   : > { %v692_v63 = vpop.permute.xlu1 %691  ;;  %v690_v3 = vpop.permute.xlu0 %689  ;;  %3892 = vmatprep.subr.mxu1 %v1414_v52 }
  0xe7   : > { %v862_v15 = vsel %vm854_vm4, %v853_v14, %v692_v63  ;;  %v861_v16 = vsel %vm854_vm4, %v852_v13, %v690_v3  ;;  %v1397_v63 = vld [vmem:[%s6655_s3 + $0x28] sm:$0xff]  ;;  %3893 = vmatpush3.msra.mxu1 %v1398_v60  ;;  %v1410_v14 = vld [vmem:[%s6655_s3 + $0x90] sm:$0xff] }
  0xe8   : > { %3894 = vmatprep.subr.mxu1 %v1413_v62 }
  0xe9   : > { %3895 = vmatpush3.msra.mxu1 %v1397_v63 }
  0xea   : > { %v716_v4 = vpop.permute.xlu1 %715  ;;  %v714_v5 = vpop.permute.xlu0 %713 }
  0xeb   : > { %v871_v17 = vsel %vm863_vm5, %v862_v15, %v716_v4  ;;  %v870_v18 = vsel %vm863_vm5, %v861_v16, %v714_v5  ;;  %v1151_v4 = vrot.slane %v5248_v58, 2  ;;  %v1152_v5 = vrot.slane %v1092_v59, 2 }
  0xec   : > { %vm3571_vm5 = vcmask 916480  }
  0xee   : > { %v740_v7 = vpop.permute.xlu1 %739  ;;  %v738_v8 = vpop.permute.xlu0 %737 }
  0xef   : > { %v880_v0 = vsel %vm872_vm6, %v871_v17, %v740_v7  ;;  %v879_v21 = vsel %vm872_vm6, %v870_v18, %v738_v8  ;;  %v1412_v7 = vld [vmem:[%s6655_s3 + $0xa0] sm:$0xff]  ;;  %v1394_v17 = vld [vmem:[%s6655_s3 + $0x10] sm:$0xff] }
  0xf0   : > { %v1396_v8 = vld [vmem:[%s6655_s3 + $0x20] sm:$0xff]  ;;  %3896 = vmatprep.subr.mxu1 %v1412_v7 }
  0xf1   : > { %3897 = vmatpush3.msra.mxu1 %v1396_v8 }
  0xf2   : > { %v764_v9 = vpop.permute.xlu1 %763  ;;  %v762_v10 = vpop.permute.xlu0 %761 }
  0xf3   : > { %v889_v22 = vsel %vm881_vm7, %v880_v0, %v764_v9  ;;  %v888_v53 = vsel %vm881_vm7, %v879_v21, %v762_v10  ;;  %v1411_v9 = vld [vmem:[%s6655_s3 + $0x98] sm:$0xff]  ;;  %v1409_v0 = vld [vmem:[%s6655_s3 + $0x88] sm:$0xff] }
  0xf4   : > { %v1395_v10 = vld [vmem:[%s6655_s3 + $0x18] sm:$0xff]  ;;  %3898 = vmatprep.subr.mxu1 %v1411_v9 }
  0xf5   : > { %3899 = vmatpush3.msra.mxu1 %v1395_v10 }
  0xf6   : > { %v788_v11 = vpop.permute.xlu1 %787  ;;  %v786_v12 = vpop.permute.xlu0 %785  ;;  %3900 = vmatprep.subr.mxu1 %v1410_v14 }
  0xf7   : > { %v898_v61 = vsel %vm890_vm8, %v889_v22, %v788_v11  ;;  %v897_v23 = vsel %vm890_vm8, %v888_v53, %v786_v12  ;;  %v1153_v12 = vsel %vm612_vm0, %v1151_v4, %v1152_v5  ;;  %3901 = vmatpush3.msra.mxu1 %v1394_v17 }
  0xf8   : > { %3902 = vmatprep.subr.mxu1 %v1409_v0 }
  0xfa   : > { %v812_v19 = vpop.permute.xlu1 %811  ;;  %v810_v20 = vpop.permute.xlu0 %809 }
  0xfb   : > { %v907_v24 = vsel %vm899_vm9, %v898_v61, %v812_v19  ;;  %v906_v26 = vsel %vm899_vm9, %v897_v23, %v810_v20  ;;  %v1127_v20 = vrot.slane %v5248_v58, 1  ;;  %v1393_v23 = vld [vmem:[%s6655_s3 + $0x8] sm:$0xff] }
  0xfc   : > { %3903 = vmatpush3.msra.mxu1 %v1393_v23 }
  0xfe   : > { %v836_v25 = vpop.permute.xlu1 %835  ;;  %v834_v27 = vpop.permute.xlu0 %833 }
  0xff   : > { %v915_v28 = vsel %vm495_vm10, %v907_v24, %v836_v25  ;;  %v914_v29 = vsel %vm495_vm10, %v906_v26, %v834_v27  ;;  %v1408_v24 = vld [vmem:[%s6655_s3 + $0x80] sm:$0xff] }
 0x100   : > { %4171 = vmatprep.mubr.msk.f32.mxu1 %vm928_vm11, %v914_v29  ;;  %v1392_v26 = vld [vmem:[%s6655_s3] sm:$0xff]  ;;  %v1128_v29 = vrot.slane %v1092_v59, 1  ;;  %3904 = vmatprep.subr.mxu1 %v1408_v24 }
 0x101   : > { %4172 = vmatmul.mubr.msk.f32.gmra.mxu1 %vm928_vm11, %v915_v28 }
 0x102   : > { %3905 = vmatpush3.msra.mxu1 %v1392_v26  ;;  %v1129_v35 = vsel %vm587_vm1, %v1127_v20, %v1128_v29 }
 0x16c   : > { %v4164_v56 = vpop.f32.mrf.mxu1 }
 0x16d   : > { %v1029_v57 = vadd.f32 %v4164_v56, %v5242_v37 }
 0x16e   : > { %v1023_v45 = vpop.f32.mrf.mxu1 }
 0x16f   : > { %1064 = vst.msk [vmem:[#allocation2 + $0x21] sm:$0xff] %vm495_vm10, %v1029_v57  ;;  %v1024_v3 = vadd.f32 %v5242_v37, %v1023_v45 }
 0x171   : > { %1063 = vst.msk [vmem:[#allocation2 + $0x11] sm:$0xff] %vm495_vm10, %v1024_v3 }
 0x176   : > { %v5275_v11 = vld [vmem:[#allocation2 + $0x20] sm:$0xff]  ;;  %v5280_v13 = vld [vmem:[#allocation2 + $0x28] sm:$0x3] }
 0x177   : > { %v5286_v15 = vmax.f32 %v5275_v11, 0.0  ;;  %v1096_v16 = vmax.f32 %v5280_v13, 0.0 }
 0x178   : > { %v5292_v18 = vld [vmem:[#allocation2 + $0x10] sm:$0xff]  ;;  %v5294_v19 = vld [vmem:[#allocation2 + $0x18] sm:$0x3] }
 0x179   : > { %v4285_v21 = vpack.i.bf16 %v1153_v12, %v5286_v15  ;;  %v1134_v22 = vrot.slane %v1096_v16, 1  ;;  %v1157_v53 = vrot.slane %v5286_v15, 2  ;;  %v1158_v61 = vrot.slane %v1096_v16, 2 }
 0x17a   : > { %v5316_v25 = vmax.f32 %v5292_v18, 0.0  ;;  %v1133_v27 = vrot.slane %v5286_v15, 1  ;;  %v1094_v28 = vmax.f32 %v5294_v19, 0.0 }
 0x17b   : > { %4286 = vrot.lane.b32.xlu1 %v4285_v21, %s4782_s16  ;;  %v1159_v30 = vsel %vm612_vm0, %v1157_v53, %v1158_v61 }
 0x17c   : > { %4182 = vmatprep.mubr.msk.f32.mxu0 %vm495_vm10, %v1159_v30  ;;  %v5324_v31 = vsel %vm587_vm1, %v1133_v27, %v1134_v22  ;;  %v1154_v32 = vrot.slane %v5316_v25, 2  ;;  %v1155_v33 = vrot.slane %v1094_v28, 2  ;;  %v1130_v43 = vrot.slane %v5316_v25, 1 }
 0x17d   : > { %v4290_v34 = vpack.i.bf16 %v5316_v25, %v5324_v31  ;;  %v1131_v44 = vrot.slane %v1094_v28, 1 }
 0x17e   : > { %v1156_v36 = vsel %vm612_vm0, %v1154_v32, %v1155_v33 }
 0x17f   : > { %4291 = vrot.lane.b32.xlu0 %v4290_v34, %s4783_s17  ;;  %v4300_v38 = vpack.i.bf16 %v1129_v35, %v1156_v36  ;;  %v5358_v54 = vsel %vm587_vm1, %v1130_v43, %v1131_v44 }
 0x180   : > { %v4305_v5 = vpack.i.bf16 %v5358_v54, %v1159_v30 }
 0x183   : > { %4301 = vrot.lane.b32.xlu0 %v4300_v38, %s4780_s22 }
 0x184   : > { %v4167_v39 = vpop.f32.mrf.mxu1 }
 0x185   : > { %v1039_v40 = vadd.f32 %v4167_v39, %v5242_v37 }
 0x186   : > { %v1033_v41 = vpop.f32.mrf.mxu1 }
 0x187   : > { %1066 = vst.msk [vmem:[#allocation2 + $0x41] sm:$0xff] %vm495_vm10, %v1039_v40  ;;  %v1034_v42 = vadd.f32 %v5242_v37, %v1033_v41 }
 0x189   : > { %1065 = vst.msk [vmem:[#allocation2 + $0x31] sm:$0xff] %vm495_vm10, %v1034_v42 }
 0x18e   : > { %v5340_v46 = vld [vmem:[#allocation2 + $0x40] sm:$0xff]  ;;  %v5342_v47 = vld [vmem:[#allocation2 + $0x48] sm:$0x3] }
 0x18f   : > { %v5345_v2 = vmax.f32 %v5340_v46, 0.0  ;;  %v1100_v48 = vmax.f32 %v5342_v47, 0.0 }
 0x190   : > { %v5348_v49 = vld [vmem:[#allocation2 + $0x30] sm:$0xff]  ;;  %v5350_v50 = vld [vmem:[#allocation2 + $0x38] sm:$0x3] }
 0x191   : > { %v4295_v51 = vpack.i.bf16 %v1159_v30, %v5345_v2  ;;  %v5354_v1 = vmax.f32 %v5348_v49, 0.0  ;;  %v1098_v52 = vmax.f32 %v5350_v50, 0.0  ;;  %v1163_v55 = vrot.slane %v5345_v2, 2 }
 0x192   : > { %v1164_v56 = vrot.slane %v1100_v48, 2  ;;  %v1139_v57 = vrot.slane %v5345_v2, 1  ;;  %v1140_v45 = vrot.slane %v1100_v48, 1 }
 0x193   : > { %4296 = vrot.lane.b32.xlu1 %v4295_v51, %s4782_s16  ;;  %v4310_v59 = vpack.i.bf16 %v1156_v36, %v5354_v1  ;;  %v1160_v60 = vrot.slane %v5354_v1, 2  ;;  %v1161_v62 = vrot.slane %v1098_v52, 2  ;;  %v1136_v17 = vrot.slane %v5354_v1, 1 }
 0x194   : > { %v5366_v63 = vsel %vm587_vm1, %v1139_v57, %v1140_v45  ;;  %v1165_v7 = vsel %vm612_vm0, %v1163_v55, %v1164_v56  ;;  %v1137_v0 = vrot.slane %v1098_v52, 1 }
 0x195   : > { %4311 = vrot.lane.b32.xlu0 %v4310_v59, %s4782_s16  ;;  %v1162_v3 = vsel %vm612_vm0, %v1160_v60, %v1161_v62  ;;  %v4315_v8 = vpack.i.bf16 %v5354_v1, %v5366_v63 }
 0x196   : > { %4183 = vmatmul.mubr.msk.f32.vlgmr.msra.gmra.mxu0 %vm495_vm10, %v1162_v3  ;;  %v4330_v9 = vpack.i.bf16 %v5324_v31, %v1162_v3  ;;  %v5403_v29 = vsel %vm587_vm1, %v1136_v17, %v1137_v0 }
 0x197   : > { %4306 = vrot.lane.b32.xlu1 %v4305_v5, %s4780_s22  ;;  %4185 = vmatprep.mubr.msk.f32.mxu0 %vm495_vm10, %v1165_v7  ;;  %v4325_v41 = vpack.i.bf16 %v5286_v15, %v5403_v29  ;;  %v4335_v44 = vpack.i.bf16 %v5403_v29, %v1165_v7 }
 0x199   : > { %4316 = vrot.lane.b32.xlu0 %v4315_v8, %s4783_s17 }
 0x19d   : > { %4331 = vrot.lane.b32.xlu0 %v4330_v9, %s4780_s22 }
 0x1a4   : > { %v4170_v10 = vpop.f32.mrf.mxu1 }
 0x1a5   : > { %v1049_v12 = vadd.f32 %v4170_v10, %v5242_v37 }
 0x1a6   : > { %v1043_v14 = vpop.f32.mrf.mxu1 }
 0x1a7   : > { %1068 = vst.msk [vmem:[#allocation2 + $0x61] sm:$0xff] %vm495_vm10, %v1049_v12  ;;  %v1044_v16 = vadd.f32 %v5242_v37, %v1043_v14 }
 0x1a9   : > { %1067 = vst.msk [vmem:[#allocation2 + $0x51] sm:$0xff] %vm495_vm10, %v1044_v16 }
 0x1ae   : > { %v5385_v21 = vld [vmem:[#allocation2 + $0x60] sm:$0xff]  ;;  %v5387_v22 = vld [vmem:[#allocation2 + $0x68] sm:$0x3] }
 0x1af   : > { %v5390_v53 = vmax.f32 %v5385_v21, 0.0  ;;  %v1104_v61 = vmax.f32 %v5387_v22, 0.0 }
 0x1b0   : > { %v5393_v23 = vld [vmem:[#allocation2 + $0x50] sm:$0xff]  ;;  %v5395_v24 = vld [vmem:[#allocation2 + $0x58] sm:$0x3] }
 0x1b1   : > { %v4320_v26 = vpack.i.bf16 %v1165_v7, %v5390_v53  ;;  %v5399_v27 = vmax.f32 %v5393_v23, 0.0  ;;  %v1102_v28 = vmax.f32 %v5395_v24, 0.0  ;;  %v1169_v30 = vrot.slane %v5390_v53, 2 }
 0x1b2   : > { %v1170_v32 = vrot.slane %v1104_v61, 2  ;;  %v1145_v33 = vrot.slane %v5390_v53, 1  ;;  %v1146_v34 = vrot.slane %v1104_v61, 1 }
 0x1b3   : > { %4321 = vrot.lane.b32.xlu1 %v4320_v26, %s4782_s16  ;;  %v4340_v35 = vpack.i.bf16 %v1162_v3, %v5399_v27  ;;  %v1166_v36 = vrot.slane %v5399_v27, 2  ;;  %v1167_v38 = vrot.slane %v1102_v28, 2  ;;  %v1142_v45 = vrot.slane %v5399_v27, 1 }
 0x1b4   : > { %v5411_v39 = vsel %vm587_vm1, %v1145_v33, %v1146_v34  ;;  %v1171_v42 = vsel %vm612_vm0, %v1169_v30, %v1170_v32  ;;  %v1143_v59 = vrot.slane %v1102_v28, 1 }
 0x1b5   : > { %4341 = vrot.lane.b32.xlu0 %v4340_v35, %s4782_s16  ;;  %v1168_v40 = vsel %vm612_vm0, %v1166_v36, %v1167_v38  ;;  %v4345_v43 = vpack.i.bf16 %v5399_v27, %v5411_v39  ;;  %v1089_v36 = vld [vmem:[#allocation2 + $0x90] sm:$0xff]  ;;  %v1090_v38 = vld [vmem:[#allocation2 + $0x98] sm:$0x3] }
 0x1b6   : > { %4186 = vmatmul.mubr.msk.f32.gmra.mxu0 %vm495_vm10, %v1168_v40  ;;  %v4360_v48 = vpack.i.bf16 %v5366_v63, %v1168_v40  ;;  %v5448_v10 = vsel %vm587_vm1, %v1142_v45, %v1143_v59 }
 0x1b7   : > { %4326 = vrot.lane.b32.xlu1 %v4325_v41, %s4783_s17  ;;  %4188 = vmatprep.mubr.msk.f32.mxu0 %vm495_vm10, %v1171_v42  ;;  %v4355_v30 = vpack.i.bf16 %v5345_v2, %v5448_v10  ;;  %v4365_v41 = vpack.i.bf16 %v5448_v10, %v1171_v42 }
 0x1b9   : > { %4346 = vrot.lane.b32.xlu0 %v4345_v43, %s4783_s17 }
 0x1bb   : > { %4336 = vrot.lane.b32.xlu1 %v4335_v44, %s4780_s22  ;;  %v5471_v44 = vmax.f32 %v1089_v36, 0.0 }
 0x1bd   : > { %4361 = vrot.lane.b32.xlu0 %v4360_v48, %s4780_s22  ;;  %v1110_v48 = vmax.f32 %v1090_v38, 0.0 }
 0x1bf   : > { %v1194_v45 = vrot.slane %v1110_v48, 1 }
 0x1c1   : > { %v4173_v51 = vpop.f32.mrf.mxu1 }
 0x1c2   : > { %v1059_v52 = vadd.f32 %v4173_v51, %v5242_v37 }
 0x1c3   : > { %v1053_v55 = vpop.f32.mrf.mxu1 }
 0x1c4   : > { %1070 = vst.msk [vmem:[#allocation2 + $0x81] sm:$0xff] %vm495_vm10, %v1059_v52  ;;  %v1054_v56 = vadd.f32 %v5242_v37, %v1053_v55  ;;  %v1196_v55 = vrot.slane %v5471_v44, 2 }
 0x1c6   : > { %1069 = vst.msk [vmem:[#allocation2 + $0x71] sm:$0xff] %vm495_vm10, %v1054_v56  ;;  %v1197_v56 = vrot.slane %v1110_v48, 2 }
 0x1cb   : > { %v5432_v57 = vld [vmem:[#allocation2 + $0x80] sm:$0xff]  ;;  %v5435_v60 = vld [vmem:[#allocation2 + $0x88] sm:$0x3] }
 0x1cc   : > { %v1107_v62 = vmax.f32 %v5432_v57, 0.0  ;;  %v1108_v3 = vmax.f32 %v5435_v60, 0.0 }
 0x1cd   : > { %v5439_v5 = vld [vmem:[#allocation2 + $0x70] sm:$0xff]  ;;  %v5441_v7 = vld [vmem:[#allocation2 + $0x78] sm:$0x3] }
 0x1ce   : > { %v4350_v8 = vpack.i.bf16 %v1171_v42, %v1107_v62  ;;  %v5444_v37 = vmax.f32 %v5439_v5, 0.0  ;;  %v1106_v9 = vmax.f32 %v5441_v7, 0.0  ;;  %v1188_v12 = vrot.slane %v1107_v62, 2 }
 0x1cf   : > { %v1189_v14 = vrot.slane %v1108_v3, 2  ;;  %v1177_v61 = vrot.slane %v1107_v62, 1  ;;  %v1178_v26 = vrot.slane %v1108_v3, 1  ;;  %v1193_v42 = vrot.slane %v5471_v44, 1 }
 0x1d0   : > { %4351 = vrot.lane.b32.xlu1 %v4350_v8, %s4782_s16  ;;  %v4370_v16 = vpack.i.bf16 %v1168_v40, %v5444_v37  ;;  %v1172_v17 = vrot.slane %v5444_v37, 2  ;;  %v1173_v0 = vrot.slane %v1106_v9, 2  ;;  %v1148_v34 = vrot.slane %v5444_v37, 1 }
 0x1d1   : > { %v1190_v32 = vsel %vm612_vm0, %v1188_v12, %v1189_v14  ;;  %v1149_v35 = vrot.slane %v1106_v9, 1  ;;  %v5464_v40 = vsel %vm587_vm1, %v1177_v61, %v1178_v26  ;;  %v1198_v3 = vsel %vm612_vm0, %v1196_v55, %v1197_v56 }
 0x1d2   : > { %4371 = vrot.lane.b32.xlu0 %v4370_v16, %s4782_s16  ;;  %v1174_v28 = vsel %vm612_vm0, %v1172_v17, %v1173_v0  ;;  %v4385_v51 = vpack.i.bf16 %v5444_v37, %v5464_v40  ;;  %v1195_v9 = vsel %vm587_vm1, %v1193_v42, %v1194_v45 }
 0x1d3   : > { %4189 = vmatmul.mubr.msk.f32.gmra.mxu0 %vm495_vm10, %v1174_v28  ;;  %v4380_v33 = vpack.i.bf16 %v5411_v39, %v1174_v28  ;;  %v5469_v43 = vsel %vm587_vm1, %v1148_v34, %v1149_v35  ;;  %v4395_v59 = vpack.i.bf16 %v1174_v28, %v5471_v44  ;;  %v4400_v12 = vpack.i.bf16 %v1107_v62, %v1195_v9 }
 0x1d4   : > { %4356 = vrot.lane.b32.xlu1 %v4355_v30, %s4783_s17  ;;  %4191 = vmatprep.mubr.msk.f32.mxu0 %vm495_vm10, %v1190_v32  ;;  %v4375_v52 = vpack.i.bf16 %v5390_v53, %v5469_v43  ;;  %v4390_v8 = vpack.i.bf16 %v5469_v43, %v1190_v32 }
 0x1d6   : > { %4381 = vrot.lane.b32.xlu0 %v4380_v33, %s4780_s22 }
 0x1d7   : > { %4192 = vmatmul.mubr.msk.f32.gmra.mxu0 %vm495_vm10, %v1198_v3 }
 0x1d8   : > { %4366 = vrot.lane.b32.xlu1 %v4365_v41, %s4780_s22 }
 0x1da   : > { %4386 = vrot.lane.b32.xlu0 %v4385_v51, %s4783_s17 }
 0x1dc   : > { %4376 = vrot.lane.b32.xlu1 %v4375_v52, %s4783_s17 }
 0x1de   : > { %4396 = vrot.lane.b32.xlu0 %v4395_v59, %s4782_s16 }
 0x1e0   : > { %4391 = vrot.lane.b32.xlu1 %v4390_v8, %s4780_s22 }
 0x1e4   : > { %4401 = vrot.lane.b32.xlu1 %v4400_v12, %s4783_s17 }
 0x1ed   : > { %v4287_v16 = vpop.permute.xlu1 %4286 }
 0x1ee   : > { %v4289_v26 = vunpack.i.h.bf16 %v4287_v16  ;;  %v4288_v28 = vunpack.i.l.bf16 %v4287_v16 }
 0x1f1   : > { %v4292_v14 = vpop.permute.xlu0 %4291 }
 0x1f2   : > { %v4294_v30 = vunpack.i.h.bf16 %v4292_v14  ;;  %v4293_v33 = vunpack.i.l.bf16 %v4292_v14 }
 0x1f5   : > { %v4302_v17 = vpop.permute.xlu0 %4301 }
 0x1f6   : > { %v4304_v0 = vunpack.i.h.bf16 %v4302_v17  ;;  %v4303_v61 = vunpack.i.l.bf16 %v4302_v17 }
 0x1f8   : > { %v1343_v32 = vsel %vm495_vm10, %v5248_v58, %v4304_v0  ;;  %v1368_v34 = vsel %vm495_vm10, %v5358_v54, %v4303_v61 }
 0x1f9   : > { %v1376_v62 = vsel %vm523_vm14, %v1368_v34, %v4288_v28  ;;  %v1351_v35 = vsel %vm523_vm14, %v1343_v32, %v4289_v26 }
 0x1fa   : > { %v1384_v36 = vsel %vm1359_vm15, %v1376_v62, %v4293_v33  ;;  %v1360_v38 = vsel %vm1359_vm15, %v1351_v35, %v4294_v30 }
 0x1fb   : > { %1515 = vmatprep.mubr.f32.mxu1 %v1384_v36 }
 0x1fc   : > { %1516 = vmatmul.mubr.f32.vlgmr.msra.gmra.mxu1 %v1360_v38 }
 0x205   : > { %v4297_v48 = vpop.permute.xlu1 %4296 }
 0x206   : > { %v4298_v16 = vunpack.i.l.bf16 %v4297_v48  ;;  %v4299_v34 = vunpack.i.h.bf16 %v4297_v48 }
 0x207   : > { %v4312_v41 = vpop.permute.xlu0 %4311 }
 0x208   : > { %v4314_v17 = vunpack.i.h.bf16 %v4312_v41  ;;  %v4313_v0 = vunpack.i.l.bf16 %v4312_v41 }
 0x209   : > { %v4307_v52 = vpop.permute.xlu1 %4306 }
 0x20a   : > { %v4309_v45 = vunpack.i.h.bf16 %v4307_v52  ;;  %v4308_v59 = vunpack.i.l.bf16 %v4307_v52 }
 0x20b   : > { %v4317_v51 = vpop.permute.xlu0 %4316 }
 0x20c   : > { %v1369_v9 = vsel %vm495_vm10, %v5324_v31, %v4308_v59  ;;  %v1344_v12 = vsel %vm495_vm10, %v5316_v25, %v4309_v45  ;;  %v4318_v25 = vunpack.i.l.bf16 %v4317_v51  ;;  %v4319_v38 = vunpack.i.h.bf16 %v4317_v51 }
 0x20d   : > { %v1377_v30 = vsel %vm523_vm14, %v1369_v9, %v4313_v0  ;;  %v1352_v33 = vsel %vm523_vm14, %v1344_v12, %v4314_v17 }
 0x20f   : > { %v4332_v56 = vpop.permute.xlu0 %4331 }
 0x210   : > { %v4333_v3 = vunpack.i.l.bf16 %v4332_v56  ;;  %v4334_v54 = vunpack.i.h.bf16 %v4332_v56 }
 0x212   : > { %v1370_v14 = vsel %vm495_vm10, %v5403_v29, %v4333_v3  ;;  %v1345_v31 = vsel %vm495_vm10, %v5286_v15, %v4334_v54 }
 0x213   : > { %v1378_v32 = vsel %vm523_vm14, %v1370_v14, %v4298_v16  ;;  %v1353_v36 = vsel %vm523_vm14, %v1345_v31, %v4299_v34 }
 0x214   : > { %v1386_v35 = vsel %vm1359_vm15, %v1378_v32, %v4318_v25  ;;  %v1362_v41 = vsel %vm1359_vm15, %v1353_v36, %v4319_v38 }
 0x225   : > { %v4322_v8 = vpop.permute.xlu1 %4321 }
 0x226   : > { %v4323_v17 = vunpack.i.l.bf16 %v4322_v8  ;;  %v4324_v32 = vunpack.i.h.bf16 %v4322_v8 }
 0x227   : > { %v4342_v52 = vpop.permute.xlu0 %4341 }
 0x228   : > { %v4344_v0 = vunpack.i.h.bf16 %v4342_v52 }
 0x229   : > { %v4327_v61 = vpop.permute.xlu1 %4326 }
 0x22a   : > { %v4329_v26 = vunpack.i.h.bf16 %v4327_v61  ;;  %v4328_v28 = vunpack.i.l.bf16 %v4327_v61  ;;  %v4343_v61 = vunpack.i.l.bf16 %v4342_v52 }
 0x22b   : > { %v4347_v56 = vpop.permute.xlu0 %4346 }
 0x22c   : > { %v1385_v62 = vsel %vm1359_vm15, %v1377_v30, %v4328_v28  ;;  %v1361_v29 = vsel %vm1359_vm15, %v1352_v33, %v4329_v26  ;;  %v4348_v25 = vunpack.i.l.bf16 %v4347_v56 }
 0x22d   : > { %1520 = vmatprep.mubr.f32.mxu1 %v1385_v62  ;;  %v4337_v15 = vpop.permute.xlu1 %4336 }
 0x22e   : > { %1521 = vmatmul.mubr.f32.gmra.mxu1 %v1361_v29  ;;  %v4339_v45 = vunpack.i.h.bf16 %v4337_v15  ;;  %v4338_v59 = vunpack.i.l.bf16 %v4337_v15 }
 0x22f   : > { %1525 = vmatprep.mubr.f32.mxu1 %v1386_v35  ;;  %v4362_v48 = vpop.permute.xlu0 %4361 }
 0x230   : > { %v4363_v3 = vunpack.i.l.bf16 %v4362_v48  ;;  %v4364_v9 = vunpack.i.h.bf16 %v4362_v48  ;;  %v1371_v14 = vsel %vm495_vm10, %v5366_v63, %v4338_v59  ;;  %v1346_v51 = vsel %vm495_vm10, %v5354_v1, %v4339_v45 }
 0x231   : > { %v1379_v34 = vsel %vm523_vm14, %v1371_v14, %v4343_v61  ;;  %v1354_v63 = vsel %vm523_vm14, %v1346_v51, %v4344_v0 }
 0x232   : > { %1526 = vmatmul.mubr.f32.gmra.mxu1 %v1362_v41  ;;  %v1372_v16 = vsel %vm495_vm10, %v5448_v10, %v4363_v3  ;;  %v1347_v33 = vsel %vm495_vm10, %v5345_v2, %v4364_v9  ;;  %v4349_v41 = vunpack.i.h.bf16 %v4347_v56 }
 0x233   : > { %v1380_v1 = vsel %vm523_vm14, %v1372_v16, %v4323_v17  ;;  %v1355_v35 = vsel %vm523_vm14, %v1347_v33, %v4324_v32 }
 0x234   : > { %v1388_v8 = vsel %vm1359_vm15, %v1380_v1, %v4348_v25  ;;  %v1364_v14 = vsel %vm1359_vm15, %v1355_v35, %v4349_v41 }
 0x242   : > { %v5518_v54 = vpop.permute.xlu1 %4351 }
 0x243   : > { %v4353_v0 = vunpack.i.l.bf16 %v5518_v54 }
 0x244   : > { %v4372_v12 = vpop.permute.xlu0 %4371 }
 0x245   : > { %v4374_v45 = vunpack.i.h.bf16 %v4372_v12  ;;  %v4373_v59 = vunpack.i.l.bf16 %v4372_v12 }
 0x246   : > { %v4357_v26 = vpop.permute.xlu1 %4356 }
 0x247   : > { %v4359_v28 = vunpack.i.h.bf16 %v4357_v26  ;;  %v4358_v30 = vunpack.i.l.bf16 %v4357_v26 }
 0x248   : > { %v4382_v31 = vpop.permute.xlu0 %4381 }
 0x249   : > { %v1387_v10 = vsel %vm1359_vm15, %v1379_v34, %v4358_v30  ;;  %v1363_v62 = vsel %vm1359_vm15, %v1354_v63, %v4359_v28  ;;  %v4383_v36 = vunpack.i.l.bf16 %v4382_v31  ;;  %v4384_v3 = vunpack.i.h.bf16 %v4382_v31 }
 0x24a   : > { %v4367_v29 = vpop.permute.xlu1 %4366  ;;  %1530 = vmatprep.mubr.f32.mxu1 %v1387_v10 }
 0x24b   : > { %v4369_v38 = vunpack.i.h.bf16 %v4367_v29  ;;  %v4368_v2 = vunpack.i.l.bf16 %v4367_v29  ;;  %1531 = vmatmul.mubr.f32.gmra.mxu1 %v1363_v62  ;;  %v1374_v56 = vsel %vm495_vm10, %v5469_v43, %v4383_v36  ;;  %v1349_v33 = vsel %vm495_vm10, %v5390_v53, %v4384_v3 }
 0x24c   : > { %v4387_v52 = vpop.permute.xlu0 %4386  ;;  %1535 = vmatprep.mubr.f32.mxu1 %v1388_v8  ;;  %v1382_v30 = vsel %vm523_vm14, %v1374_v56, %v4353_v0  ;;  %v4354_v43 = vunpack.i.h.bf16 %v5518_v54 }
 0x24d   : > { %v1373_v15 = vsel %vm495_vm10, %v5411_v39, %v4368_v2  ;;  %v1348_v48 = vsel %vm495_vm10, %v5399_v27, %v4369_v38  ;;  %v4388_v51 = vunpack.i.l.bf16 %v4387_v52  ;;  %v4389_v26 = vunpack.i.h.bf16 %v4387_v52 }
 0x24e   : > { %v4377_v9 = vpop.permute.xlu1 %4376  ;;  %v1381_v39 = vsel %vm523_vm14, %v1373_v15, %v4373_v59  ;;  %v1356_v61 = vsel %vm523_vm14, %v1348_v48, %v4374_v45  ;;  %v1357_v1 = vsel %vm523_vm14, %v1349_v33, %v4354_v43  ;;  %v3812_v15 = vld [vmem:[%s6656_s4] ss:$0 sm:$0xff] }
 0x24f   : > { %v4379_v16 = vunpack.i.h.bf16 %v4377_v9  ;;  %v4378_v17 = vunpack.i.l.bf16 %v4377_v9  ;;  %1536 = vmatmul.mubr.f32.gmra.mxu1 %v1364_v14  ;;  %v1390_v63 = vsel %vm1359_vm15, %v1382_v30, %v4388_v51  ;;  %v1366_v54 = vsel %vm1359_vm15, %v1357_v1, %v4389_v26 }
 0x250   : > { %v4397_v32 = vpop.permute.xlu0 %4396 }
 0x251   : > { %v1389_v27 = vsel %vm1359_vm15, %v1381_v39, %v4378_v17  ;;  %v1365_v12 = vsel %vm1359_vm15, %v1356_v61, %v4379_v16  ;;  %v4399_v62 = vunpack.i.h.bf16 %v4397_v32  ;;  %v4398_v29 = vunpack.i.l.bf16 %v4397_v32 }
 0x252   : > { %v4392_v28 = vpop.permute.xlu1 %4391  ;;  %1540 = vmatprep.mubr.f32.mxu1 %v1389_v27 }
 0x253   : > { %v4394_v31 = vunpack.i.h.bf16 %v4392_v28  ;;  %v4393_v34 = vunpack.i.l.bf16 %v4392_v28  ;;  %1541 = vmatmul.mubr.f32.gmra.mxu1 %v1365_v12 }
 0x254   : > { %1545 = vmatprep.mubr.f32.mxu1 %v1390_v63 }
 0x255   : > { %v1375_v25 = vsel %vm495_vm10, %v5464_v40, %v4393_v34  ;;  %v1350_v10 = vsel %vm495_vm10, %v5444_v37, %v4394_v31  ;;  %v1669_v37 = vld [vmem:[%s6657_s5] sm:$0xff] }
 0x256   : > { %v4402_v53 = vpop.permute.xlu1 %4401  ;;  %v1383_v38 = vsel %vm523_vm14, %v1375_v25, %v4398_v29  ;;  %v1358_v2 = vsel %vm523_vm14, %v1350_v10, %v4399_v62  ;;  %4194 = vmatprep.subr.mxu0 %v1669_v37  ;;  %v4184_v52 = vpop.f32.mrf.mxu0 }
 0x257   : > { %v4404_v35 = vunpack.i.h.bf16 %v4402_v53  ;;  %v4403_v36 = vunpack.i.l.bf16 %v4402_v53  ;;  %1546 = vmatmul.mubr.f32.gmra.mxu1 %v1366_v54  ;;  %4195 = vmatpush3.msra.mxu0 %v1669_v37 }
 0x258   : > { %v1622_v3 = vpop.f32.mrf.mxu0 }
 0x259   : > { %v1391_v8 = vsel %vm1359_vm15, %v1383_v38, %v4403_v36  ;;  %v1367_v41 = vsel %vm1359_vm15, %v1358_v2, %v4404_v35 }
 0x25a   : > { %1550 = vmatprep.mubr.f32.mxu1 %v1391_v8 }
 0x25b   : > { %1551 = vmatmul.mubr.f32.gmra.mxu1 %v1367_v41 }
 0x276   : > { %v4187_v39 = vpop.f32.mrf.mxu0 }
 0x278   : > { %v1632_v30 = vpop.f32.mrf.mxu0 }
 0x293   : > { %v4190_v25 = vpop.f32.mrf.mxu0 }
 0x295   : > { %v1642_v36 = vpop.f32.mrf.mxu0 }
 0x297   : > { %v4193_v37 = vpop.f32.mrf.mxu0 }
 0x2bc   : > { %v3906_v40 = vpop.f32.mrf.mxu1 }
 0x2be   : > { %v3907_v48 = vpop.f32.mrf.mxu1 }
 0x2bf   : > { %v3908_v45 = vadd.f32 %v3907_v48, %v3906_v40 }
 0x2c1   : > { %v1518_v59 = vadd.f32 %v3908_v45, %v3812_v15 }
 0x2c3   : > { %v1623_v9 = vadd.f32 %v1622_v3, %v1518_v59 }
 0x2c5   : > { %v1661_v14 = vmax.f32 %v1623_v9, 0.0  ;;  %v1652_v9 = vpop.f32.mrf.mxu0 }
 0x2c7   : > { %4196 = vmatprep.mubr.msk.f32.mxu0 %vm854_vm4, %v1661_v14 }
 0x2ee   : > { %v3909_v51 = vpop.f32.mrf.mxu1 }
 0x2f0   : > { %v3910_v16 = vpop.f32.mrf.mxu1 }
 0x2f1   : > { %v3911_v17 = vadd.f32 %v3910_v16, %v3909_v51 }
 0x2f2   : > { %v3912_v56 = vpop.f32.mrf.mxu1 }
 0x2f3   : > { %v1523_v0 = vadd.f32 %v3911_v17, %v3812_v15 }
 0x2f4   : > { %v3913_v61 = vpop.f32.mrf.mxu1 }
 0x2f5   : > { %v1628_v27 = vadd.f32 %v4184_v52, %v1523_v0  ;;  %v3914_v12 = vadd.f32 %v3913_v61, %v3912_v56 }
 0x2f7   : > { %v1662_v26 = vmax.f32 %v1628_v27, 0.0  ;;  %v1528_v28 = vadd.f32 %v3914_v12, %v3812_v15  ;;  %v2218_v12 = vld [vmem:[%s6659_s7 + $0x118] sm:$0xff] }
 0x2f8   : > { %4208 = vmatprep.subr.mxu0 %v2218_v12 }
 0x2f9   : > { %v1633_v33 = vadd.f32 %v1632_v30, %v1528_v28  ;;  %4197 = vmatmul.mubr.msk.f32.vlgmr.msra.gmra.mxu0 %vm854_vm4, %v1662_v26  ;;  %v2217_v26 = vld [vmem:[%s6659_s7 + $0x110] sm:$0xff]  ;;  %v2215_v28 = vld [vmem:[%s6659_s7 + $0x100] sm:$0xff]  ;;  %v2214_v30 = vld [vmem:[%s6659_s7 + $0xf8] sm:$0xff] }
 0x2fa   : > { %4209 = vmatpush3.msra.mxu0 %v2218_v12  ;;  %3951 = vmatprep.subr.mxu1 %v2214_v30 }
 0x2fb   : > { %v1663_v43 = vmax.f32 %v1633_v33, 0.0  ;;  %4210 = vmatprep.subr.mxu0 %v2217_v26  ;;  %v2198_v33 = vld [vmem:[%s6659_s7 + $0x78] sm:$0xff] }
 0x2fc   : > { %4211 = vmatpush3.msra.mxu0 %v2217_v26  ;;  %3952 = vmatpush3.msra.mxu1 %v2198_v33  ;;  %v2185_v33 = vld [vmem:[%s6659_s7 + $0x10] sm:$0xff] }
 0x2fd   : > { %4199 = vmatprep.mubr.msk.f32.mxu0 %vm854_vm4, %v1663_v43  ;;  %v2213_v43 = vld [vmem:[%s6659_s7 + $0xf0] sm:$0xff] }
 0x2fe   : > { %3953 = vmatprep.subr.mxu1 %v2213_v43 }
 0x30b   : > { %v3915_v32 = vpop.f32.mrf.mxu1 }
 0x30d   : > { %v3916_v31 = vpop.f32.mrf.mxu1 }
 0x30e   : > { %v3917_v34 = vadd.f32 %v3916_v31, %v3915_v32  ;;  %v2197_v32 = vld [vmem:[%s6659_s7 + $0x70] sm:$0xff]  ;;  %v2212_v31 = vld [vmem:[%s6659_s7 + $0xe8] sm:$0xff] }
 0x30f   : > { %v3918_v63 = vpop.f32.mrf.mxu1  ;;  %3954 = vmatpush3.msra.mxu1 %v2197_v32  ;;  %v2200_v32 = vld [vmem:[%s6659_s7 + $0x88] sm:$0xff] }
 0x310   : > { %v1533_v1 = vadd.f32 %v3917_v34, %v3812_v15  ;;  %v2196_v34 = vld [vmem:[%s6659_s7 + $0x68] sm:$0xff]  ;;  %3955 = vmatprep.subr.mxu1 %v2212_v31 }
 0x311   : > { %v3919_v10 = vpop.f32.mrf.mxu1  ;;  %3956 = vmatpush3.msra.mxu1 %v2196_v34 }
 0x312   : > { %v1638_v62 = vadd.f32 %v4187_v39, %v1533_v1  ;;  %v3920_v29 = vadd.f32 %v3919_v10, %v3918_v63  ;;  %v2211_v63 = vld [vmem:[%s6659_s7 + $0xe0] sm:$0xff]  ;;  %v2194_v10 = vld [vmem:[%s6659_s7 + $0x58] sm:$0xff] }
 0x313   : > { %v3921_v53 = vpop.f32.mrf.mxu1  ;;  %v2195_v1 = vld [vmem:[%s6659_s7 + $0x60] sm:$0xff]  ;;  %3957 = vmatprep.subr.mxu1 %v2211_v63 }
 0x314   : > { %v1664_v54 = vmax.f32 %v1638_v62, 0.0  ;;  %v1538_v35 = vadd.f32 %v3920_v29, %v3812_v15  ;;  %3958 = vmatpush3.msra.mxu1 %v2195_v1  ;;  %v2209_v62 = vld [vmem:[%s6659_s7 + $0xd0] sm:$0xff] }
 0x315   : > { %v3922_v38 = vpop.f32.mrf.mxu1  ;;  %v2193_v29 = vld [vmem:[%s6659_s7 + $0x50] sm:$0xff] }
 0x316   : > { %v1643_v2 = vadd.f32 %v1642_v36, %v1538_v35  ;;  %v3923_v8 = vadd.f32 %v3922_v38, %v3921_v53  ;;  %4200 = vmatmul.mubr.msk.f32.gmra.mxu0 %vm854_vm4, %v1664_v54  ;;  %v2208_v53 = vld [vmem:[%s6659_s7 + $0xc8] sm:$0xff]  ;;  %v2207_v35 = vld [vmem:[%s6659_s7 + $0xc0] sm:$0xff]  ;;  %v2206_v38 = vld [vmem:[%s6659_s7 + $0xb8] sm:$0xff] }
 0x317   : > { %v3924_v41 = vpop.f32.mrf.mxu1  ;;  %v2192_v54 = vld [vmem:[%s6659_s7 + $0x48] sm:$0xff]  ;;  %v2191_v36 = vld [vmem:[%s6659_s7 + $0x40] sm:$0xff] }
 0x318   : > { %v1665_v40 = vmax.f32 %v1643_v2, 0.0  ;;  %v1543_v52 = vadd.f32 %v3923_v8, %v3812_v15  ;;  %v2190_v2 = vld [vmem:[%s6659_s7 + $0x38] sm:$0xff]  ;;  %v2205_v8 = vld [vmem:[%s6659_s7 + $0xb0] sm:$0xff] }
 0x319   : > { %v3925_v48 = vpop.f32.mrf.mxu1 }
 0x31a   : > { %v1648_v45 = vadd.f32 %v4190_v25, %v1543_v52  ;;  %v3926_v59 = vadd.f32 %v3925_v48, %v3924_v41  ;;  %4202 = vmatprep.mubr.msk.f32.mxu0 %vm854_vm4, %v1665_v40  ;;  %v2210_v25 = vld [vmem:[%s6659_s7 + $0xd8] sm:$0xff]  ;;  %v5648_v41 = vld [vmem:[%s6658_s6] ss:$0 sm:$0xff] }
 0x31b   : > { %v3927_v3 = vpop.f32.mrf.mxu1  ;;  %3959 = vmatprep.subr.mxu1 %v2210_v25  ;;  %v2184_v25 = vld [vmem:[%s6659_s7 + $0x8] sm:$0xff] }
 0x31c   : > { %v1666_v14 = vmax.f32 %v1648_v45, 0.0  ;;  %v1548_v51 = vadd.f32 %v3926_v59, %v3812_v15  ;;  %3960 = vmatpush3.msra.mxu1 %v2194_v10  ;;  %v1864_v59 = vld [vmem:[#allocation2 + $0x8] sm:$0x3]  ;;  %v2199_v10 = vld [vmem:[%s6659_s7 + $0x80] sm:$0xff] }
 0x31d   : > { %v3928_v16 = vpop.f32.mrf.mxu1  ;;  %3961 = vmatprep.subr.mxu1 %v2209_v62  ;;  %v2183_v62 = vld [vmem:[%s6659_s7] sm:$0xff] }
 0x31e   : > { %v3929_v17 = vadd.f32 %v3928_v16, %v3927_v3  ;;  %v1653_v56 = vadd.f32 %v1652_v9, %v1548_v51  ;;  %4203 = vmatmul.mubr.msk.f32.gmra.mxu0 %vm854_vm4, %v1666_v14  ;;  %3962 = vmatpush3.msra.mxu1 %v2193_v29  ;;  %v1884_v51 = vmax.f32 %v1864_v59, 0.0  ;;  %v2189_v16 = vld [vmem:[%s6659_s7 + $0x30] sm:$0xff] }
 0x31f   : > { %3963 = vmatprep.subr.mxu1 %v2208_v53 }
 0x320   : > { %v1553_v0 = vadd.f32 %v3929_v17, %v3812_v15  ;;  %v1667_v39 = vmax.f32 %v1653_v56, 0.0  ;;  %v2216_v15 = vld [vmem:[%s6659_s7 + $0x108] sm:$0xff]  ;;  %3964 = vmatpush3.msra.mxu1 %v2192_v54 }
 0x321   : > { %4212 = vmatprep.subr.mxu0 %v2216_v15  ;;  %3965 = vmatprep.subr.mxu1 %v2207_v35  ;;  %v2204_v17 = vld [vmem:[%s6659_s7 + $0xa8] sm:$0xff]  ;;  %v1920_v35 = vrot.slane %v1884_v51, 1 }
 0x322   : > { %v1658_v61 = vadd.f32 %v4193_v37, %v1553_v0  ;;  %4205 = vmatprep.mubr.msk.f32.mxu0 %vm854_vm4, %v1667_v39  ;;  %4213 = vmatpush3.msra.mxu0 %v2216_v15  ;;  %v2188_v56 = vld [vmem:[%s6659_s7 + $0x28] sm:$0xff]  ;;  %v1944_v0 = vrot.slane %v1884_v51, 2  ;;  %v2203_v39 = vld [vmem:[%s6659_s7 + $0xa0] sm:$0xff]  ;;  %v2201_v15 = vld [vmem:[%s6659_s7 + $0x90] sm:$0xff] }
 0x323   : > { %4214 = vmatprep.subr.mxu0 %v2215_v28  ;;  %3966 = vmatpush3.msra.mxu1 %v2191_v36 }
 0x324   : > { %v1668_v27 = vmax.f32 %v1658_v61, 0.0  ;;  %4215 = vmatpush3.msra.mxu0 %v2215_v28  ;;  %3967 = vmatprep.subr.mxu1 %v2206_v38  ;;  %v2187_v61 = vld [vmem:[%s6659_s7 + $0x20] sm:$0xff]  ;;  %v1945_v12 = vsel %vm612_vm0, %v1151_v4, %v1944_v0 }
 0x325   : > { %3968 = vmatpush3.msra.mxu1 %v2190_v2 }
 0x326   : > { %4206 = vmatmul.mubr.msk.f32.gmra.mxu0 %vm854_vm4, %v1668_v27  ;;  %3969 = vmatprep.subr.mxu1 %v2205_v8 }
 0x327   : > { %3970 = vmatpush3.msra.mxu1 %v2189_v16 }
 0x328   : > { %3971 = vmatprep.subr.mxu1 %v2204_v17 }
 0x329   : > { %3972 = vmatpush3.msra.mxu1 %v2188_v56 }
 0x32a   : > { %3973 = vmatprep.subr.mxu1 %v2203_v39 }
 0x32b   : > { %3974 = vmatpush3.msra.mxu1 %v2187_v61 }
 0x3b9   : > { %v4198_v37 = vpop.f32.mrf.mxu0 }
 0x3ba   : > { %v1773_v40 = vadd.f32 %v4198_v37, %v5648_v41 }
 0x3bb   : > { %v1767_v52 = vpop.f32.mrf.mxu0 }
 0x3bc   : > { %v1815_v48 = vrot.slane %v1773_v40, 7  ;;  %v1768_v45 = vadd.f32 %v5648_v41, %v1767_v52 }
 0x3be   : > { %v1832_v3 = vadd.f32 %v1815_v48, %v5275_v11  ;;  %v1833_v9 = vadd.f32 %v1815_v48, %v5280_v13  ;;  %v1814_v14 = vrot.slane %v1768_v45, 7  ;;  %v1921_v45 = vsel %vm587_vm1, %v1127_v20, %v1920_v35 }
 0x3c0   : > { %1849 = vst.msk [vmem:[#allocation2 + $0x20] sm:$0xfe] %vm1846_vm2, %v1832_v3  ;;  %v1830_v11 = vadd.f32 %v1814_v14, %v5292_v18  ;;  %v1831_v13 = vadd.f32 %v1814_v14, %v5294_v19  ;;  %v2202_v18 = vld [vmem:[%s6659_s7 + $0x98] sm:$0xff] }
 0x3c1   : > { %1850 = vst.msk [vmem:[#allocation2 + $0x28] sm:$0x1] %vm502_vm13, %v1833_v9  ;;  %v2186_v19 = vld [vmem:[%s6659_s7 + $0x18] sm:$0xff]  ;;  %3975 = vmatprep.subr.mxu1 %v2202_v18 }
 0x3c2   : > { %1847 = vst.msk [vmem:[#allocation2 + $0x10] sm:$0xfe] %vm1846_vm2, %v1830_v11  ;;  %3976 = vmatpush3.msra.mxu1 %v2186_v19 }
 0x3c3   : > { %1848 = vst.msk [vmem:[#allocation2 + $0x18] sm:$0x1] %vm502_vm13, %v1831_v13  ;;  %3977 = vmatprep.subr.mxu1 %v2201_v15 }
 0x3c4   : > { %3978 = vmatpush3.msra.mxu1 %v2185_v33 }
 0x3c5   : > { %3979 = vmatprep.subr.mxu1 %v2200_v32 }
 0x3c6   : > { %3980 = vmatpush3.msra.mxu1 %v2184_v25 }
 0x3c7   : > { %v5681_v27 = vld [vmem:[#allocation2 + $0x20] sm:$0xff]  ;;  %3981 = vmatprep.subr.mxu1 %v2199_v10 }
 0x3c8   : > { %v5686_v26 = vld [vmem:[#allocation2 + $0x28] sm:$0x3]  ;;  %v5692_v28 = vmax.f32 %v5681_v27, 0.0  ;;  %3982 = vmatpush3.msra.mxu1 %v2183_v62 }
 0x3c9   : > { %v1888_v30 = vmax.f32 %v5686_v26, 0.0  ;;  %v5698_v43 = vld [vmem:[#allocation2 + $0x10] sm:$0xff] }
 0x3ca   : > { %v5700_v4 = vld [vmem:[#allocation2 + $0x18] sm:$0x3]  ;;  %v4405_v31 = vpack.i.bf16 %v1945_v12, %v5692_v28  ;;  %v1949_v34 = vrot.slane %v5692_v28, 2  ;;  %v5708_v1 = vmax.f32 %v5698_v43, 0.0  ;;  %v1925_v29 = vrot.slane %v5692_v28, 1 }
 0x3cb   : > { %v1950_v63 = vrot.slane %v1888_v30, 2  ;;  %v1926_v53 = vrot.slane %v1888_v30, 1  ;;  %v1886_v54 = vmax.f32 %v5700_v4, 0.0 }
 0x3cc   : > { %4406 = vrot.lane.b32.xlu1 %v4405_v31, %s4782_s16  ;;  %v1922_v38 = vrot.slane %v5708_v1, 1  ;;  %v1946_v2 = vrot.slane %v5708_v1, 2 }
 0x3cd   : > { %v5723_v36 = vsel %vm612_vm0, %v1949_v34, %v1950_v63  ;;  %v5730_v8 = vsel %vm587_vm1, %v1925_v29, %v1926_v53  ;;  %v1923_v37 = vrot.slane %v1886_v54, 1  ;;  %v1947_v40 = vrot.slane %v1886_v54, 2 }
 0x3ce   : > { %4216 = vmatprep.mubr.msk.f32.mxu0 %vm495_vm10, %v5723_v36  ;;  %v4410_v52 = vpack.i.bf16 %v5708_v1, %v5730_v8 }
 0x3cf   : > { %v5735_v48 = vsel %vm587_vm1, %v1922_v38, %v1923_v37  ;;  %v1948_v59 = vsel %vm612_vm0, %v1946_v2, %v1947_v40 }
 0x3d0   : > { %4411 = vrot.lane.b32.xlu0 %v4410_v52, %s4783_s17  ;;  %v4420_v3 = vpack.i.bf16 %v5735_v48, %v5723_v36  ;;  %v4415_v9 = vpack.i.bf16 %v1921_v45, %v1948_v59 }
 0x3d2   : > { %4421 = vrot.lane.b32.xlu1 %v4420_v3, %s4780_s22 }
 0x3d4   : > { %4416 = vrot.lane.b32.xlu0 %v4415_v9, %s4780_s22 }
 0x3d6   : > { %v4201_v14 = vpop.f32.mrf.mxu0 }
 0x3d7   : > { %v1783_v51 = vadd.f32 %v4201_v14, %v5648_v41 }
 0x3d8   : > { %v1777_v16 = vpop.f32.mrf.mxu0 }
 0x3d9   : > { %v1817_v17 = vrot.slane %v1783_v51, 7  ;;  %v1778_v56 = vadd.f32 %v5648_v41, %v1777_v16 }
 0x3db   : > { %v1836_v20 = vadd.f32 %v1817_v17, %v5340_v46  ;;  %v1837_v11 = vadd.f32 %v1817_v17, %v5342_v47  ;;  %v1816_v13 = vrot.slane %v1778_v56, 7 }
 0x3dd   : > { %1853 = vst.msk [vmem:[#allocation2 + $0x40] sm:$0xfe] %vm1846_vm2, %v1836_v20  ;;  %v1834_v0 = vadd.f32 %v1816_v13, %v5348_v49  ;;  %v1835_v39 = vadd.f32 %v1816_v13, %v5350_v50 }
 0x3de   : > { %1854 = vst.msk [vmem:[#allocation2 + $0x48] sm:$0x1] %vm502_vm13, %v1837_v11  ;;  %v4204_v61 = vpop.f32.mrf.mxu0 }
 0x3df   : > { %1851 = vst.msk [vmem:[#allocation2 + $0x30] sm:$0xfe] %vm1846_vm2, %v1834_v0  ;;  %v1793_v18 = vadd.f32 %v4204_v61, %v5648_v41 }
 0x3e0   : > { %1852 = vst.msk [vmem:[#allocation2 + $0x38] sm:$0x1] %vm502_vm13, %v1835_v39  ;;  %v1787_v19 = vpop.f32.mrf.mxu0 }
 0x3e1   : > { %v1819_v46 = vrot.slane %v1793_v18, 7  ;;  %v1788_v47 = vadd.f32 %v5648_v41, %v1787_v19 }
 0x3e3   : > { %v1840_v12 = vadd.f32 %v1819_v46, %v5385_v21  ;;  %v1841_v15 = vadd.f32 %v1819_v46, %v5387_v22  ;;  %v1818_v30 = vrot.slane %v1788_v47, 7 }
 0x3e4   : > { %v5760_v33 = vld [vmem:[#allocation2 + $0x40] sm:$0xff] }
 0x3e5   : > { %v5762_v49 = vld [vmem:[#allocation2 + $0x48] sm:$0x3]  ;;  %1857 = vst.msk [vmem:[#allocation2 + $0x60] sm:$0xfe] %vm1846_vm2, %v1840_v12  ;;  %v1838_v50 = vadd.f32 %v1818_v30, %v5393_v23  ;;  %v1839_v32 = vadd.f32 %v1818_v30, %v5395_v24  ;;  %v5769_v31 = vmax.f32 %v5760_v33, 0.0 }
 0x3e6   : > { %1858 = vst.msk [vmem:[#allocation2 + $0x68] sm:$0x1] %vm502_vm13, %v1841_v15  ;;  %v1892_v21 = vmax.f32 %v5762_v49, 0.0  ;;  %v4207_v34 = vpop.f32.mrf.mxu0  ;;  %v5772_v22 = vld [vmem:[#allocation2 + $0x30] sm:$0xff] }
 0x3e7   : > { %v5774_v63 = vld [vmem:[#allocation2 + $0x38] sm:$0x3]  ;;  %1855 = vst.msk [vmem:[#allocation2 + $0x50] sm:$0xfe] %vm1846_vm2, %v1838_v50  ;;  %v1803_v25 = vadd.f32 %v4207_v34, %v5648_v41  ;;  %v4425_v23 = vpack.i.bf16 %v5723_v36, %v5769_v31  ;;  %v5782_v24 = vmax.f32 %v5772_v22, 0.0  ;;  %v1955_v29 = vrot.slane %v5769_v31, 2 }
 0x3e8   : > { %1856 = vst.msk [vmem:[#allocation2 + $0x58] sm:$0x1] %vm502_vm13, %v1839_v32  ;;  %v1890_v10 = vmax.f32 %v5774_v63, 0.0  ;;  %v1797_v62 = vpop.f32.mrf.mxu0  ;;  %v1956_v53 = vrot.slane %v1892_v21, 2  ;;  %v1931_v54 = vrot.slane %v5769_v31, 1  ;;  %v1932_v35 = vrot.slane %v1892_v21, 1 }
 0x3e9   : > { %v1821_v38 = vrot.slane %v1803_v25, 7  ;;  %v1798_v2 = vadd.f32 %v5648_v41, %v1797_v62  ;;  %4426 = vrot.lane.b32.xlu1 %v4425_v23, %s4782_s16  ;;  %v4430_v37 = vpack.i.bf16 %v1948_v59, %v5782_v24  ;;  %v1952_v36 = vrot.slane %v5782_v24, 2 }
 0x3ea   : > { %v1953_v40 = vrot.slane %v1890_v10, 2  ;;  %v1928_v52 = vrot.slane %v5782_v24, 1  ;;  %v1929_v45 = vrot.slane %v1890_v10, 1  ;;  %v5796_v51 = vsel %vm587_vm1, %v1931_v54, %v1932_v35 }
 0x3eb   : > { %v1844_v3 = vadd.f32 %v1821_v38, %v5432_v57  ;;  %v1845_v9 = vadd.f32 %v1821_v38, %v5435_v60  ;;  %v1820_v14 = vrot.slane %v1798_v2, 7  ;;  %4431 = vrot.lane.b32.xlu0 %v4430_v37, %s4782_s16  ;;  %v1957_v59 = vsel %vm612_vm0, %v1955_v29, %v1956_v53 }
 0x3ec   : > { %v1954_v41 = vsel %vm612_vm0, %v1952_v36, %v1953_v40  ;;  %v5799_v16 = vld [vmem:[#allocation2 + $0x60] sm:$0xff]  ;;  %v5803_v17 = vsel %vm587_vm1, %v1928_v52, %v1929_v45  ;;  %v4435_v57 = vpack.i.bf16 %v5782_v24, %v5796_v51 }
 0x3ed   : > { %v5807_v56 = vld [vmem:[#allocation2 + $0x68] sm:$0x3]  ;;  %1861 = vst.msk [vmem:[#allocation2 + $0x80] sm:$0xfe] %vm1846_vm2, %v1844_v3  ;;  %v1842_v60 = vadd.f32 %v1820_v14, %v5439_v5  ;;  %v1843_v20 = vadd.f32 %v1820_v14, %v5441_v7  ;;  %4217 = vmatmul.mubr.msk.f32.vlgmr.msra.gmra.mxu0 %vm495_vm10, %v1954_v41  ;;  %v5815_v11 = vmax.f32 %v5799_v16, 0.0  ;;  %v4440_v13 = vpack.i.bf16 %v5692_v28, %v5803_v17 }
 0x3ee   : > { %1862 = vst.msk [vmem:[#allocation2 + $0x88] sm:$0x1] %vm502_vm13, %v1845_v9  ;;  %4219 = vmatprep.mubr.msk.f32.mxu0 %vm495_vm10, %v1957_v59  ;;  %v5820_v0 = vld [vmem:[#allocation2 + $0x50] sm:$0xff]  ;;  %v1896_v61 = vmax.f32 %v5807_v56, 0.0  ;;  %v4450_v46 = vpack.i.bf16 %v5803_v17, %v1957_v59  ;;  %v4445_v47 = vpack.i.bf16 %v5730_v8, %v1954_v41 }
 0x3ef   : > { %v5822_v39 = vld [vmem:[#allocation2 + $0x58] sm:$0x3]  ;;  %1859 = vst.msk [vmem:[#allocation2 + $0x70] sm:$0xfe] %vm1846_vm2, %v1842_v60  ;;  %4441 = vrot.lane.b32.xlu1 %v4440_v13, %s4783_s17  ;;  %4436 = vrot.lane.b32.xlu0 %v4435_v57, %s4783_s17  ;;  %v5830_v5 = vmax.f32 %v5820_v0, 0.0  ;;  %v1961_v18 = vrot.slane %v5815_v11, 2  ;;  %v4455_v62 = vpack.i.bf16 %v1957_v59, %v5815_v11 }
 0x3f0   : > { %1860 = vst.msk [vmem:[#allocation2 + $0x78] sm:$0x1] %vm502_vm13, %v1843_v20  ;;  %v1894_v7 = vmax.f32 %v5822_v39, 0.0  ;;  %v1962_v19 = vrot.slane %v1896_v61, 2  ;;  %v1938_v50 = vrot.slane %v1896_v61, 1  ;;  %v1937_v21 = vrot.slane %v5815_v11, 1 }
 0x3f1   : > { %v1958_v12 = vrot.slane %v5830_v5, 2  ;;  %v1934_v32 = vrot.slane %v5830_v5, 1  ;;  %v4460_v53 = vpack.i.bf16 %v1954_v41, %v5830_v5 }
 0x3f2   : > { %v1959_v15 = vrot.slane %v1894_v7, 2  ;;  %v1935_v30 = vrot.slane %v1894_v7, 1  ;;  %v1963_v23 = vsel %vm612_vm0, %v1961_v18, %v1962_v19  ;;  %v5859_v2 = vsel %vm587_vm1, %v1937_v21, %v1938_v50  ;;  %v1882_v7 = vld [vmem:[#allocation2 + $0x98] sm:$0x3] }
 0x3f3   : > { %4451 = vrot.lane.b32.xlu1 %v4450_v46, %s4780_s22  ;;  %4446 = vrot.lane.b32.xlu0 %v4445_v47, %s4780_s22  ;;  %v4465_v9 = vpack.i.bf16 %v5830_v5, %v5859_v2 }
 0x3f4   : > { %v1960_v34 = vsel %vm612_vm0, %v1958_v12, %v1959_v15  ;;  %v5843_v25 = vld [vmem:[#allocation2 + $0x80] sm:$0xff]  ;;  %v5856_v38 = vsel %vm587_vm1, %v1934_v32, %v1935_v30  ;;  %v1902_v15 = vmax.f32 %v1882_v7, 0.0 }
 0x3f5   : > { %4220 = vmatmul.mubr.msk.f32.gmra.mxu0 %vm495_vm10, %v1960_v34  ;;  %v5846_v10 = vld [vmem:[#allocation2 + $0x88] sm:$0x3]  ;;  %v1899_v29 = vmax.f32 %v5843_v25, 0.0  ;;  %v4470_v3 = vpack.i.bf16 %v5769_v31, %v5856_v38  ;;  %v4475_v60 = vpack.i.bf16 %v5796_v51, %v1960_v34  ;;  %v4480_v20 = vpack.i.bf16 %v5856_v38, %v1963_v23 }
 0x3f6   : > { %4222 = vmatprep.mubr.msk.f32.mxu0 %vm495_vm10, %v1963_v23  ;;  %v1900_v54 = vmax.f32 %v5846_v10, 0.0  ;;  %v5853_v35 = vld [vmem:[#allocation2 + $0x70] sm:$0xff]  ;;  %v1989_v32 = vrot.slane %v1902_v15, 2 }
 0x3f7   : > { %v5861_v37 = vld [vmem:[#allocation2 + $0x78] sm:$0x3]  ;;  %v5864_v36 = vmax.f32 %v5853_v35, 0.0  ;;  %4456 = vrot.lane.b32.xlu1 %v4455_v62, %s4782_s16  ;;  %4461 = vrot.lane.b32.xlu0 %v4460_v53, %s4782_s16  ;;  %v1980_v52 = vrot.slane %v1899_v29, 2  ;;  %v4485_v19 = vpack.i.bf16 %v1963_v23, %v1899_v29  ;;  %v1969_v12 = vrot.slane %v1899_v29, 1 }
 0x3f8   : > { %v1898_v40 = vmax.f32 %v5861_v37, 0.0  ;;  %v1981_v45 = vrot.slane %v1900_v54, 2  ;;  %v1970_v47 = vrot.slane %v1900_v54, 1  ;;  %v1990_v23 = vsel %vm612_vm0, %v1196_v55, %v1989_v32 }
 0x3f9   : > { %v1964_v14 = vrot.slane %v5864_v36, 2  ;;  %v1940_v13 = vrot.slane %v5864_v36, 1  ;;  %v4490_v18 = vpack.i.bf16 %v1960_v34, %v5864_v36  ;;  %v1986_v34 = vrot.slane %v1902_v15, 1 }
 0x3fa   : > { %v1965_v41 = vrot.slane %v1898_v40, 2  ;;  %v1982_v57 = vsel %vm612_vm0, %v1980_v52, %v1981_v45  ;;  %v1941_v61 = vrot.slane %v1898_v40, 1  ;;  %v5895_v21 = vsel %vm587_vm1, %v1969_v12, %v1970_v47 }
 0x3fb   : > { %4471 = vrot.lane.b32.xlu1 %v4470_v3, %s4783_s17  ;;  %4466 = vrot.lane.b32.xlu0 %v4465_v9, %s4783_s17  ;;  %v4505_v53 = vpack.i.bf16 %v5864_v36, %v5895_v21  ;;  %v1987_v54 = vsel %vm587_vm1, %v1193_v42, %v1986_v34 }
 0x3fc   : > { %v1966_v59 = vsel %vm612_vm0, %v1964_v14, %v1965_v41  ;;  %v5887_v46 = vsel %vm587_vm1, %v1940_v13, %v1941_v61  ;;  %v4520_v52 = vpack.i.bf16 %v1899_v29, %v1987_v54 }
 0x3fd   : > { %4223 = vmatmul.mubr.msk.f32.gmra.mxu0 %vm495_vm10, %v1966_v59  ;;  %v4500_v30 = vpack.i.bf16 %v5859_v2, %v1966_v59  ;;  %v4495_v50 = vpack.i.bf16 %v5815_v11, %v5887_v46  ;;  %v4510_v62 = vpack.i.bf16 %v5887_v46, %v1982_v57  ;;  %v4515_v40 = vpack.i.bf16 %v1966_v59, %v5471_v44 }
 0x3fe   : > { %4225 = vmatprep.mubr.msk.f32.mxu0 %vm495_vm10, %v1982_v57 }
 0x3ff   : > { %4481 = vrot.lane.b32.xlu1 %v4480_v20, %s4780_s22  ;;  %4476 = vrot.lane.b32.xlu0 %v4475_v60, %s4780_s22 }
 0x401   : > { %4226 = vmatmul.mubr.msk.f32.gmra.mxu0 %vm495_vm10, %v1990_v23 }
 0x403   : > { %4486 = vrot.lane.b32.xlu1 %v4485_v19, %s4782_s16  ;;  %4491 = vrot.lane.b32.xlu0 %v4490_v18, %s4782_s16 }
 0x407   : > { %4496 = vrot.lane.b32.xlu1 %v4495_v50, %s4783_s17  ;;  %4501 = vrot.lane.b32.xlu0 %v4500_v30, %s4780_s22 }
 0x40b   : > { %4511 = vrot.lane.b32.xlu1 %v4510_v62, %s4780_s22  ;;  %4506 = vrot.lane.b32.xlu0 %v4505_v53, %s4783_s17 }
 0x40f   : > { %4521 = vrot.lane.b32.xlu1 %v4520_v52, %s4783_s17  ;;  %4516 = vrot.lane.b32.xlu0 %v4515_v40, %s4782_s16 }
 0x43e   : > { %v4407_v45 = vpop.permute.xlu1 %4406 }
 0x43f   : > { %v4409_v41 = vunpack.i.h.bf16 %v4407_v45  ;;  %v4408_v57 = vunpack.i.l.bf16 %v4407_v45 }
 0x442   : > { %v4412_v55 = vpop.permute.xlu0 %4411 }
 0x443   : > { %v4414_v60 = vunpack.i.h.bf16 %v4412_v55  ;;  %v4413_v42 = vunpack.i.l.bf16 %v4412_v55 }
 0x444   : > { %v4422_v7 = vpop.permute.xlu1 %4421 }
 0x445   : > { %v4424_v47 = vunpack.i.h.bf16 %v4422_v7  ;;  %v4423_v12 = vunpack.i.l.bf16 %v4422_v7 }
 0x446   : > { %v4417_v3 = vpop.permute.xlu0 %4416 }
 0x447   : > { %v4419_v9 = vunpack.i.h.bf16 %v4417_v3  ;;  %v4418_v14 = vunpack.i.l.bf16 %v4417_v3  ;;  %v2160_v34 = vsel %vm495_vm10, %v5730_v8, %v4423_v12  ;;  %v2136_v23 = vsel %vm495_vm10, %v5708_v1, %v4424_v47 }
 0x449   : > { %v2135_v20 = vsel %vm495_vm10, %v5248_v58, %v4419_v9  ;;  %v2159_v44 = vsel %vm495_vm10, %v5735_v48, %v4418_v14 }
 0x44a   : > { %v2167_v29 = vsel %vm523_vm14, %v2159_v44, %v4408_v57  ;;  %v2143_v59 = vsel %vm523_vm14, %v2135_v20, %v4409_v41 }
 0x44b   : > { %v2175_v13 = vsel %vm1359_vm15, %v2167_v29, %v4413_v42  ;;  %v2151_v61 = vsel %vm1359_vm15, %v2143_v59, %v4414_v60 }
 0x44c   : > { %2306 = vmatprep.mubr.f32.mxu1 %v2175_v13 }
 0x44d   : > { %2307 = vmatmul.mubr.f32.vlgmr.msra.gmra.mxu1 %v2151_v61 }
 0x45b   : > { %v4427_v18 = vpop.permute.xlu1 %4426 }
 0x45c   : > { %v4429_v9 = vunpack.i.h.bf16 %v4427_v18  ;;  %v4428_v14 = vunpack.i.l.bf16 %v4427_v18 }
 0x45d   : > { %v4432_v19 = vpop.permute.xlu0 %4431 }
 0x45e   : > { %v4434_v15 = vunpack.i.h.bf16 %v4432_v19  ;;  %v4433_v58 = vunpack.i.l.bf16 %v4432_v19 }
 0x460   : > { %v2168_v62 = vsel %vm523_vm14, %v2160_v34, %v4433_v58  ;;  %v2144_v53 = vsel %vm523_vm14, %v2136_v23, %v4434_v15 }
 0x461   : > { %v4442_v30 = vpop.permute.xlu1 %4441  ;;  %v4437_v50 = vpop.permute.xlu0 %4436 }
 0x462   : > { %v4444_v48 = vunpack.i.h.bf16 %v4442_v30  ;;  %v4443_v32 = vunpack.i.l.bf16 %v4442_v30  ;;  %v4439_v41 = vunpack.i.h.bf16 %v4437_v50  ;;  %v4438_v57 = vunpack.i.l.bf16 %v4437_v50 }
 0x464   : > { %v2176_v54 = vsel %vm1359_vm15, %v2168_v62, %v4443_v32  ;;  %v2152_v40 = vsel %vm1359_vm15, %v2144_v53, %v4444_v48 }
 0x465   : > { %v4452_v52 = vpop.permute.xlu1 %4451  ;;  %2311 = vmatprep.mubr.f32.mxu1 %v2176_v54  ;;  %v4447_v55 = vpop.permute.xlu0 %4446 }
 0x466   : > { %v4449_v45 = vunpack.i.h.bf16 %v4447_v55  ;;  %v4448_v3 = vunpack.i.l.bf16 %v4447_v55  ;;  %2312 = vmatmul.mubr.f32.gmra.mxu1 %v2152_v40  ;;  %v4454_v29 = vunpack.i.h.bf16 %v4452_v52  ;;  %v4453_v59 = vunpack.i.l.bf16 %v4452_v52 }
 0x468   : > { %v2161_v8 = vsel %vm495_vm10, %v5803_v17, %v4448_v3  ;;  %v2137_v1 = vsel %vm495_vm10, %v5692_v28, %v4449_v45  ;;  %v2162_v12 = vsel %vm495_vm10, %v5796_v51, %v4453_v59  ;;  %v2138_v15 = vsel %vm495_vm10, %v5782_v24, %v4454_v29 }
 0x469   : > { %v4457_v60 = vpop.permute.xlu1 %4456  ;;  %v4462_v42 = vpop.permute.xlu0 %4461  ;;  %v2169_v20 = vsel %vm523_vm14, %v2161_v8, %v4428_v14  ;;  %v2145_v44 = vsel %vm523_vm14, %v2137_v1, %v4429_v9 }
 0x46a   : > { %v4464_v13 = vunpack.i.h.bf16 %v4462_v42  ;;  %v4463_v61 = vunpack.i.l.bf16 %v4462_v42  ;;  %v2177_v7 = vsel %vm1359_vm15, %v2169_v20, %v4438_v57  ;;  %v2153_v18 = vsel %vm1359_vm15, %v2145_v44, %v4439_v41 }
 0x46b   : > { %2316 = vmatprep.mubr.f32.mxu1 %v2177_v7  ;;  %v4459_v53 = vunpack.i.h.bf16 %v4457_v60  ;;  %v4458_v54 = vunpack.i.l.bf16 %v4457_v60 }
 0x46c   : > { %2317 = vmatmul.mubr.f32.gmra.mxu1 %v2153_v18  ;;  %v2170_v58 = vsel %vm523_vm14, %v2162_v12, %v4463_v61  ;;  %v2146_v30 = vsel %vm523_vm14, %v2138_v15, %v4464_v13 }
 0x46d   : > { %v4472_v17 = vpop.permute.xlu1 %4471  ;;  %v4467_v28 = vpop.permute.xlu0 %4466 }
 0x46e   : > { %v4474_v19 = vunpack.i.h.bf16 %v4472_v17  ;;  %v4473_v47 = vunpack.i.l.bf16 %v4472_v17  ;;  %v4469_v51 = vunpack.i.h.bf16 %v4467_v28  ;;  %v4468_v40 = vunpack.i.l.bf16 %v4467_v28 }
 0x470   : > { %v2178_v50 = vsel %vm1359_vm15, %v2170_v58, %v4473_v47  ;;  %v2154_v48 = vsel %vm1359_vm15, %v2146_v30, %v4474_v19 }
 0x471   : > { %v4482_v32 = vpop.permute.xlu1 %4481  ;;  %2321 = vmatprep.mubr.f32.mxu1 %v2178_v50  ;;  %v4477_v34 = vpop.permute.xlu0 %4476 }
 0x472   : > { %v4479_v23 = vunpack.i.h.bf16 %v4477_v34  ;;  %v4478_v62 = vunpack.i.l.bf16 %v4477_v34  ;;  %2322 = vmatmul.mubr.f32.gmra.mxu1 %v2154_v48  ;;  %v4484_v55 = vunpack.i.h.bf16 %v4482_v32  ;;  %v4483_v45 = vunpack.i.l.bf16 %v4482_v32 }
 0x474   : > { %v2163_v24 = vsel %vm495_vm10, %v5856_v38, %v4478_v62  ;;  %v2139_v52 = vsel %vm495_vm10, %v5769_v31, %v4479_v23  ;;  %v2164_v31 = vsel %vm495_vm10, %v5859_v2, %v4483_v45  ;;  %v2140_v20 = vsel %vm495_vm10, %v5830_v5, %v4484_v55 }
 0x475   : > { %v4487_v3 = vpop.permute.xlu1 %4486  ;;  %v4492_v9 = vpop.permute.xlu0 %4491  ;;  %v2171_v14 = vsel %vm523_vm14, %v2163_v24, %v4458_v54  ;;  %v2147_v8 = vsel %vm523_vm14, %v2139_v52, %v4459_v53 }
 0x476   : > { %v4494_v1 = vunpack.i.h.bf16 %v4492_v9  ;;  %v4493_v41 = vunpack.i.l.bf16 %v4492_v9  ;;  %v2179_v57 = vsel %vm1359_vm15, %v2171_v14, %v4468_v40  ;;  %v2155_v60 = vsel %vm1359_vm15, %v2147_v8, %v4469_v51  ;;  %v2460_v9 = vld [vmem:[%s6661_s9] sm:$0xff] }
 0x477   : > { %2326 = vmatprep.mubr.f32.mxu1 %v2179_v57  ;;  %v4489_v19 = vunpack.i.h.bf16 %v4487_v3  ;;  %v4488_v5 = vunpack.i.l.bf16 %v4487_v3  ;;  %4228 = vmatprep.subr.mxu0 %v2460_v9 }
 0x478   : > { %2327 = vmatmul.mubr.f32.gmra.mxu1 %v2155_v60  ;;  %v2172_v61 = vsel %vm523_vm14, %v2164_v31, %v4493_v41  ;;  %v2148_v7 = vsel %vm523_vm14, %v2140_v20, %v4494_v1  ;;  %4229 = vmatpush3.msra.mxu0 %v2460_v9 }
 0x479   : > { %v4497_v42 = vpop.permute.xlu1 %4496  ;;  %v4502_v38 = vpop.permute.xlu0 %4501 }
 0x47a   : > { %v4499_v44 = vunpack.i.h.bf16 %v4497_v42  ;;  %v4498_v29 = vunpack.i.l.bf16 %v4497_v42  ;;  %v4504_v59 = vunpack.i.h.bf16 %v4502_v38  ;;  %v4503_v13 = vunpack.i.l.bf16 %v4502_v38 }
 0x47c   : > { %v2180_v18 = vsel %vm1359_vm15, %v2172_v61, %v4498_v29  ;;  %v2156_v17 = vsel %vm1359_vm15, %v2148_v7, %v4499_v44  ;;  %v2165_v28 = vsel %vm495_vm10, %v5887_v46, %v4503_v13  ;;  %v2141_v2 = vsel %vm495_vm10, %v5815_v11, %v4504_v59 }
 0x47d   : > { %v4512_v47 = vpop.permute.xlu1 %4511  ;;  %2331 = vmatprep.mubr.f32.mxu1 %v2180_v18  ;;  %v4507_v12 = vpop.permute.xlu0 %4506  ;;  %v2173_v48 = vsel %vm523_vm14, %v2165_v28, %v4488_v5  ;;  %v2149_v32 = vsel %vm523_vm14, %v2141_v2, %v4489_v19 }
 0x47e   : > { %v4509_v15 = vunpack.i.h.bf16 %v4507_v12  ;;  %v4508_v58 = vunpack.i.l.bf16 %v4507_v12  ;;  %2332 = vmatmul.mubr.f32.gmra.mxu1 %v2156_v17  ;;  %v4514_v30 = vunpack.i.h.bf16 %v4512_v47  ;;  %v4513_v50 = vunpack.i.l.bf16 %v4512_v47 }
 0x480   : > { %v2181_v34 = vsel %vm1359_vm15, %v2173_v48, %v4508_v58  ;;  %v2157_v46 = vsel %vm1359_vm15, %v2149_v32, %v4509_v15  ;;  %v2166_v40 = vsel %vm495_vm10, %v5895_v21, %v4513_v50  ;;  %v2142_v24 = vsel %vm495_vm10, %v5864_v36, %v4514_v30  ;;  %v3830_v36 = vld [vmem:[%s6660_s8] ss:$0 sm:$0xff] }
 0x481   : > { %v4522_v23 = vpop.permute.xlu1 %4521  ;;  %v4517_v11 = vpop.permute.xlu0 %4516  ;;  %2336 = vmatprep.mubr.f32.mxu1 %v2181_v34 }
 0x482   : > { %v4519_v62 = vunpack.i.h.bf16 %v4517_v11  ;;  %v4518_v53 = vunpack.i.l.bf16 %v4517_v11  ;;  %2337 = vmatmul.mubr.f32.gmra.mxu1 %v2157_v46  ;;  %v4524_v54 = vunpack.i.h.bf16 %v4522_v23  ;;  %v4523_v51 = vunpack.i.l.bf16 %v4522_v23 }
 0x484   : > { %v2174_v52 = vsel %vm523_vm14, %v2166_v40, %v4518_v53  ;;  %v2150_v55 = vsel %vm523_vm14, %v2142_v24, %v4519_v62 }
 0x485   : > { %v2182_v45 = vsel %vm1359_vm15, %v2174_v52, %v4523_v51  ;;  %v2158_v3 = vsel %vm1359_vm15, %v2150_v55, %v4524_v54 }
 0x486   : > { %2341 = vmatprep.mubr.f32.mxu1 %v2182_v45 }
 0x487   : > { %2342 = vmatmul.mubr.f32.gmra.mxu1 %v2158_v3 }
 0x4ad   : > { %v4218_v14 = vpop.f32.mrf.mxu0 }
 0x4af   : > { %v2413_v57 = vpop.f32.mrf.mxu0 }
 0x4b5   : > { %v4221_v13 = vpop.f32.mrf.mxu0 }
 0x4b7   : > { %v2423_v2 = vpop.f32.mrf.mxu0 }
 0x4bd   : > { %v4224_v50 = vpop.f32.mrf.mxu0 }
 0x4bf   : > { %v2433_v11 = vpop.f32.mrf.mxu0 }
 0x4c1   : > { %v4227_v24 = vpop.f32.mrf.mxu0 }
 0x4c3   : > { %v2443_v9 = vpop.f32.mrf.mxu0 }
 0x50d   : > { %v3983_v21 = vpop.f32.mrf.mxu1 }
 0x50f   : > { %v3984_v8 = vpop.f32.mrf.mxu1 }
 0x510   : > { %v3985_v1 = vadd.f32 %v3984_v8, %v3983_v21 }
 0x512   : > { %v2309_v41 = vadd.f32 %v3985_v1, %v3830_v36 }
 0x514   : > { %v2414_v60 = vadd.f32 %v2413_v57, %v2309_v41 }
 0x516   : > { %v2452_v42 = vmax.f32 %v2414_v60, 0.0 }
 0x518   : > { %4230 = vmatprep.mubr.msk.f32.mxu0 %vm854_vm4, %v2452_v42 }
 0x526   : > { %v3986_v38 = vpop.f32.mrf.mxu1 }
 0x528   : > { %v3987_v31 = vpop.f32.mrf.mxu1 }
 0x529   : > { %v3988_v20 = vadd.f32 %v3987_v31, %v3986_v38 }
 0x52b   : > { %v2314_v44 = vadd.f32 %v3988_v20, %v3830_v36  ;;  %v3008_v20 = vld [vmem:[%s6663_s11 + $0x118] sm:$0xff] }
 0x52c   : > { %v3989_v59 = vpop.f32.mrf.mxu1  ;;  %4242 = vmatprep.subr.mxu0 %v3008_v20 }
 0x52d   : > { %v2419_v29 = vadd.f32 %v4218_v14, %v2314_v44  ;;  %v3007_v44 = vld [vmem:[%s6663_s11 + $0x110] sm:$0xff] }
 0x52e   : > { %v3990_v7 = vpop.f32.mrf.mxu1 }
 0x52f   : > { %v2453_v61 = vmax.f32 %v2419_v29, 0.0  ;;  %v3991_v18 = vadd.f32 %v3990_v7, %v3989_v59  ;;  %v3005_v29 = vld [vmem:[%s6663_s11 + $0x100] sm:$0xff]  ;;  %v3004_v59 = vld [vmem:[%s6663_s11 + $0xf8] sm:$0xff]  ;;  %v2987_v7 = vld [vmem:[%s6663_s11 + $0x70] sm:$0xff] }
 0x530   : > { %4028 = vmatprep.subr.mxu1 %v3004_v59 }
 0x531   : > { %4231 = vmatmul.mubr.msk.f32.vlgmr.msra.gmra.mxu0 %vm854_vm4, %v2453_v61  ;;  %v2319_v17 = vadd.f32 %v3991_v18, %v3830_v36  ;;  %v3003_v61 = vld [vmem:[%s6663_s11 + $0xf0] sm:$0xff]  ;;  %v3002_v18 = vld [vmem:[%s6663_s11 + $0xe8] sm:$0xff] }
 0x532   : > { %v3992_v28 = vpop.f32.mrf.mxu1  ;;  %4243 = vmatpush3.msra.mxu0 %v3008_v20 }
 0x533   : > { %v2424_v19 = vadd.f32 %v2423_v2, %v2319_v17  ;;  %4244 = vmatprep.subr.mxu0 %v3007_v44  ;;  %v2986_v17 = vld [vmem:[%s6663_s11 + $0x68] sm:$0xff]  ;;  %v2985_v2 = vld [vmem:[%s6663_s11 + $0x60] sm:$0xff] }
 0x534   : > { %v3993_v5 = vpop.f32.mrf.mxu1  ;;  %4245 = vmatpush3.msra.mxu0 %v3007_v44 }
 0x535   : > { %v3994_v47 = vadd.f32 %v3993_v5, %v3992_v28  ;;  %v2454_v12 = vmax.f32 %v2424_v19, 0.0  ;;  %v3001_v28 = vld [vmem:[%s6663_s11 + $0xe0] sm:$0xff]  ;;  %v3000_v19 = vld [vmem:[%s6663_s11 + $0xd8] sm:$0xff] }
 0x536   : > { %v2984_v5 = vld [vmem:[%s6663_s11 + $0x58] sm:$0xff] }
 0x537   : > { %v2324_v15 = vadd.f32 %v3994_v47, %v3830_v36  ;;  %4233 = vmatprep.mubr.msk.f32.mxu0 %vm854_vm4, %v2454_v12  ;;  %v2999_v47 = vld [vmem:[%s6663_s11 + $0xd0] sm:$0xff] }
 0x538   : > { %v3995_v30 = vpop.f32.mrf.mxu1  ;;  %v2983_v12 = vld [vmem:[%s6663_s11 + $0x50] sm:$0xff] }
 0x539   : > { %v2429_v58 = vadd.f32 %v4221_v13, %v2324_v15  ;;  %v2988_v13 = vld [vmem:[%s6663_s11 + $0x78] sm:$0xff]  ;;  %v2998_v15 = vld [vmem:[%s6663_s11 + $0xc8] sm:$0xff] }
 0x53a   : > { %v3996_v32 = vpop.f32.mrf.mxu1  ;;  %4029 = vmatpush3.msra.mxu1 %v2988_v13 }
 0x53b   : > { %v2455_v48 = vmax.f32 %v2429_v58, 0.0  ;;  %v3997_v34 = vadd.f32 %v3996_v32, %v3995_v30  ;;  %4030 = vmatprep.subr.mxu1 %v3003_v61  ;;  %v2982_v58 = vld [vmem:[%s6663_s11 + $0x48] sm:$0xff]  ;;  %v2997_v30 = vld [vmem:[%s6663_s11 + $0xc0] sm:$0xff]  ;;  %v2980_v32 = vld [vmem:[%s6663_s11 + $0x38] sm:$0xff] }
 0x53c   : > { %4031 = vmatpush3.msra.mxu1 %v2987_v7  ;;  %v2975_v7 = vld [vmem:[%s6663_s11 + $0x10] sm:$0xff] }
 0x53d   : > { %4234 = vmatmul.mubr.msk.f32.gmra.mxu0 %vm854_vm4, %v2455_v48  ;;  %v2329_v46 = vadd.f32 %v3997_v34, %v3830_v36  ;;  %4032 = vmatprep.subr.mxu1 %v3002_v18  ;;  %v2996_v48 = vld [vmem:[%s6663_s11 + $0xb8] sm:$0xff]  ;;  %v2995_v34 = vld [vmem:[%s6663_s11 + $0xb0] sm:$0xff] }
 0x53e   : > { %v3998_v23 = vpop.f32.mrf.mxu1  ;;  %4033 = vmatpush3.msra.mxu1 %v2986_v17 }
 0x53f   : > { %v2434_v62 = vadd.f32 %v2433_v11, %v2329_v46  ;;  %4034 = vmatprep.subr.mxu1 %v3001_v28  ;;  %v6064_v46 = vld [vmem:[%s6662_s10] ss:$0 sm:$0xff] }
 0x540   : > { %v3999_v53 = vpop.f32.mrf.mxu1  ;;  %4035 = vmatpush3.msra.mxu1 %v2985_v2 }
 0x541   : > { %v4000_v54 = vadd.f32 %v3999_v53, %v3998_v23  ;;  %v2456_v51 = vmax.f32 %v2434_v62, 0.0  ;;  %4036 = vmatprep.subr.mxu1 %v3000_v19  ;;  %v2990_v19 = vld [vmem:[%s6663_s11 + $0x88] sm:$0xff] }
 0x542   : > { %v4001_v40 = vpop.f32.mrf.mxu1  ;;  %4037 = vmatpush3.msra.mxu1 %v2984_v5 }
 0x543   : > { %v2334_v52 = vadd.f32 %v4000_v54, %v3830_v36  ;;  %4236 = vmatprep.mubr.msk.f32.mxu0 %vm854_vm4, %v2456_v51  ;;  %4038 = vmatprep.subr.mxu1 %v2999_v47  ;;  %v2653_v51 = vld [vmem:[#allocation2] sm:$0xff] }
 0x544   : > { %v4002_v55 = vpop.f32.mrf.mxu1  ;;  %4039 = vmatpush3.msra.mxu1 %v2983_v12 }
 0x545   : > { %v2439_v45 = vadd.f32 %v4224_v50, %v2334_v52  ;;  %v4003_v3 = vadd.f32 %v4002_v55, %v4001_v40  ;;  %4040 = vmatprep.subr.mxu1 %v2998_v15  ;;  %v2981_v50 = vld [vmem:[%s6663_s11 + $0x40] sm:$0xff]  ;;  %v2654_v40 = vld [vmem:[#allocation2 + $0x8] sm:$0x3] }
 0x546   : > { %4041 = vmatpush3.msra.mxu1 %v2982_v58  ;;  %v2974_v58 = vld [vmem:[%s6663_s11 + $0x8] sm:$0xff] }
 0x547   : > { %v2457_v21 = vmax.f32 %v2439_v45, 0.0  ;;  %v4004_v14 = vpop.f32.mrf.mxu1  ;;  %v2339_v8 = vadd.f32 %v4003_v3, %v3830_v36  ;;  %4042 = vmatprep.subr.mxu1 %v2997_v30  ;;  %v6070_v45 = vmax.f32 %v2653_v51, 0.0  ;;  %v2674_v3 = vmax.f32 %v2654_v40, 0.0  ;;  %v2989_v30 = vld [vmem:[%s6663_s11 + $0x80] sm:$0xff] }
 0x548   : > { %4043 = vmatpush3.msra.mxu1 %v2981_v50 }
 0x549   : > { %v2444_v1 = vadd.f32 %v2443_v9, %v2339_v8  ;;  %4237 = vmatmul.mubr.msk.f32.gmra.mxu0 %vm854_vm4, %v2457_v21  ;;  %v4005_v41 = vpop.f32.mrf.mxu1  ;;  %4044 = vmatprep.subr.mxu1 %v2996_v48  ;;  %v2979_v9 = vld [vmem:[%s6663_s11 + $0x30] sm:$0xff]  ;;  %v2994_v21 = vld [vmem:[%s6663_s11 + $0xa8] sm:$0xff]  ;;  %v2733_v8 = vrot.slane %v6070_v45, 2  ;;  %v2709_v28 = vrot.slane %v6070_v45, 1  ;;  %v2710_v2 = vrot.slane %v2674_v3, 1 }
 0x54a   : > { %v4006_v57 = vadd.f32 %v4005_v41, %v4004_v14  ;;  %4045 = vmatpush3.msra.mxu1 %v2980_v32  ;;  %v2978_v14 = vld [vmem:[%s6663_s11 + $0x28] sm:$0xff]  ;;  %v2993_v41 = vld [vmem:[%s6663_s11 + $0xa0] sm:$0xff] }
 0x54b   : > { %v2458_v60 = vmax.f32 %v2444_v1, 0.0  ;;  %4046 = vmatprep.subr.mxu1 %v2995_v34  ;;  %v2734_v1 = vrot.slane %v2674_v3, 2 }
 0x54c   : > { %v2344_v42 = vadd.f32 %v4006_v57, %v3830_v36  ;;  %v3006_v36 = vld [vmem:[%s6663_s11 + $0x108] sm:$0xff]  ;;  %4047 = vmatpush3.msra.mxu1 %v2979_v9  ;;  %v2992_v57 = vld [vmem:[%s6663_s11 + $0x98] sm:$0xff] }
 0x54d   : > { %4239 = vmatprep.mubr.msk.f32.mxu0 %vm854_vm4, %v2458_v60  ;;  %4246 = vmatprep.subr.mxu0 %v3006_v36  ;;  %v2735_v20 = vsel %vm612_vm0, %v2733_v8, %v2734_v1 }
 0x54e   : > { %v2449_v38 = vadd.f32 %v4227_v24, %v2344_v42  ;;  %4247 = vmatpush3.msra.mxu0 %v3006_v36  ;;  %4048 = vmatprep.subr.mxu1 %v2994_v21  ;;  %v2976_v42 = vld [vmem:[%s6663_s11 + $0x18] sm:$0xff]  ;;  %v2991_v36 = vld [vmem:[%s6663_s11 + $0x90] sm:$0xff] }
 0x54f   : > { %4248 = vmatprep.subr.mxu0 %v3005_v29  ;;  %4049 = vmatpush3.msra.mxu1 %v2978_v14 }
 0x550   : > { %v2459_v31 = vmax.f32 %v2449_v38, 0.0  ;;  %4249 = vmatpush3.msra.mxu0 %v3005_v29  ;;  %4050 = vmatprep.subr.mxu1 %v2993_v41 }
 0x552   : > { %4240 = vmatmul.mubr.msk.f32.gmra.mxu0 %vm854_vm4, %v2459_v31  ;;  %vm530_vm4 = vcmask 516096  }
 0x553   : > { %540 = vst.msk [vmem:[#allocation3 + $0x90] sm:$0x1] %vm530_vm4, %v4781_v6  ;;  %531 = vst.msk [vmem:[#allocation3] sm:$0x1] %vm530_vm4, %v4781_v6 }
 0x554   : > { %532 = vst.msk [vmem:[#allocation3 + $0x10] sm:$0x1] %vm530_vm4, %v4781_v6  ;;  %533 = vst.msk [vmem:[#allocation3 + $0x20] sm:$0x1] %vm530_vm4, %v4781_v6 }
 0x555   : > { %534 = vst.msk [vmem:[#allocation3 + $0x30] sm:$0x1] %vm530_vm4, %v4781_v6  ;;  %535 = vst.msk [vmem:[#allocation3 + $0x40] sm:$0x1] %vm530_vm4, %v4781_v6 }
 0x556   : > { %536 = vst.msk [vmem:[#allocation3 + $0x50] sm:$0x1] %vm530_vm4, %v4781_v6  ;;  %537 = vst.msk [vmem:[#allocation3 + $0x60] sm:$0x1] %vm530_vm4, %v4781_v6 }
 0x557   : > { %538 = vst.msk [vmem:[#allocation3 + $0x70] sm:$0x1] %vm530_vm4, %v4781_v6  ;;  %539 = vst.msk [vmem:[#allocation3 + $0x80] sm:$0x1] %vm530_vm4, %v4781_v6 }
 0x558   : > { %542 = vst.msk [vmem:[#allocation3 + $0x19] sm:$0x1] %vm530_vm4, %v4781_v6  ;;  %543 = vst.msk [vmem:[#allocation3 + $0x29] sm:$0x1] %vm530_vm4, %v4781_v6 }
 0x559   : > { %544 = vst.msk [vmem:[#allocation3 + $0x39] sm:$0x1] %vm530_vm4, %v4781_v6  ;;  %545 = vst.msk [vmem:[#allocation3 + $0x49] sm:$0x1] %vm530_vm4, %v4781_v6 }
 0x55a   : > { %546 = vst.msk [vmem:[#allocation3 + $0x59] sm:$0x1] %vm530_vm4, %v4781_v6  ;;  %547 = vst.msk [vmem:[#allocation3 + $0x69] sm:$0x1] %vm530_vm4, %v4781_v6 }
 0x55b   : > { %548 = vst.msk [vmem:[#allocation3 + $0x79] sm:$0x1] %vm530_vm4, %v4781_v6  ;;  %549 = vst.msk [vmem:[#allocation3 + $0x89] sm:$0x1] %vm530_vm4, %v4781_v6 }
 0x55c   : > { %541 = vst.msk [vmem:[#allocation3 + $0x9] sm:$0x1] %vm530_vm4, %v4781_v6  ;;  %550 = vst.msk [vmem:[#allocation3 + $0x99] sm:$0x1] %vm530_vm4, %v4781_v6  ;;  %v3601_v6 = vld [vmem:[%s6665_s13 + $0x70] sm:$0xff] }
 0x5f1   : > { %v4232_v23 = vpop.f32.mrf.mxu0 }
 0x5f2   : > { %v2564_v11 = vadd.f32 %v4232_v23, %v6064_v46 }
 0x5f3   : > { %v2558_v62 = vpop.f32.mrf.mxu0 }
 0x5f4   : > { %v2606_v53 = vrot.slane %v2564_v11, 7  ;;  %v2559_v54 = vadd.f32 %v6064_v46, %v2558_v62 }
 0x5f6   : > { %v2623_v24 = vadd.f32 %v2606_v53, %v5681_v27  ;;  %v2624_v52 = vadd.f32 %v2606_v53, %v5686_v26  ;;  %v2605_v55 = vrot.slane %v2559_v54, 7 }
 0x5f8   : > { %2639 = vst.msk [vmem:[#allocation2 + $0x20] sm:$0xfe] %vm1846_vm2, %v2623_v24  ;;  %v2621_v27 = vadd.f32 %v2605_v55, %v5698_v43  ;;  %v2622_v26 = vadd.f32 %v2605_v55, %v5700_v4  ;;  %v2977_v43 = vld [vmem:[%s6663_s11 + $0x20] sm:$0xff]  ;;  %v2711_v55 = vsel %vm587_vm1, %v2709_v28, %v2710_v2 }
 0x5f9   : > { %2640 = vst.msk [vmem:[#allocation2 + $0x28] sm:$0x1] %vm502_vm13, %v2624_v52  ;;  %4051 = vmatpush3.msra.mxu1 %v2977_v43 }
 0x5fa   : > { %2637 = vst.msk [vmem:[#allocation2 + $0x10] sm:$0xfe] %vm1846_vm2, %v2621_v27  ;;  %4052 = vmatprep.subr.mxu1 %v2992_v57 }
 0x5fb   : > { %2638 = vst.msk [vmem:[#allocation2 + $0x18] sm:$0x1] %vm502_vm13, %v2622_v26  ;;  %4053 = vmatpush3.msra.mxu1 %v2976_v42 }
 0x5fc   : > { %4054 = vmatprep.subr.mxu1 %v2991_v36 }
 0x5fd   : > { %v4235_v4 = vpop.f32.mrf.mxu0  ;;  %4055 = vmatpush3.msra.mxu1 %v2975_v7 }
 0x5fe   : > { %v2574_v60 = vadd.f32 %v4235_v4, %v6064_v46  ;;  %4056 = vmatprep.subr.mxu1 %v2990_v19 }
 0x5ff   : > { %v2568_v38 = vpop.f32.mrf.mxu0  ;;  %v2657_v31 = vld [vmem:[#allocation2 + $0x20] sm:$0xff]  ;;  %4057 = vmatpush3.msra.mxu1 %v2974_v58 }
 0x600   : > { %v2658_v44 = vld [vmem:[#allocation2 + $0x28] sm:$0x3]  ;;  %v2608_v29 = vrot.slane %v2574_v60, 7  ;;  %v2569_v59 = vadd.f32 %v6064_v46, %v2568_v38  ;;  %v6106_v13 = vmax.f32 %v2657_v31, 0.0  ;;  %4058 = vmatprep.subr.mxu1 %v2989_v30 }
 0x601   : > { %v2678_v61 = vmax.f32 %v2658_v44, 0.0  ;;  %v2655_v18 = vld [vmem:[#allocation2 + $0x10] sm:$0xff] }
 0x602   : > { %v2656_v17 = vld [vmem:[#allocation2 + $0x18] sm:$0x3]  ;;  %v2627_v5 = vadd.f32 %v2608_v29, %v5760_v33  ;;  %v2628_v47 = vadd.f32 %v2608_v29, %v5762_v49  ;;  %v2607_v12 = vrot.slane %v2569_v59, 7  ;;  %v4525_v15 = vpack.i.bf16 %v2735_v20, %v6106_v13  ;;  %v2973_v33 = vld [vmem:[%s6663_s11] sm:$0xff] }
 0x603   : > { %v2716_v50 = vrot.slane %v2678_v61, 1  ;;  %v2739_v48 = vrot.slane %v6106_v13, 2  ;;  %v2740_v32 = vrot.slane %v2678_v61, 2  ;;  %v6125_v34 = vmax.f32 %v2655_v18, 0.0  ;;  %4059 = vmatpush3.msra.mxu1 %v2973_v33 }
 0x604   : > { %2643 = vst.msk [vmem:[#allocation2 + $0x40] sm:$0xfe] %vm1846_vm2, %v2627_v5  ;;  %v2625_v49 = vadd.f32 %v2607_v12, %v5772_v22  ;;  %v2626_v23 = vadd.f32 %v2607_v12, %v5774_v63  ;;  %4526 = vrot.lane.b32.xlu1 %v4525_v15, %s4782_s16  ;;  %v2676_v11 = vmax.f32 %v2656_v17, 0.0  ;;  %v2715_v62 = vrot.slane %v6106_v13, 1 }
 0x605   : > { %2644 = vst.msk [vmem:[#allocation2 + $0x48] sm:$0x1] %vm502_vm13, %v2628_v47  ;;  %v2741_v53 = vsel %vm612_vm0, %v2739_v48, %v2740_v32  ;;  %v2712_v54 = vrot.slane %v6125_v34, 1  ;;  %v2736_v51 = vrot.slane %v6125_v34, 2 }
 0x606   : > { %2641 = vst.msk [vmem:[#allocation2 + $0x30] sm:$0xfe] %vm1846_vm2, %v2625_v49  ;;  %4250 = vmatprep.mubr.msk.f32.mxu0 %vm495_vm10, %v2741_v53  ;;  %v2713_v22 = vrot.slane %v2676_v11, 1  ;;  %v6143_v63 = vsel %vm587_vm1, %v2715_v62, %v2716_v50  ;;  %v2737_v40 = vrot.slane %v2676_v11, 2 }
 0x607   : > { %2642 = vst.msk [vmem:[#allocation2 + $0x38] sm:$0x1] %vm502_vm13, %v2626_v23  ;;  %v4530_v24 = vpack.i.bf16 %v6125_v34, %v6143_v63 }
 0x608   : > { %v6148_v52 = vsel %vm587_vm1, %v2712_v54, %v2713_v22  ;;  %v2738_v3 = vsel %vm612_vm0, %v2736_v51, %v2737_v40 }
 0x609   : > { %v4540_v9 = vpack.i.bf16 %v6148_v52, %v2741_v53  ;;  %4531 = vrot.lane.b32.xlu0 %v4530_v24, %s4783_s17  ;;  %v4238_v21 = vpop.f32.mrf.mxu0  ;;  %v4535_v8 = vpack.i.bf16 %v2711_v55, %v2738_v3 }
 0x60a   : > { %v2584_v14 = vadd.f32 %v4238_v21, %v6064_v46 }
 0x60b   : > { %v2661_v27 = vld [vmem:[#allocation2 + $0x40] sm:$0xff]  ;;  %4541 = vrot.lane.b32.xlu1 %v4540_v9, %s4780_s22  ;;  %v2578_v26 = vpop.f32.mrf.mxu0 }
 0x60c   : > { %v2662_v1 = vld [vmem:[#allocation2 + $0x48] sm:$0x3]  ;;  %v6156_v41 = vmax.f32 %v2661_v27, 0.0  ;;  %v2610_v43 = vrot.slane %v2584_v14, 7  ;;  %v2579_v4 = vadd.f32 %v6064_v46, %v2578_v26 }
 0x60d   : > { %v2682_v57 = vmax.f32 %v2662_v1, 0.0  ;;  %4536 = vrot.lane.b32.xlu0 %v4535_v8, %s4780_s22  ;;  %v2659_v60 = vld [vmem:[#allocation2 + $0x30] sm:$0xff] }
 0x60e   : > { %v2660_v42 = vld [vmem:[#allocation2 + $0x38] sm:$0x3]  ;;  %v4545_v38 = vpack.i.bf16 %v2741_v53, %v6156_v41  ;;  %v2631_v31 = vadd.f32 %v2610_v43, %v5799_v16  ;;  %v2632_v20 = vadd.f32 %v2610_v43, %v5807_v56  ;;  %v2609_v44 = vrot.slane %v2579_v4, 7 }
 0x60f   : > { %v6163_v36 = vmax.f32 %v2659_v60, 0.0  ;;  %v2680_v29 = vmax.f32 %v2660_v42, 0.0  ;;  %v2722_v59 = vrot.slane %v2682_v57, 1  ;;  %v2745_v61 = vrot.slane %v6156_v41, 2 }
 0x610   : > { %2647 = vst.msk [vmem:[#allocation2 + $0x60] sm:$0xfe] %vm1846_vm2, %v2631_v31  ;;  %v2629_v7 = vadd.f32 %v2609_v44, %v5820_v0  ;;  %v2630_v18 = vadd.f32 %v2609_v44, %v5822_v39  ;;  %4546 = vrot.lane.b32.xlu1 %v4545_v38, %s4782_s16  ;;  %v2746_v16 = vrot.slane %v2682_v57, 2  ;;  %v2721_v56 = vrot.slane %v6156_v41, 1 }
 0x611   : > { %2648 = vst.msk [vmem:[#allocation2 + $0x68] sm:$0x1] %vm502_vm13, %v2632_v20  ;;  %v4550_v17 = vpack.i.bf16 %v2738_v3, %v6163_v36  ;;  %v2742_v28 = vrot.slane %v6163_v36, 2  ;;  %v2743_v2 = vrot.slane %v2680_v29, 2  ;;  %v2718_v19 = vrot.slane %v6163_v36, 1 }
 0x612   : > { %2645 = vst.msk [vmem:[#allocation2 + $0x50] sm:$0xfe] %vm1846_vm2, %v2629_v7  ;;  %v4241_v5 = vpop.f32.mrf.mxu0  ;;  %v2719_v0 = vrot.slane %v2680_v29, 1  ;;  %v6178_v39 = vsel %vm587_vm1, %v2721_v56, %v2722_v59  ;;  %v2747_v15 = vsel %vm612_vm0, %v2745_v61, %v2746_v16 }
 0x613   : > { %2646 = vst.msk [vmem:[#allocation2 + $0x58] sm:$0x1] %vm502_vm13, %v2630_v18  ;;  %4551 = vrot.lane.b32.xlu0 %v4550_v17, %s4782_s16  ;;  %v2594_v47 = vadd.f32 %v4241_v5, %v6064_v46  ;;  %v2744_v12 = vsel %vm612_vm0, %v2742_v28, %v2743_v2  ;;  %v4555_v33 = vpack.i.bf16 %v6163_v36, %v6178_v39 }
 0x614   : > { %4251 = vmatmul.mubr.msk.f32.vlgmr.msra.gmra.mxu0 %vm495_vm10, %v2744_v12  ;;  %v6186_v58 = vsel %vm587_vm1, %v2718_v19, %v2719_v0  ;;  %v2588_v30 = vpop.f32.mrf.mxu0  ;;  %v4565_v22 = vpack.i.bf16 %v6143_v63, %v2744_v12  ;;  %v2671_v0 = vld [vmem:[#allocation2 + $0x90] sm:$0xff] }
 0x615   : > { %v2612_v50 = vrot.slane %v2594_v47, 7  ;;  %4253 = vmatprep.mubr.msk.f32.mxu0 %vm495_vm10, %v2747_v15  ;;  %v2589_v48 = vadd.f32 %v6064_v46, %v2588_v30  ;;  %v4560_v32 = vpack.i.bf16 %v6106_v13, %v6186_v58  ;;  %v4570_v51 = vpack.i.bf16 %v6186_v58, %v2747_v15  ;;  %v2672_v30 = vld [vmem:[#allocation2 + $0x98] sm:$0x3] }
 0x617   : > { %v2635_v49 = vadd.f32 %v2612_v50, %v5843_v25  ;;  %v2636_v23 = vadd.f32 %v2612_v50, %v5846_v10  ;;  %v2665_v11 = vld [vmem:[#allocation2 + $0x60] sm:$0xff]  ;;  %v2611_v62 = vrot.slane %v2589_v48, 7  ;;  %4561 = vrot.lane.b32.xlu1 %v4560_v32, %s4783_s17  ;;  %4556 = vrot.lane.b32.xlu0 %v4555_v33, %s4783_s17  ;;  %v2691_v33 = vmax.f32 %v2671_v0, 0.0 }
 0x618   : > { %v2666_v53 = vld [vmem:[#allocation2 + $0x68] sm:$0x3]  ;;  %v6198_v54 = vmax.f32 %v2665_v11, 0.0 }
 0x619   : > { %v2686_v46 = vmax.f32 %v2666_v53, 0.0  ;;  %2651 = vst.msk [vmem:[#allocation2 + $0x80] sm:$0xfe] %vm1846_vm2, %v2635_v49  ;;  %v2633_v25 = vadd.f32 %v2611_v62, %v5853_v35  ;;  %v2634_v10 = vadd.f32 %v2611_v62, %v5861_v37  ;;  %v2663_v40 = vld [vmem:[#allocation2 + $0x50] sm:$0xff]  ;;  %v2692_v62 = vmax.f32 %v2672_v30, 0.0 }
 0x61a   : > { %2652 = vst.msk [vmem:[#allocation2 + $0x88] sm:$0x1] %vm502_vm13, %v2636_v23  ;;  %v2664_v24 = vld [vmem:[#allocation2 + $0x58] sm:$0x3]  ;;  %v6206_v55 = vmax.f32 %v2663_v40, 0.0  ;;  %v4575_v21 = vpack.i.bf16 %v2747_v15, %v6198_v54  ;;  %v2751_v35 = vrot.slane %v6198_v54, 2 }
 0x61b   : > { %v2684_v3 = vmax.f32 %v2664_v24, 0.0  ;;  %v2728_v9 = vrot.slane %v2686_v46, 1  ;;  %2649 = vst.msk [vmem:[#allocation2 + $0x70] sm:$0xfe] %vm1846_vm2, %v2633_v25  ;;  %4571 = vrot.lane.b32.xlu1 %v4570_v51, %s4780_s22  ;;  %4566 = vrot.lane.b32.xlu0 %v4565_v22, %s4780_s22  ;;  %v2752_v37 = vrot.slane %v2686_v46, 2  ;;  %v2727_v14 = vrot.slane %v6198_v54, 1 }
 0x61c   : > { %2650 = vst.msk [vmem:[#allocation2 + $0x78] sm:$0x1] %vm502_vm13, %v2634_v10  ;;  %v4580_v27 = vpack.i.bf16 %v2744_v12, %v6206_v55  ;;  %v2748_v8 = vrot.slane %v6206_v55, 2  ;;  %v2724_v43 = vrot.slane %v6206_v55, 1  ;;  %v2778_v53 = vrot.slane %v2691_v33, 2 }
 0x61d   : > { %v2725_v26 = vrot.slane %v2684_v3, 1  ;;  %v2749_v1 = vrot.slane %v2684_v3, 2  ;;  %v6220_v57 = vsel %vm587_vm1, %v2727_v14, %v2728_v9  ;;  %v2753_v38 = vsel %vm612_vm0, %v2751_v35, %v2752_v37 }
 0x61e   : > { %v4585_v29 = vpack.i.bf16 %v6206_v55, %v6220_v57  ;;  %v2779_v46 = vrot.slane %v2692_v62, 2  ;;  %v2775_v22 = vrot.slane %v2691_v33, 1  ;;  %v2776_v40 = vrot.slane %v2692_v62, 1 }
 0x61f   : > { %v2750_v4 = vsel %vm612_vm0, %v2748_v8, %v2749_v1  ;;  %4576 = vrot.lane.b32.xlu1 %v4575_v21, %s4782_s16  ;;  %4581 = vrot.lane.b32.xlu0 %v4580_v27, %s4782_s16  ;;  %v6225_v60 = vsel %vm587_vm1, %v2724_v43, %v2725_v26 }
 0x620   : > { %4254 = vmatmul.mubr.msk.f32.gmra.mxu0 %vm495_vm10, %v2750_v4  ;;  %v2669_v42 = vld [vmem:[#allocation2 + $0x80] sm:$0xff]  ;;  %v4590_v31 = vpack.i.bf16 %v6156_v41, %v6225_v60  ;;  %v4595_v28 = vpack.i.bf16 %v6178_v39, %v2750_v4  ;;  %v4600_v2 = vpack.i.bf16 %v6225_v60, %v2753_v38  ;;  %v2780_v24 = vsel %vm612_vm0, %v2778_v53, %v2779_v46 }
 0x621   : > { %v2670_v20 = vld [vmem:[#allocation2 + $0x88] sm:$0x3]  ;;  %v2689_v44 = vmax.f32 %v2669_v42, 0.0  ;;  %4256 = vmatprep.mubr.msk.f32.mxu0 %vm495_vm10, %v2753_v38  ;;  %v2777_v21 = vsel %vm587_vm1, %v2775_v22, %v2776_v40 }
 0x622   : > { %v2690_v59 = vmax.f32 %v2670_v20, 0.0  ;;  %v2667_v61 = vld [vmem:[#allocation2 + $0x70] sm:$0xff] }
 0x623   : > { %v2668_v7 = vld [vmem:[#allocation2 + $0x78] sm:$0x3]  ;;  %v6234_v18 = vmax.f32 %v2667_v61, 0.0  ;;  %4591 = vrot.lane.b32.xlu1 %v4590_v31, %s4783_s17  ;;  %4586 = vrot.lane.b32.xlu0 %v4585_v29, %s4783_s17  ;;  %v2770_v56 = vrot.slane %v2689_v44, 2  ;;  %v4605_v32 = vpack.i.bf16 %v2753_v38, %v2689_v44  ;;  %v2759_v11 = vrot.slane %v2689_v44, 1 }
 0x624   : > { %v2688_v16 = vmax.f32 %v2668_v7, 0.0  ;;  %v2771_v17 = vrot.slane %v2690_v59, 2  ;;  %v2760_v23 = vrot.slane %v2690_v59, 1  ;;  %v4640_v37 = vpack.i.bf16 %v2689_v44, %v2777_v21 }
 0x625   : > { %v2754_v19 = vrot.slane %v6234_v18, 2  ;;  %v2730_v47 = vrot.slane %v6234_v18, 1  ;;  %v4610_v48 = vpack.i.bf16 %v2750_v4, %v6234_v18 }
 0x626   : > { %v2755_v5 = vrot.slane %v2688_v16, 2  ;;  %v2731_v12 = vrot.slane %v2688_v16, 1  ;;  %v2772_v50 = vsel %vm612_vm0, %v2770_v56, %v2771_v17  ;;  %v6258_v10 = vsel %vm587_vm1, %v2759_v11, %v2760_v23 }
 0x627   : > { %4601 = vrot.lane.b32.xlu1 %v4600_v2, %s4780_s22  ;;  %4596 = vrot.lane.b32.xlu0 %v4595_v28, %s4780_s22  ;;  %v4625_v9 = vpack.i.bf16 %v6234_v18, %v6258_v10 }
 0x628   : > { %v2756_v15 = vsel %vm612_vm0, %v2754_v19, %v2755_v5  ;;  %v6250_v49 = vsel %vm587_vm1, %v2730_v47, %v2731_v12 }
 0x629   : > { %4257 = vmatmul.mubr.msk.f32.gmra.mxu0 %vm495_vm10, %v2756_v15  ;;  %v4620_v51 = vpack.i.bf16 %v6220_v57, %v2756_v15  ;;  %v4615_v25 = vpack.i.bf16 %v6198_v54, %v6250_v49  ;;  %v4630_v3 = vpack.i.bf16 %v6250_v49, %v2772_v50  ;;  %v4635_v35 = vpack.i.bf16 %v2756_v15, %v2691_v33 }
 0x62a   : > { %4259 = vmatprep.mubr.msk.f32.mxu0 %vm495_vm10, %v2772_v50 }
 0x62b   : > { %4606 = vrot.lane.b32.xlu1 %v4605_v32, %s4782_s16  ;;  %4611 = vrot.lane.b32.xlu0 %v4610_v48, %s4782_s16 }
 0x62d   : > { %4260 = vmatmul.mubr.msk.f32.gmra.mxu0 %vm495_vm10, %v2780_v24 }
 0x62f   : > { %4616 = vrot.lane.b32.xlu1 %v4615_v25, %s4783_s17  ;;  %4621 = vrot.lane.b32.xlu0 %v4620_v51, %s4780_s22 }
 0x633   : > { %4631 = vrot.lane.b32.xlu1 %v4630_v3, %s4780_s22  ;;  %4626 = vrot.lane.b32.xlu0 %v4625_v9, %s4783_s17  ;;  %s4784_s22 = smov 48  }
 0x637   : > { %4641 = vrot.lane.b32.xlu1 %v4640_v37, %s4783_s17  ;;  %4636 = vrot.lane.b32.xlu0 %v4635_v35, %s4782_s16  ;;  %s4786_s17 = smov 112  }
 0x676   : > { %v4527_v14 = vpop.permute.xlu1 %4526 }
 0x677   : > { %v4529_v4 = vunpack.i.h.bf16 %v4527_v14  ;;  %v4528_v42 = vunpack.i.l.bf16 %v4527_v14 }
 0x67b   : > { %v4532_v27 = vpop.permute.xlu0 %4531 }
 0x67c   : > { %v4534_v38 = vunpack.i.h.bf16 %v4532_v27  ;;  %v4533_v31 = vunpack.i.l.bf16 %v4532_v27 }
 0x67d   : > { %v4542_v26 = vpop.permute.xlu1 %4541 }
 0x67e   : > { %v4544_v17 = vunpack.i.h.bf16 %v4542_v26  ;;  %v4543_v28 = vunpack.i.l.bf16 %v4542_v26 }
 0x67f   : > { %v4537_v8 = vpop.permute.xlu0 %4536 }
 0x680   : > { %v4539_v1 = vunpack.i.h.bf16 %v4537_v8  ;;  %v4538_v43 = vunpack.i.l.bf16 %v4537_v8  ;;  %v2950_v47 = vsel %vm495_vm10, %v6143_v63, %v4543_v28  ;;  %v2926_v12 = vsel %vm495_vm10, %v6125_v34, %v4544_v17 }
 0x682   : > { %v2925_v20 = vsel %vm495_vm10, %v6070_v45, %v4539_v1  ;;  %v2949_v44 = vsel %vm495_vm10, %v6148_v52, %v4538_v43  ;;  %v4547_v29 = vpop.permute.xlu1 %4546 }
 0x683   : > { %v2957_v59 = vsel %vm523_vm14, %v2949_v44, %v4528_v42  ;;  %v2933_v61 = vsel %vm523_vm14, %v2925_v20, %v4529_v4  ;;  %v4549_v62 = vunpack.i.h.bf16 %v4547_v29  ;;  %v4548_v53 = vunpack.i.l.bf16 %v4547_v29 }
 0x684   : > { %v2965_v7 = vsel %vm1359_vm15, %v2957_v59, %v4533_v31  ;;  %v2941_v16 = vsel %vm1359_vm15, %v2933_v61, %v4534_v38 }
 0x685   : > { %3096 = vmatprep.mubr.f32.mxu1 %v2965_v7  ;;  %v4552_v56 = vpop.permute.xlu0 %4551 }
 0x686   : > { %3097 = vmatmul.mubr.f32.vlgmr.msra.gmra.mxu1 %v2941_v16  ;;  %v4554_v2 = vunpack.i.h.bf16 %v4552_v56  ;;  %v4553_v19 = vunpack.i.l.bf16 %v4552_v56 }
 0x688   : > { %v2958_v15 = vsel %vm523_vm14, %v2950_v47, %v4553_v19  ;;  %v2934_v30 = vsel %vm523_vm14, %v2926_v12, %v4554_v2 }
 0x689   : > { %v4562_v45 = vpop.permute.xlu1 %4561  ;;  %v4557_v5 = vpop.permute.xlu0 %4556 }
 0x68a   : > { %v4564_v0 = vunpack.i.h.bf16 %v4562_v45  ;;  %v4563_v52 = vunpack.i.l.bf16 %v4562_v45  ;;  %v4559_v46 = vunpack.i.h.bf16 %v4557_v5  ;;  %v4558_v51 = vunpack.i.l.bf16 %v4557_v5 }
 0x68c   : > { %v2966_v50 = vsel %vm1359_vm15, %v2958_v15, %v4563_v52  ;;  %v2942_v48 = vsel %vm1359_vm15, %v2934_v30, %v4564_v0 }
 0x68d   : > { %v4572_v32 = vpop.permute.xlu1 %4571  ;;  %3101 = vmatprep.mubr.f32.mxu1 %v2966_v50  ;;  %v4567_v33 = vpop.permute.xlu0 %4566 }
 0x68e   : > { %v4569_v23 = vunpack.i.h.bf16 %v4567_v33  ;;  %v4568_v11 = vunpack.i.l.bf16 %v4567_v33  ;;  %3102 = vmatmul.mubr.f32.gmra.mxu1 %v2942_v48  ;;  %v4574_v3 = vunpack.i.h.bf16 %v4572_v32  ;;  %v4573_v9 = vunpack.i.l.bf16 %v4572_v32 }
 0x690   : > { %v2951_v63 = vsel %vm495_vm10, %v6186_v58, %v4568_v11  ;;  %v2927_v34 = vsel %vm495_vm10, %v6106_v13, %v4569_v23  ;;  %v2952_v8 = vsel %vm495_vm10, %v6178_v39, %v4573_v9  ;;  %v2928_v1 = vsel %vm495_vm10, %v6163_v36, %v4574_v3 }
 0x691   : > { %v4577_v25 = vpop.permute.xlu1 %4576  ;;  %v4582_v22 = vpop.permute.xlu0 %4581  ;;  %v2959_v40 = vsel %vm523_vm14, %v2951_v63, %v4548_v53  ;;  %v2935_v24 = vsel %vm523_vm14, %v2927_v34, %v4549_v62 }
 0x692   : > { %v4584_v21 = vunpack.i.h.bf16 %v4582_v22  ;;  %v4583_v35 = vunpack.i.l.bf16 %v4582_v22  ;;  %v2967_v37 = vsel %vm1359_vm15, %v2959_v40, %v4558_v51  ;;  %v2943_v14 = vsel %vm1359_vm15, %v2935_v24, %v4559_v46 }
 0x693   : > { %3106 = vmatprep.mubr.f32.mxu1 %v2967_v37  ;;  %v4579_v59 = vunpack.i.h.bf16 %v4577_v25  ;;  %v4578_v61 = vunpack.i.l.bf16 %v4577_v25 }
 0x694   : > { %3107 = vmatmul.mubr.f32.gmra.mxu1 %v2943_v14  ;;  %v2960_v43 = vsel %vm523_vm14, %v2952_v8, %v4583_v35  ;;  %v2936_v4 = vsel %vm523_vm14, %v2928_v1, %v4584_v21 }
 0x695   : > { %v4592_v58 = vpop.permute.xlu1 %4591  ;;  %v4587_v13 = vpop.permute.xlu0 %4586 }
 0x696   : > { %v4594_v27 = vunpack.i.h.bf16 %v4592_v58  ;;  %v4593_v26 = vunpack.i.l.bf16 %v4592_v58  ;;  %v4589_v39 = vunpack.i.h.bf16 %v4587_v13  ;;  %v4588_v7 = vunpack.i.l.bf16 %v4587_v13 }
 0x698   : > { %v2968_v42 = vsel %vm1359_vm15, %v2960_v43, %v4593_v26  ;;  %v2944_v38 = vsel %vm1359_vm15, %v2936_v4, %v4594_v27  ;;  %v3602_v4 = vld [vmem:[%s6665_s13 + $0x78] sm:$0xff] }
 0x699   : > { %v4602_v31 = vpop.permute.xlu1 %4601  ;;  %3111 = vmatprep.mubr.f32.mxu1 %v2968_v42  ;;  %v4597_v20 = vpop.permute.xlu0 %4596  ;;  %v3617_v42 = vld [vmem:[%s6665_s13 + $0xf0] sm:$0xff] }
 0x69a   : > { %v4599_v44 = vunpack.i.h.bf16 %v4597_v20  ;;  %v4598_v29 = vunpack.i.l.bf16 %v4597_v20  ;;  %3112 = vmatmul.mubr.f32.gmra.mxu1 %v2944_v38  ;;  %v4604_v56 = vunpack.i.h.bf16 %v4602_v31  ;;  %v4603_v17 = vunpack.i.l.bf16 %v4602_v31  ;;  %v3616_v38 = vld [vmem:[%s6665_s13 + $0xe8] sm:$0xff]  ;;  %v3615_v20 = vld [vmem:[%s6665_s13 + $0xe0] sm:$0xff] }
 0x69b   : > { %v3600_v31 = vld [vmem:[%s6665_s13 + $0x68] sm:$0xff] }
 0x69c   : > { %v2953_v36 = vsel %vm495_vm10, %v6225_v60, %v4598_v29  ;;  %v2929_v16 = vsel %vm495_vm10, %v6156_v41, %v4599_v44  ;;  %v2954_v41 = vsel %vm495_vm10, %v6220_v57, %v4603_v17  ;;  %v2930_v15 = vsel %vm495_vm10, %v6206_v55, %v4604_v56  ;;  %v3599_v17 = vld [vmem:[%s6665_s13 + $0x60] sm:$0xff] }
 0x69d   : > { %v4607_v28 = vpop.permute.xlu1 %4606  ;;  %v4612_v2 = vpop.permute.xlu0 %4611  ;;  %v2961_v19 = vsel %vm523_vm14, %v2953_v36, %v4578_v61  ;;  %v2937_v45 = vsel %vm523_vm14, %v2929_v16, %v4579_v59  ;;  %v6406_v59 = vld [vmem:[%s6664_s12] ss:$0 sm:$0xff] }
 0x69e   : > { %v4614_v5 = vunpack.i.h.bf16 %v4612_v2  ;;  %v4613_v0 = vunpack.i.l.bf16 %v4612_v2  ;;  %v2969_v52 = vsel %vm1359_vm15, %v2961_v19, %v4588_v7  ;;  %v2945_v47 = vsel %vm1359_vm15, %v2937_v45, %v4589_v39  ;;  %v3598_v2 = vld [vmem:[%s6665_s13 + $0x58] sm:$0xff] }
 0x69f   : > { %3116 = vmatprep.mubr.f32.mxu1 %v2969_v52  ;;  %v4609_v63 = vunpack.i.h.bf16 %v4607_v28  ;;  %v4608_v55 = vunpack.i.l.bf16 %v4607_v28  ;;  %v3614_v28 = vld [vmem:[%s6665_s13 + $0xd8] sm:$0xff]  ;;  %v3260_v52 = vld [vmem:[#allocation3 + $0x8] sm:$0x3] }
 0x6a0   : > { %3117 = vmatmul.mubr.f32.gmra.mxu1 %v2945_v47  ;;  %v2962_v33 = vsel %vm523_vm14, %v2954_v41, %v4613_v0  ;;  %v2938_v23 = vsel %vm523_vm14, %v2930_v15, %v4614_v5  ;;  %v3259_v0 = vld [vmem:[#allocation3] sm:$0xff]  ;;  %v3613_v47 = vld [vmem:[%s6665_s13 + $0xd0] sm:$0xff]  ;;  %v3612_v41 = vld [vmem:[%s6665_s13 + $0xc8] sm:$0xff] }
 0x6a1   : > { %v4617_v12 = vpop.permute.xlu1 %4616  ;;  %v4622_v60 = vpop.permute.xlu0 %4621  ;;  %v3295_v15 = vrot.slane %v3259_v0, 1 }
 0x6a2   : > { %v4619_v30 = vunpack.i.h.bf16 %v4617_v12  ;;  %v4618_v50 = vunpack.i.l.bf16 %v4617_v12  ;;  %v4624_v48 = vunpack.i.h.bf16 %v4622_v60  ;;  %v4623_v32 = vunpack.i.l.bf16 %v4622_v60  ;;  %v3597_v12 = vld [vmem:[%s6665_s13 + $0x50] sm:$0xff] }
 0x6a4   : > { %v2970_v11 = vsel %vm1359_vm15, %v2962_v33, %v4618_v50  ;;  %v2946_v62 = vsel %vm1359_vm15, %v2938_v23, %v4619_v30  ;;  %v2955_v53 = vsel %vm495_vm10, %v6250_v49, %v4623_v32  ;;  %v2931_v57 = vsel %vm495_vm10, %v6198_v54, %v4624_v48  ;;  %v3596_v50 = vld [vmem:[%s6665_s13 + $0x48] sm:$0xff]  ;;  %v3611_v33 = vld [vmem:[%s6665_s13 + $0xc0] sm:$0xff] }
 0x6a5   : > { %v4632_v34 = vpop.permute.xlu1 %4631  ;;  %3121 = vmatprep.mubr.f32.mxu1 %v2970_v11  ;;  %v4627_v46 = vpop.permute.xlu0 %4626  ;;  %v2963_v24 = vsel %vm523_vm14, %v2955_v53, %v4608_v55  ;;  %v2939_v3 = vsel %vm523_vm14, %v2931_v57, %v4609_v63  ;;  %v3296_v30 = vrot.slane %v3260_v52, 1  ;;  %v3319_v23 = vrot.slane %v3259_v0, 2  ;;  %v3610_v55 = vld [vmem:[%s6665_s13 + $0xb8] sm:$0xff] }
 0x6a6   : > { %v4629_v51 = vunpack.i.h.bf16 %v4627_v46  ;;  %v4628_v25 = vunpack.i.l.bf16 %v4627_v46  ;;  %3122 = vmatmul.mubr.f32.gmra.mxu1 %v2946_v62  ;;  %v4634_v22 = vunpack.i.h.bf16 %v4632_v34  ;;  %v4633_v40 = vunpack.i.l.bf16 %v4632_v34  ;;  %v3595_v62 = vld [vmem:[%s6665_s13 + $0x40] sm:$0xff] }
 0x6a7   : > { %v3320_v11 = vrot.slane %v3260_v52, 2 }
 0x6a8   : > { %v2971_v9 = vsel %vm1359_vm15, %v2963_v24, %v4628_v25  ;;  %v2947_v49 = vsel %vm1359_vm15, %v2939_v3, %v4629_v51  ;;  %v2956_v13 = vsel %vm495_vm10, %v6258_v10, %v4633_v40  ;;  %v2932_v27 = vsel %vm495_vm10, %v6234_v18, %v4634_v22  ;;  %v6378_v18 = vld [vmem:[#allocation3 + $0x90] sm:$0xff]  ;;  %v3618_v10 = vld [vmem:[%s6665_s13 + $0xf8] sm:$0xff] }
 0x6a9   : > { %v4642_v21 = vpop.permute.xlu1 %4641  ;;  %v4637_v54 = vpop.permute.xlu0 %4636  ;;  %3126 = vmatprep.mubr.f32.mxu1 %v2971_v9  ;;  %3512 = vrot.lane.b32.xlu1 %v6378_v18, %s4784_s22  ;;  %v3297_v25 = vsel %vm587_vm1, %v3295_v15, %v3296_v30  ;;  %v3594_v22 = vld [vmem:[%s6665_s13 + $0x38] sm:$0xff]  ;;  %v3588_v30 = vld [vmem:[%s6665_s13 + $0x8] sm:$0xff] }
 0x6aa   : > { %v4639_v35 = vunpack.i.h.bf16 %v4637_v54  ;;  %v4638_v37 = vunpack.i.l.bf16 %v4637_v54  ;;  %3127 = vmatmul.mubr.f32.gmra.mxu1 %v2947_v49  ;;  %v4644_v14 = vunpack.i.h.bf16 %v4642_v21  ;;  %v4643_v58 = vunpack.i.l.bf16 %v4642_v21  ;;  %4096 = vmatprep.subr.mxu0 %v3618_v10  ;;  %v3609_v49 = vld [vmem:[%s6665_s13 + $0xb0] sm:$0xff]  ;;  %v3592_v10 = vld [vmem:[%s6665_s13 + $0x28] sm:$0xff] }
 0x6ab   : > { %4097 = vmatpush3.msra.mxu0 %v3602_v4 }
 0x6ac   : > { %v2964_v26 = vsel %vm523_vm14, %v2956_v13, %v4638_v37  ;;  %v2940_v8 = vsel %vm523_vm14, %v2932_v27, %v4639_v35  ;;  %4098 = vmatprep.subr.mxu0 %v3617_v42  ;;  %v3321_v35 = vsel %vm612_vm0, %v3319_v23, %v3320_v11  ;;  %v3608_v27 = vld [vmem:[%s6665_s13 + $0xa8] sm:$0xff]  ;;  %v3587_v23 = vld [vmem:[%s6665_s13] sm:$0xff] }
 0x6ad   : > { %v2972_v1 = vsel %vm1359_vm15, %v2964_v26, %v4643_v58  ;;  %v2948_v43 = vsel %vm1359_vm15, %v2940_v8, %v4644_v14  ;;  %4099 = vmatpush3.msra.mxu0 %v3601_v6  ;;  %v3593_v14 = vld [vmem:[%s6665_s13 + $0x30] sm:$0xff]  ;;  %v3607_v6 = vld [vmem:[%s6665_s13 + $0xa0] sm:$0xff] }
 0x6ae   : > { %3131 = vmatprep.mubr.f32.mxu1 %v2972_v1  ;;  %4100 = vmatprep.subr.mxu0 %v3616_v38 }
 0x6af   : > { %3132 = vmatmul.mubr.f32.gmra.mxu1 %v2948_v43  ;;  %4101 = vmatpush3.msra.mxu0 %v3600_v31  ;;  %v3591_v31 = vld [vmem:[%s6665_s13 + $0x20] sm:$0xff] }
 0x6b0   : > { %4102 = vmatprep.subr.mxu0 %v3615_v20 }
 0x6b1   : > { %4103 = vmatpush3.msra.mxu0 %v3599_v17 }
 0x6b2   : > { %4104 = vmatprep.subr.mxu0 %v3614_v28  ;;  %v3605_v28 = vld [vmem:[%s6665_s13 + $0x90] sm:$0xff] }
 0x6b3   : > { %4105 = vmatpush3.msra.mxu0 %v3598_v2 }
 0x6b4   : > { %4106 = vmatprep.subr.mxu0 %v3613_v47 }
 0x6b5   : > { %4107 = vmatpush3.msra.mxu0 %v3597_v12  ;;  %v3604_v12 = vld [vmem:[%s6665_s13 + $0x88] sm:$0xff] }
 0x6b6   : > { %4108 = vmatprep.subr.mxu0 %v3612_v41 }
 0x6b7   : > { %4109 = vmatpush3.msra.mxu0 %v3596_v50 }
 0x6b8   : > { %4110 = vmatprep.subr.mxu0 %v3611_v33 }
 0x6b9   : > { %4111 = vmatpush3.msra.mxu0 %v3595_v62 }
 0x6ba   : > { %4112 = vmatprep.subr.mxu0 %v3610_v55 }
 0x6bb   : > { %4113 = vmatpush3.msra.mxu0 %v3594_v22 }
 0x6bc   : > { %4114 = vmatprep.subr.mxu0 %v3609_v49 }
 0x6bd   : > { %4115 = vmatpush3.msra.mxu0 %v3593_v14 }
 0x6be   : > { %4116 = vmatprep.subr.mxu0 %v3608_v27 }
 0x6bf   : > { %4117 = vmatpush3.msra.mxu0 %v3592_v10 }
 0x6c0   : > { %4118 = vmatprep.subr.mxu0 %v3607_v6 }
 0x6c1   : > { %4119 = vmatpush3.msra.mxu0 %v3591_v31 }
 0x6d4   : > { %v4252_v29 = vpop.f32.mrf.mxu0 }
 0x6d6   : > { %v3203_v36 = vpop.f32.mrf.mxu0 }
 0x6e0   : > { %v4255_v53 = vpop.f32.mrf.mxu0 }
 0x6e2   : > { %v3213_v58 = vpop.f32.mrf.mxu0 }
 0x746   : > { %v4060_v44 = vpop.f32.mrf.mxu1 }
 0x748   : > { %v4061_v61 = vpop.f32.mrf.mxu1 }
 0x749   : > { %v4062_v39 = vadd.f32 %v4061_v61, %v4060_v44  ;;  %v3606_v44 = vld [vmem:[%s6665_s13 + $0x98] sm:$0xff] }
 0x74a   : > { %4120 = vmatprep.subr.mxu0 %v3606_v44 }
 0x74b   : > { %v3099_v7 = vadd.f32 %v4062_v39, %v6406_v59  ;;  %v3590_v39 = vld [vmem:[%s6665_s13 + $0x18] sm:$0xff] }
 0x74c   : > { %4121 = vmatpush3.msra.mxu0 %v3590_v39 }
 0x74d   : > { %v3204_v16 = vadd.f32 %v3203_v36, %v3099_v7  ;;  %4122 = vmatprep.subr.mxu0 %v3605_v28 }
 0x74e   : > { %v4063_v56 = vpop.f32.mrf.mxu1 }
 0x74f   : > { %v3242_v19 = vmax.f32 %v3204_v16, 0.0 }
 0x750   : > { %v4064_v45 = vpop.f32.mrf.mxu1 }
 0x751   : > { %3251 = vst.msk [vmem:[#allocation3 + $0x11] sm:$0xff] %vm523_vm14, %v3242_v19  ;;  %v4065_v5 = vadd.f32 %v4064_v45, %v4063_v56  ;;  %v3589_v45 = vld [vmem:[%s6665_s13 + $0x10] sm:$0xff] }
 0x752   : > { %4123 = vmatpush3.msra.mxu0 %v3589_v45 }
 0x753   : > { %v3104_v60 = vadd.f32 %v4065_v5, %v6406_v59  ;;  %v4258_v5 = vpop.f32.mrf.mxu0  ;;  %4124 = vmatprep.subr.mxu0 %v3604_v12 }
 0x754   : > { %v4066_v32 = vpop.f32.mrf.mxu1  ;;  %4125 = vmatpush3.msra.mxu0 %v3588_v30 }
 0x755   : > { %v3209_v48 = vadd.f32 %v4252_v29, %v3104_v60  ;;  %v3223_v11 = vpop.f32.mrf.mxu0 }
 0x756   : > { %v4067_v63 = vpop.f32.mrf.mxu1 }
 0x757   : > { %v3243_v57 = vmax.f32 %v3209_v48, 0.0  ;;  %v4068_v34 = vadd.f32 %v4067_v63, %v4066_v32  ;;  %v3603_v48 = vld [vmem:[%s6665_s13 + $0x80] sm:$0xff] }
 0x758   : > { %v3261_v46 = vld [vmem:[#allocation3 + $0x10] sm:$0xff]  ;;  %v3262_v51 = vld [vmem:[#allocation3 + $0x18] sm:$0x3]  ;;  %4126 = vmatprep.subr.mxu0 %v3603_v48 }
 0x759   : > { %3252 = vst.msk [vmem:[#allocation3 + $0x21] sm:$0xff] %vm523_vm14, %v3243_v57  ;;  %v4645_v40 = vpack.i.bf16 %v3259_v0, %v3261_v46  ;;  %v3298_v24 = vrot.slane %v3261_v46, 1  ;;  %v3299_v3 = vrot.slane %v3262_v51, 1  ;;  %v3322_v9 = vrot.slane %v3261_v46, 2  ;;  %4127 = vmatpush3.msra.mxu0 %v3587_v23 }
 0x75a   : > { %v3109_v21 = vadd.f32 %v4068_v34, %v6406_v59  ;;  %v4069_v54 = vpop.f32.mrf.mxu1  ;;  %v3323_v37 = vrot.slane %v3262_v51, 2 }
 0x75b   : > { %4646 = vrot.lane.b32.xlu0 %v4645_v40, %s4785_s23  ;;  %v6456_v13 = vsel %vm587_vm1, %v3298_v24, %v3299_v3 }
 0x75c   : > { %v3214_v26 = vadd.f32 %v3213_v58, %v3109_v21  ;;  %v4070_v8 = vpop.f32.mrf.mxu1  ;;  %v4650_v1 = vpack.i.bf16 %v3297_v25, %v6456_v13  ;;  %v6463_v43 = vsel %vm612_vm0, %v3322_v9, %v3323_v37  ;;  %v4261_v9 = vpop.f32.mrf.mxu0 }
 0x75d   : > { %v4071_v4 = vadd.f32 %v4070_v8, %v4069_v54  ;;  %v4655_v42 = vpack.i.bf16 %v3321_v35, %v6463_v43 }
 0x75e   : > { %v3244_v38 = vmax.f32 %v3214_v26, 0.0  ;;  %4651 = vrot.lane.b32.xlu1 %v4650_v1, %s4786_s17  ;;  %v3233_v26 = vpop.f32.mrf.mxu0 }
 0x75f   : > { %v3114_v20 = vadd.f32 %v4071_v4, %v6406_v59  ;;  %4656 = vrot.lane.b32.xlu0 %v4655_v42, %s6670_s29 }
 0x760   : > { %3253 = vst.msk [vmem:[#allocation3 + $0x31] sm:$0xff] %vm523_vm14, %v3244_v38  ;;  %v3263_v29 = vld [vmem:[#allocation3 + $0x20] sm:$0xff]  ;;  %v3264_v61 = vld [vmem:[#allocation3 + $0x28] sm:$0x3]  ;;  %v4072_v36 = vpop.f32.mrf.mxu1 }
 0x761   : > { %v3219_v7 = vadd.f32 %v4255_v53, %v3114_v20  ;;  %v4660_v16 = vpack.i.bf16 %v3261_v46, %v3263_v29  ;;  %v3301_v56 = vrot.slane %v3263_v29, 1  ;;  %v3302_v17 = vrot.slane %v3264_v61, 1 }
 0x762   : > { %v3325_v2 = vrot.slane %v3263_v29, 2  ;;  %v3326_v19 = vrot.slane %v3264_v61, 2  ;;  %v4073_v52 = vpop.f32.mrf.mxu1 }
 0x763   : > { %v3245_v0 = vmax.f32 %v3219_v7, 0.0  ;;  %4661 = vrot.lane.b32.xlu1 %v4660_v16, %s4784_s22  ;;  %v3303_v47 = vsel %vm587_vm1, %v3301_v56, %v3302_v17  ;;  %v4074_v60 = vadd.f32 %v4073_v52, %v4072_v36 }
 0x764   : > { %v4665_v41 = vpack.i.bf16 %v3303_v47, %v3263_v29  ;;  %v3327_v15 = vsel %vm612_vm0, %v3325_v2, %v3326_v19 }
 0x765   : > { %3254 = vst.msk [vmem:[#allocation3 + $0x41] sm:$0xff] %vm523_vm14, %v3245_v0  ;;  %v4670_v50 = vpack.i.bf16 %v3327_v15, %v3303_v47  ;;  %v3119_v32 = vadd.f32 %v4074_v60, %v6406_v59 }
 0x766   : > { %v4075_v33 = vpop.f32.mrf.mxu1  ;;  %4666 = vrot.lane.b32.xlu0 %v4665_v41, %s4785_s23 }
 0x767   : > { %4671 = vrot.lane.b32.xlu1 %v4670_v50, %s4786_s17  ;;  %v3265_v62 = vld [vmem:[#allocation3 + $0x30] sm:$0xff]  ;;  %v3266_v53 = vld [vmem:[#allocation3 + $0x38] sm:$0x3]  ;;  %v3224_v57 = vadd.f32 %v3223_v11, %v3119_v32 }
 0x768   : > { %v4076_v63 = vpop.f32.mrf.mxu1  ;;  %v4675_v55 = vpack.i.bf16 %v3265_v62, %v6456_v13  ;;  %v3328_v34 = vrot.slane %v3265_v62, 2  ;;  %v3329_v46 = vrot.slane %v3266_v53, 2  ;;  %v3304_v25 = vrot.slane %v3265_v62, 1 }
 0x769   : > { %v4077_v51 = vadd.f32 %v4076_v63, %v4075_v33  ;;  %v3305_v22 = vrot.slane %v3266_v53, 1  ;;  %v3246_v40 = vmax.f32 %v3224_v57, 0.0 }
 0x76a   : > { %4676 = vrot.lane.b32.xlu0 %v4675_v55, %s4785_s23  ;;  %v4078_v24 = vpop.f32.mrf.mxu1  ;;  %v3330_v3 = vsel %vm612_vm0, %v3328_v34, %v3329_v46 }
 0x76b   : > { %v3124_v49 = vadd.f32 %v4077_v51, %v6406_v59  ;;  %v4680_v21 = vpack.i.bf16 %v3330_v3, %v3327_v15  ;;  %3255 = vst.msk [vmem:[#allocation3 + $0x51] sm:$0xff] %vm523_vm14, %v3246_v40  ;;  %v3306_v37 = vsel %vm587_vm1, %v3304_v25, %v3305_v22 }
 0x76c   : > { %v4079_v54 = vpop.f32.mrf.mxu1  ;;  %v3267_v35 = vld [vmem:[#allocation3 + $0x40] sm:$0xff]  ;;  %v3268_v14 = vld [vmem:[#allocation3 + $0x48] sm:$0x3]  ;;  %v4685_v6 = vpack.i.bf16 %v3306_v37, %v6463_v43 }
 0x76d   : > { %v3229_v58 = vadd.f32 %v4258_v5, %v3124_v49  ;;  %v4080_v13 = vadd.f32 %v4079_v54, %v4078_v24  ;;  %4681 = vrot.lane.b32.xlu1 %v4680_v21, %s6670_s29  ;;  %v4690_v27 = vpack.i.bf16 %v3267_v35, %v3265_v62  ;;  %v3307_v8 = vrot.slane %v3267_v35, 1 }
 0x76e   : > { %v3308_v1 = vrot.slane %v3268_v14, 1  ;;  %v4695_v44 = vpack.i.bf16 %v3267_v35, %v3306_v37  ;;  %v3331_v61 = vrot.slane %v3267_v35, 2  ;;  %v3332_v39 = vrot.slane %v3268_v14, 2 }
 0x76f   : > { %v3247_v10 = vmax.f32 %v3229_v58, 0.0  ;;  %4691 = vrot.lane.b32.xlu0 %v4690_v27, %s4784_s22  ;;  %v4081_v4 = vpop.f32.mrf.mxu1  ;;  %v3129_v42 = vadd.f32 %v4080_v13, %v6406_v59 }
 0x770   : > { %v3309_v38 = vsel %vm587_vm1, %v3307_v8, %v3308_v1  ;;  %v3333_v0 = vsel %vm612_vm0, %v3331_v61, %v3332_v39  ;;  %v3356_v8 = vrot.slane %v6378_v18, 2 }
 0x771   : > { %3256 = vst.msk [vmem:[#allocation3 + $0x61] sm:$0xff] %vm523_vm14, %v3247_v10  ;;  %v3234_v31 = vadd.f32 %v3233_v26, %v3129_v42  ;;  %4686 = vrot.lane.b32.xlu1 %v4685_v6, %s4786_s17  ;;  %v4082_v20 = vpop.f32.mrf.mxu1  ;;  %v4700_v36 = vpack.i.bf16 %v3309_v38, %v3330_v3  ;;  %v3278_v26 = vld [vmem:[#allocation3 + $0x98] sm:$0x3]  ;;  %v3353_v10 = vrot.slane %v6378_v18, 1 }
 0x772   : > { %v4083_v29 = vadd.f32 %v4082_v20, %v4081_v4  ;;  %v3269_v16 = vld [vmem:[#allocation3 + $0x50] sm:$0xff]  ;;  %v3270_v56 = vld [vmem:[#allocation3 + $0x58] sm:$0x3]  ;;  %v3357_v1 = vrot.slane %v3278_v26, 2  ;;  %v3354_v42 = vrot.slane %v3278_v26, 1 }
 0x773   : > { %v3248_v7 = vmax.f32 %v3234_v31, 0.0  ;;  %4696 = vrot.lane.b32.xlu0 %v4695_v44, %s4785_s23  ;;  %v4705_v17 = vpack.i.bf16 %v3269_v16, %v3309_v38  ;;  %v3334_v28 = vrot.slane %v3269_v16, 2  ;;  %v3335_v2 = vrot.slane %v3270_v56, 2  ;;  %v6558_v31 = vpop.permute.xlu1 %3512 }
 0x774   : > { %v3134_v43 = vadd.f32 %v4083_v29, %v6406_v59  ;;  %v3310_v19 = vrot.slane %v3269_v16, 1  ;;  %v3311_v45 = vrot.slane %v3270_v56, 1  ;;  %v3358_v6 = vsel %vm612_vm0, %v3356_v8, %v3357_v1 }
 0x775   : > { %3257 = vst.msk [vmem:[#allocation3 + $0x71] sm:$0xff] %vm523_vm14, %v3248_v7  ;;  %4701 = vrot.lane.b32.xlu1 %v4700_v36, %s4786_s17  ;;  %v3336_v52 = vsel %vm612_vm0, %v3334_v28, %v3335_v2  ;;  %v3355_v38 = vsel %vm587_vm1, %v3353_v10, %v3354_v42 }
 0x776   : > { %v3239_v5 = vadd.f32 %v4261_v9, %v3134_v43  ;;  %v4710_v47 = vpack.i.bf16 %v3336_v52, %v3333_v0  ;;  %v3312_v12 = vsel %vm587_vm1, %v3310_v19, %v3311_v45 }
 0x777   : > { %4706 = vrot.lane.b32.xlu0 %v4705_v17, %s4785_s23  ;;  %v4715_v15 = vpack.i.bf16 %v3312_v12, %v3333_v0 }
 0x778   : > { %v3249_v59 = vmax.f32 %v3239_v5, 0.0  ;;  %v3271_v60 = vld [vmem:[#allocation3 + $0x60] sm:$0xff]  ;;  %v3272_v41 = vld [vmem:[#allocation3 + $0x68] sm:$0x3] }
 0x779   : > { %4711 = vrot.lane.b32.xlu1 %v4710_v47, %s6670_s29  ;;  %v3313_v30 = vrot.slane %v3271_v60, 1  ;;  %v3314_v50 = vrot.slane %v3272_v41, 1  ;;  %v4720_v48 = vpack.i.bf16 %v3271_v60, %v3269_v16  ;;  %v4725_v11 = vpack.i.bf16 %v3271_v60, %v3312_v12 }
 0x77a   : > { %3258 = vst.msk [vmem:[#allocation3 + $0x81] sm:$0xff] %vm523_vm14, %v3249_v59  ;;  %v3337_v57 = vrot.slane %v3271_v60, 2  ;;  %v3338_v63 = vrot.slane %v3272_v41, 2 }
 0x77b   : > { %4716 = vrot.lane.b32.xlu0 %v4715_v15, %s4786_s17  ;;  %v3315_v32 = vsel %vm587_vm1, %v3313_v30, %v3314_v50 }
 0x77c   : > { %v3273_v33 = vld [vmem:[#allocation3 + $0x70] sm:$0xff]  ;;  %v3274_v23 = vld [vmem:[#allocation3 + $0x78] sm:$0x3]  ;;  %v4730_v46 = vpack.i.bf16 %v3315_v32, %v3336_v52  ;;  %v3339_v24 = vsel %vm612_vm0, %v3337_v57, %v3338_v63 }
 0x77d   : > { %4721 = vrot.lane.b32.xlu1 %v4720_v48, %s4784_s22  ;;  %v3340_v62 = vrot.slane %v3273_v33, 2  ;;  %v3341_v53 = vrot.slane %v3274_v23, 2  ;;  %v3316_v55 = vrot.slane %v3273_v33, 1  ;;  %v3317_v34 = vrot.slane %v3274_v23, 1 }
 0x77e   : > { %v4735_v25 = vpack.i.bf16 %v3273_v33, %v3315_v32 }
 0x77f   : > { %4726 = vrot.lane.b32.xlu0 %v4725_v11, %s4785_s23  ;;  %v3342_v51 = vsel %vm612_vm0, %v3340_v62, %v3341_v53  ;;  %v3318_v3 = vsel %vm587_vm1, %v3316_v55, %v3317_v34 }
 0x780   : > { %v4740_v9 = vpack.i.bf16 %v3342_v51, %v3339_v24  ;;  %v4745_v54 = vpack.i.bf16 %v3318_v3, %v3339_v24 }
 0x781   : > { %4731 = vrot.lane.b32.xlu1 %v4730_v46, %s4786_s17  ;;  %v3275_v22 = vld [vmem:[#allocation3 + $0x80] sm:$0xff]  ;;  %v3276_v40 = vld [vmem:[#allocation3 + $0x88] sm:$0x3] }
 0x782   : > { %v3345_v49 = vrot.slane %v3275_v22, 1  ;;  %v3346_v21 = vrot.slane %v3276_v40, 1  ;;  %v4750_v35 = vpack.i.bf16 %v3275_v22, %v3273_v33  ;;  %v3348_v58 = vrot.slane %v3275_v22, 2 }
 0x783   : > { %4736 = vrot.lane.b32.xlu0 %v4735_v25, %s4785_s23  ;;  %v3349_v13 = vrot.slane %v3276_v40, 2 }
 0x784   : > { %v3347_v37 = vsel %vm587_vm1, %v3345_v49, %v3346_v21  ;;  %vm3554_vm1 = vcmask 654336  }
 0x785   : > { %4741 = vrot.lane.b32.xlu1 %v4740_v9, %s6670_s29  ;;  %v4760_v14 = vpack.i.bf16 %v3347_v37, %v3342_v51  ;;  %v4755_v27 = vpack.i.bf16 %v3347_v37, %v3318_v3  ;;  %v3350_v4 = vsel %vm612_vm0, %v3348_v58, %v3349_v13  ;;  %vm3537_vm0 = vcmask 392192  }
 0x787   : > { %4746 = vrot.lane.b32.xlu0 %v4745_v54, %s4786_s17 }
 0x789   : > { %4751 = vrot.lane.b32.xlu1 %v4750_v35, %s4784_s22  ;;  %s3860_s22 = sshll.u32 %s6672_s19, 6 }
 0x78a   : > { %s6631_s28 = scalar_lea.vmem %s6667_s15, %s3860_s22 }
 0x78b   : > { %3503 = vrot.lane.b32.xlu0 %v3275_v22, %s4785_s23 }
 0x78d   : > { %4761 = vrot.lane.b32.xlu1 %v4760_v14, %s4786_s17 }
 0x78f   : > { %4756 = vrot.lane.b32.xlu0 %v4755_v27, %s4785_s23 }
 0x791   : > { %3493 = vrot.lane.b32.xlu1 %v3350_v4, %s4786_s17 }
 0x793   : > { %3509 = vrot.lane.b32.xlu0 %v3350_v4, %s6670_s29 }
 0x795   : > { %3518 = vrot.lane.b32.xlu1 %v3358_v6, %s4786_s17 }
 0x797   : > { %3515 = vrot.lane.b32.xlu0 %v3355_v38, %s4785_s23 }
 0x7cd   : > { %v4647_v20 = vpop.permute.xlu0 %4646 }
 0x7ce   : > { %v4648_v18 = vunpack.i.l.bf16 %v4647_v20  ;;  %v4649_v17 = vunpack.i.h.bf16 %v4647_v20 }
 0x7d0   : > { %v4652_v44 = vpop.permute.xlu1 %4651 }
 0x7d1   : > { %v4653_v29 = vunpack.i.l.bf16 %v4652_v44  ;;  %v4657_v61 = vpop.permute.xlu0 %4656  ;;  %v4654_v16 = vunpack.i.h.bf16 %v4652_v44 }
 0x7d2   : > { %v4658_v7 = vunpack.i.l.bf16 %v4657_v61  ;;  %v4659_v12 = vunpack.i.h.bf16 %v4657_v61 }
 0x7d3   : > { %v3522_v39 = vsel %vm872_vm6, %v4648_v18, %v4653_v29  ;;  %v3521_v5 = vsel %vm872_vm6, %v4649_v17, %v4654_v16 }
 0x7d4   : > { %v3530_v56 = vsel %vm495_vm10, %v3522_v39, %v4653_v29  ;;  %v3529_v30 = vsel %vm495_vm10, %v3521_v5, %v4654_v16 }
 0x7d5   : > { %v4662_v36 = vpop.permute.xlu1 %4661  ;;  %v3539_v2 = vsel %vm3537_vm0, %v3530_v56, %v4658_v7  ;;  %v3538_v23 = vsel %vm3537_vm0, %v3529_v30, %v4659_v12 }
 0x7d6   : > { %v4663_v43 = vunpack.i.l.bf16 %v4662_v36  ;;  %v4664_v50 = vunpack.i.h.bf16 %v4662_v36 }
 0x7d8   : > { %v4667_v28 = vpop.permute.xlu0 %4666  ;;  %v3547_v0 = vsel %vm523_vm14, %v3539_v2, %v4663_v43  ;;  %v3546_v53 = vsel %vm523_vm14, %v3538_v23, %v4664_v50 }
 0x7d9   : > { %v4669_v19 = vunpack.i.h.bf16 %v4667_v28  ;;  %v4672_v45 = vpop.permute.xlu1 %4671  ;;  %v4668_v59 = vunpack.i.l.bf16 %v4667_v28 }
 0x7da   : > { %v4674_v52 = vunpack.i.h.bf16 %v4672_v45  ;;  %v4673_v60 = vunpack.i.l.bf16 %v4672_v45 }
 0x7db   : > { %v3556_v47 = vsel %vm3554_vm1, %v3547_v0, %v4669_v19 }
 0x7dc   : > { %v4677_v41 = vpop.permute.xlu0 %4676  ;;  %v3564_v15 = vsel %vm1359_vm15, %v3556_v47, %v4669_v19  ;;  %v3523_v11 = vsel %vm872_vm6, %v4668_v59, %v4673_v60 }
 0x7dd   : > { %v3573_v48 = vsel %vm3571_vm5, %v3564_v15, %v4674_v52  ;;  %v4678_v32 = vunpack.i.l.bf16 %v4677_v41  ;;  %v3531_v55 = vsel %vm495_vm10, %v3523_v11, %v4673_v60  ;;  %v4679_v51 = vunpack.i.h.bf16 %v4677_v41 }
 0x7de   : > { %3690 = vmatprep.mubr.f32.mxu0 %v3573_v48 }
 0x7df   : > { %v4682_v33 = vpop.permute.xlu1 %4681  ;;  %v3555_v63 = vsel %vm3554_vm1, %v3546_v53, %v4678_v32 }
 0x7e0   : > { %v4683_v62 = vunpack.i.l.bf16 %v4682_v33  ;;  %v3563_v24 = vsel %vm1359_vm15, %v3555_v63, %v4678_v32  ;;  %v4684_v9 = vunpack.i.h.bf16 %v4682_v33 }
 0x7e1   : > { %v4692_v57 = vpop.permute.xlu0 %4691 }
 0x7e2   : > { %v4693_v34 = vunpack.i.l.bf16 %v4692_v57  ;;  %v3540_v25 = vsel %vm3537_vm0, %v3531_v55, %v4683_v62  ;;  %v4694_v26 = vunpack.i.h.bf16 %v4692_v57 }
 0x7e3   : > { %v4687_v46 = vpop.permute.xlu1 %4686 }
 0x7e4   : > { %v4689_v22 = vunpack.i.h.bf16 %v4687_v46  ;;  %v4688_v40 = vunpack.i.l.bf16 %v4687_v46  ;;  %v3548_v35 = vsel %vm523_vm14, %v3540_v25, %v4693_v34 }
 0x7e5   : > { %v4697_v3 = vpop.permute.xlu0 %4696 }
 0x7e6   : > { %v3524_v49 = vsel %vm872_vm6, %v4679_v51, %v4689_v22  ;;  %v4698_v21 = vunpack.i.l.bf16 %v4697_v3  ;;  %v3572_v54 = vsel %vm3571_vm5, %v3563_v24, %v4688_v40  ;;  %v4699_v6 = vunpack.i.h.bf16 %v4697_v3 }
 0x7e7   : > { %v3532_v37 = vsel %vm495_vm10, %v3524_v49, %v4689_v22  ;;  %v4702_v14 = vpop.permute.xlu1 %4701  ;;  %3691 = vmatmul.mubr.f32.vlgmr.msra.gmra.mxu0 %v3572_v54 }
 0x7e8   : > { %v3541_v58 = vsel %vm3537_vm0, %v3532_v37, %v4684_v9  ;;  %v4703_v13 = vunpack.i.l.bf16 %v4702_v14  ;;  %v3557_v27 = vsel %vm3554_vm1, %v3548_v35, %v4698_v21  ;;  %v4704_v8 = vunpack.i.h.bf16 %v4702_v14 }
 0x7e9   : > { %v4707_v1 = vpop.permute.xlu0 %4706  ;;  %v3565_v10 = vsel %vm1359_vm15, %v3557_v27, %v4698_v21  ;;  %v3549_v20 = vsel %vm523_vm14, %v3541_v58, %v4694_v26 }
 0x7ea   : > { %v4708_v4 = vunpack.i.l.bf16 %v4707_v1  ;;  %v3574_v42 = vsel %vm3571_vm5, %v3565_v10, %v4703_v13  ;;  %v3525_v18 = vsel %vm872_vm6, %v4699_v6, %v4704_v8  ;;  %v4709_v39 = vunpack.i.h.bf16 %v4707_v1 }
 0x7eb   : > { %v4712_v38 = vpop.permute.xlu1 %4711  ;;  %3695 = vmatprep.mubr.f32.mxu0 %v3574_v42  ;;  %v3533_v43 = vsel %vm495_vm10, %v3525_v18, %v4704_v8 }
 0x7ec   : > { %3696 = vmatmul.mubr.f32.gmra.mxu0 %v3573_v48  ;;  %v3558_v44 = vsel %vm3554_vm1, %v3549_v20, %v4708_v4  ;;  %v4713_v29 = vunpack.i.l.bf16 %v4712_v38  ;;  %v4714_v0 = vunpack.i.h.bf16 %v4712_v38 }
 0x7ed   : > { %v4717_v61 = vpop.permute.xlu0 %4716  ;;  %v3566_v56 = vsel %vm1359_vm15, %v3558_v44, %v4708_v4 }
 0x7ee   : > { %v4719_v7 = vunpack.i.h.bf16 %v4717_v61  ;;  %v4718_v36 = vunpack.i.l.bf16 %v4717_v61  ;;  %v3542_v19 = vsel %vm3537_vm0, %v3533_v43, %v4713_v29 }
 0x7ef   : > { %v4722_v16 = vpop.permute.xlu1 %4721 }
 0x7f0   : > { %v3526_v17 = vsel %vm872_vm6, %v4709_v39, %v4719_v7  ;;  %v4723_v28 = vunpack.i.l.bf16 %v4722_v16  ;;  %v3575_v2 = vsel %vm3571_vm5, %v3566_v56, %v4718_v36  ;;  %v4724_v12 = vunpack.i.h.bf16 %v4722_v16 }
 0x7f1   : > { %v3534_v45 = vsel %vm495_vm10, %v3526_v17, %v4719_v7  ;;  %v4727_v5 = vpop.permute.xlu0 %4726  ;;  %3700 = vmatprep.mubr.f32.mxu0 %v3575_v2 }
 0x7f2   : > { %v3550_v52 = vsel %vm523_vm14, %v3542_v19, %v4723_v28  ;;  %v4728_v47 = vunpack.i.l.bf16 %v4727_v5  ;;  %3701 = vmatmul.mubr.f32.gmra.mxu0 %v3574_v42  ;;  %v3543_v60 = vsel %vm3537_vm0, %v3534_v45, %v4714_v0  ;;  %v4729_v51 = vunpack.i.h.bf16 %v4727_v5  ;;  %v3857_v45 = vld [vmem:[%s6666_s14] ss:$0 sm:$0xff] }
 0x7f3   : > { %v4732_v59 = vpop.permute.xlu1 %4731  ;;  %v3551_v33 = vsel %vm523_vm14, %v3543_v60, %v4724_v12 }
 0x7f4   : > { %v4733_v41 = vunpack.i.l.bf16 %v4732_v59  ;;  %v3559_v15 = vsel %vm3554_vm1, %v3550_v52, %v4728_v47  ;;  %v4734_v53 = vunpack.i.h.bf16 %v4732_v59 }
 0x7f5   : > { %v4737_v30 = vpop.permute.xlu0 %4736  ;;  %v3567_v50 = vsel %vm1359_vm15, %v3559_v15, %v4728_v47 }
 0x7f6   : > { %v4738_v48 = vunpack.i.l.bf16 %v4737_v30  ;;  %v3576_v32 = vsel %vm3571_vm5, %v3567_v50, %v4733_v41  ;;  %v4739_v57 = vunpack.i.h.bf16 %v4737_v30  ;;  %v3527_v3 = vsel %vm872_vm6, %v4729_v51, %v4734_v53 }
 0x7f7   : > { %v4742_v23 = vpop.permute.xlu1 %4741  ;;  %3705 = vmatprep.mubr.f32.mxu0 %v3576_v32  ;;  %v3535_v58 = vsel %vm495_vm10, %v3527_v3, %v4734_v53 }
 0x7f8   : > { %3706 = vmatmul.mubr.f32.gmra.mxu0 %v3575_v2  ;;  %v3560_v11 = vsel %vm3554_vm1, %v3551_v33, %v4738_v48  ;;  %v4744_v9 = vunpack.i.h.bf16 %v4742_v23  ;;  %v4743_v49 = vunpack.i.l.bf16 %v4742_v23 }
 0x7f9   : > { %v4747_v62 = vpop.permute.xlu0 %4746  ;;  %v3568_v46 = vsel %vm1359_vm15, %v3560_v11, %v4738_v48 }
 0x7fa   : > { %v4749_v63 = vunpack.i.h.bf16 %v4747_v62  ;;  %v4748_v55 = vunpack.i.l.bf16 %v4747_v62  ;;  %v3544_v27 = vsel %vm3537_vm0, %v3535_v58, %v4743_v49 }
 0x7fb   : > { %v4752_v34 = vpop.permute.xlu1 %4751 }
 0x7fc   : > { %v3528_v25 = vsel %vm872_vm6, %v4739_v57, %v4749_v63  ;;  %v3577_v22 = vsel %vm3571_vm5, %v3568_v46, %v4748_v55  ;;  %v4754_v21 = vunpack.i.h.bf16 %v4752_v34  ;;  %v4753_v54 = vunpack.i.l.bf16 %v4752_v34 }
 0x7fd   : > { %v3536_v40 = vsel %vm495_vm10, %v3528_v25, %v4749_v63  ;;  %v3504_v24 = vpop.permute.xlu0 %3503  ;;  %3710 = vmatprep.mubr.f32.mxu0 %v3577_v22 }
 0x7fe   : > { %3711 = vmatmul.mubr.f32.gmra.mxu0 %v3576_v32  ;;  %v3545_v37 = vsel %vm3537_vm0, %v3536_v40, %v4744_v9  ;;  %v3552_v10 = vsel %vm523_vm14, %v3544_v27, %v4753_v54 }
 0x7ff   : > { %v4762_v35 = vpop.permute.xlu1 %4761  ;;  %v3553_v4 = vsel %vm523_vm14, %v3545_v37, %v4754_v21 }
 0x800   : > { %v4764_v14 = vunpack.i.h.bf16 %v4762_v35  ;;  %v4763_v42 = vunpack.i.l.bf16 %v4762_v35 }
 0x801   : > { %v4757_v13 = vpop.permute.xlu0 %4756 }
 0x802   : > { %v4759_v26 = vunpack.i.h.bf16 %v4757_v13  ;;  %v4758_v8 = vunpack.i.l.bf16 %v4757_v13  ;;  %v3580_v1 = vsel %vm872_vm6, %v3504_v24, %v4764_v14 }
 0x803   : > { %v3494_v20 = vpop.permute.xlu1 %3493  ;;  %v3581_v18 = vsel %vm495_vm10, %v3580_v1, %v4764_v14 }
 0x804   : > { %v3561_v6 = vsel %vm3554_vm1, %v3552_v10, %v4758_v8  ;;  %v3562_v38 = vsel %vm3554_vm1, %v3553_v4, %v4759_v26 }
 0x805   : > { %v3510_v44 = vpop.permute.xlu0 %3509  ;;  %v3569_v29 = vsel %vm1359_vm15, %v3561_v6, %v4758_v8  ;;  %v3570_v61 = vsel %vm1359_vm15, %v3562_v38, %v4759_v26 }
 0x806   : > { %v3582_v39 = vsel %vm3537_vm0, %v3581_v18, %v3510_v44  ;;  %v3578_v7 = vsel %vm3571_vm5, %v3569_v29, %v4763_v42  ;;  %v3579_v36 = vsel %vm3571_vm5, %v3570_v61, %v3494_v20 }
 0x807   : > { %3715 = vmatprep.mubr.f32.mxu0 %v3578_v7  ;;  %v3583_v56 = vsel %vm523_vm14, %v3582_v39, %v6558_v31  ;;  %v3519_v43 = vpop.permute.xlu1 %3518 }
 0x808   : > { %3716 = vmatmul.mubr.f32.gmra.mxu0 %v3577_v22 }
 0x809   : > { %v3516_v16 = vpop.permute.xlu0 %3515  ;;  %3720 = vmatprep.mubr.f32.mxu0 %v3579_v36 }
 0x80a   : > { %v3584_v17 = vsel %vm3554_vm1, %v3583_v56, %v3516_v16 }
 0x80b   : > { %v3585_v28 = vsel %vm1359_vm15, %v3584_v17, %v3516_v16 }
 0x80c   : > { %3721 = vmatmul.mubr.f32.gmra.mxu0 %v3578_v7  ;;  %v3586_v2 = vsel %vm3571_vm5, %v3585_v28, %v3519_v43 }
 0x80d   : > { %3725 = vmatprep.mubr.f32.mxu0 %v3586_v2 }
 0x810   : > { %3726 = vmatmul.mubr.f32.gmra.mxu0 %v3579_v36 }
 0x8a7   : > { %v4128_v19 = vpop.f32.mrf.mxu0 }
 0x8a9   : > { %v4129_v5 = vpop.f32.mrf.mxu0 }
 0x8aa   : > { %v4130_v0 = vadd.f32 %v4129_v5, %v4128_v19 }
 0x8ac   : > { %v3693_v31 = vadd.f32 %v4130_v0, %v3857_v45  ;;  %v4131_v52 = vpop.f32.mrf.mxu0 }
 0x8ae   : > { %3731 = vst.msk [vmem:[%s6631_s28] sm:$0xff] %vm3537_vm0, %v3693_v31  ;;  %v4132_v47 = vpop.f32.mrf.mxu0 }
 0x8af   : > { %v4133_v12 = vadd.f32 %v4132_v47, %v4131_v52 }
 0x8b1   : > { %v3698_v59 = vadd.f32 %v4133_v12, %v3857_v45 }
 0x8b2   : > { %v4134_v60 = vpop.f32.mrf.mxu0 }
 0x8b3   : > { %3732 = vst.msk [vmem:[%s6631_s28 + $0x8] sm:$0xff] %vm3537_vm0, %v3698_v59 }
 0x8b4   : > { %v4135_v41 = vpop.f32.mrf.mxu0 }
 0x8b5   : > { %v4136_v15 = vadd.f32 %v4135_v41, %v4134_v60 }
 0x8b7   : > { %v3703_v30 = vadd.f32 %v4136_v15, %v3857_v45 }
 0x8b8   : > { %v4137_v50 = vpop.f32.mrf.mxu0 }
 0x8b9   : > { %3733 = vst.msk [vmem:[%s6631_s28 + $0x10] sm:$0xff] %vm3537_vm0, %v3703_v30 }
 0x8ba   : > { %v4138_v48 = vpop.f32.mrf.mxu0 }
 0x8bb   : > { %v4139_v32 = vadd.f32 %v4138_v48, %v4137_v50 }
 0x8bd   : > { %v3708_v33 = vadd.f32 %v4139_v32, %v3857_v45 }
 0x8be   : > { %v4140_v23 = vpop.f32.mrf.mxu0 }
 0x8bf   : > { %3734 = vst.msk [vmem:[%s6631_s28 + $0x18] sm:$0xff] %vm3537_vm0, %v3708_v33 }
 0x8c0   : > { %v4141_v11 = vpop.f32.mrf.mxu0 }
 0x8c1   : > { %v4142_v62 = vadd.f32 %v4141_v11, %v4140_v23 }
 0x8c3   : > { %v3713_v53 = vadd.f32 %v4142_v62, %v3857_v45 }
 0x8c5   : > { %3735 = vst.msk [vmem:[%s6631_s28 + $0x20] sm:$0xff] %vm3537_vm0, %v3713_v53 }
 0x8c8   : > { %v4143_v57 = vpop.f32.mrf.mxu0 }
 0x8ca   : > { %v4144_v63 = vpop.f32.mrf.mxu0 }
 0x8cb   : > { %v4145_v55 = vadd.f32 %v4144_v63, %v4143_v57 }
 0x8cc   : > { %v4146_v34 = vpop.f32.mrf.mxu0 }
 0x8cd   : > { %v3718_v46 = vadd.f32 %v4145_v55, %v3857_v45 }
 0x8ce   : > { %v4147_v51 = vpop.f32.mrf.mxu0 }
 0x8cf   : > { %3736 = vst.msk [vmem:[%s6631_s28 + $0x28] sm:$0xff] %vm3537_vm0, %v3718_v46  ;;  %v4148_v25 = vadd.f32 %v4147_v51, %v4146_v34 }
 0x8d0   : > { %v4149_v22 = vpop.f32.mrf.mxu0 }
 0x8d1   : > { %v3723_v40 = vadd.f32 %v4148_v25, %v3857_v45 }
 0x8d2   : > { %v4150_v24 = vpop.f32.mrf.mxu0 }
 0x8d3   : > { %3737 = vst.msk [vmem:[%s6631_s28 + $0x30] sm:$0xff] %vm3537_vm0, %v3723_v40  ;;  %v4151_v3 = vadd.f32 %v4150_v24, %v4149_v22 }
 0x8d5   : > { %v3728_v9 = vadd.f32 %v4151_v3, %v3857_v45 }
 0x8d7   : > { %3738 = vst.msk [vmem:[%s6631_s28 + $0x38] sm:$0xff] %vm3537_vm0, %v3728_v9 }
 0x8d8 PF: > { %s25_s18 = sadd.s32 1, %s4771_s18  }
 0x8d9   : > { %p22_p4 = scmp.ge.s32.totalorder %s25_s18, 4  }
 0x8db   :  { %24 = sbr.rel (!%p22_p4) target bundleno = 1 (0x1), region = 114 }

</bundles_post_ra>
